<compile_context>
chip_gen: v7x
topology: tpu7x:2x2x1
jax: 0.10.0
libtpu: 0.0.40
codegen_flags: <defaults>
</compile_context>

<pallas_src>
import math

import numpy as np
import jax
import jax.numpy as jnp
from jax.experimental import pallas as pl
from jax.experimental.pallas import tpu as pltpu

ACTION_DIMS = [2, 16, 5, 5, 5, 4]
N_HEADS = 4
EMBED = 32
HEAD_DIM = EMBED // N_HEADS          # 8
SEQ_LEN = 8
VOCAB = 2000
FFN = 2048

# ---- slab layouts (row offsets), shared by the packer and the kernel ----
# W32 slab: bf16, 32 lanes
W32_GW1 = 0                          # 16 rows (3 used; rest zero)
W32_GW2 = 16                         # 32 rows
W32_CNN = 48                         # 144 rows  (avgpool+fc folded)
W32_WO = (192, 224)                  # 32 rows per layer
W32_TFW = 256                        # 32 rows
W32_W2 = (288, 288 + FFN)            # 2048 rows per layer (FFN down-proj)
W32_ROWS = 288 + 2 * FFN             # 4384

# W128 slab: bf16, 128 lanes
W128_WQKV = (0, 32)                  # 32 rows per layer (cols 0:96 used)
W128_FW = 64                         # 96 rows (fusion fc, split 3x32 in-kernel)
W128_AW = 160                        # 128 rows (actor fc)
W128_HW = 288                        # 128 rows (6 heads packed, zero-padded)
W128_ROWS = 416

# W2048 slab: bf16, 2048 lanes (FFN up-proj)
W2048_W1 = (0, 32)
W2048_ROWS = 64

# BIAS slab: f32, 128 lanes, one row per bias / LN param
B_GB1, B_GB2, B_CFB = 0, 1, 2
B_LAYER = 3                          # + li*7: [bqkv, bo, ln1g, ln1b, b2, ln2g, ln2b]
B_TFB = B_LAYER + 14                 # 17
B_FB, B_AB, B_HB = 18, 19, 20
B_ROWS = 21


# ----------------------------- fused Pallas kernel -----------------------------

def _fused_policy_kernel(seq_ref, node_ref, img_ref, embed_hbm,
                         w2048, b2048, k1, k2, cb, w128, w32, bias,
                         out_ref, emb_buf, emb_sem):
    f32 = jnp.float32
    bf16 = jnp.bfloat16

    def mm(x, w):                                  # bf16 in, f32 accumulate
        return jnp.dot(x.astype(bf16), w.astype(bf16), preferred_element_type=f32)

    def mm_tb(x, w):                               # contract last dims of both (no .T)
        return jax.lax.dot_general(
            x.astype(bf16), w.astype(bf16),
            dimension_numbers=(((1,), (1,)), ((), ())),
            preferred_element_type=f32)

    def brow(r, width=128):                        # one bias / LN row, f32
        return bias[r:r + 1, 0:width]

    def layer_norm(x, g, b, eps=1e-5):
        mu = jnp.mean(x, axis=-1, keepdims=True)
        var = jnp.mean((x - mu) ** 2, axis=-1, keepdims=True)
        return (x - mu) * jax.lax.rsqrt(var + eps) * g + b

    # ---- kick off the 8 embedding-row gathers first; they overlap GCN/CNN compute ----
    emb_copies = []
    for i in range(SEQ_LEN):
        cp = pltpu.make_async_copy(
            embed_hbm.at[pl.ds(seq_ref[i], 1), :],
            emb_buf.at[pl.ds(i, 1), :],
            emb_sem.at[i])
        cp.start()
        emb_copies.append(cp)

    # ---- SimpleGCN (edges unused, exactly as in the reference) ----
    h = jnp.maximum(mm(node_ref[...], w32[W32_GW1:W32_GW1 + 16, :]) + brow(B_GB1, 32), 0.0)
    h = mm(h, w32[W32_GW2:W32_GW2 + 32, :]) + brow(B_GB2, 32)             # (6,32)
    graph_feat = jnp.mean(h, axis=0, keepdims=True)                       # (1,32)

    # ---- SimpleCNN: conv1/conv2 folded to matmuls; pool+fc folded to one matmul ----
    y = jnp.maximum(mm(img_ref[...], k1[...]) + cb[0:1, :], 0.0)          # (1,392)
    y = jnp.maximum(mm(y, k2[...]) + cb[1:2, 0:144], 0.0)                 # (1,144)
    img_feat = mm(y, w32[W32_CNN:W32_CNN + 144, :]) + brow(B_CFB, 32)     # (1,32)

    # ---- SimpleTransformer: 2 post-norm encoder layers (eval semantics) ----
    for cp in emb_copies:
        cp.wait()
    x = emb_buf[...]                                                      # (8,32) f32

    scale = 1.0 / math.sqrt(HEAD_DIM)
    for li in range(2):
        r = B_LAYER + li * 7
        wqkv = w128[W128_WQKV[li]:W128_WQKV[li] + 32, :]                  # (32,128)
        wo = w32[W32_WO[li]:W32_WO[li] + 32, :]                           # (32,32)
        w1 = w2048[W2048_W1[li]:W2048_W1[li] + 32, :]                     # (32,2048)
        w2 = w32[W32_W2[li]:W32_W2[li] + FFN, :]                          # (2048,32)

        qkv = mm(x, wqkv) + bias[r:r + 1, :]                              # (8,128); 96:128 zero
        attn = jnp.zeros((SEQ_LEN, EMBED), f32)
        for hh in range(N_HEADS):
            q_h = qkv[:, hh * HEAD_DIM:(hh + 1) * HEAD_DIM]
            k_h = qkv[:, EMBED + hh * HEAD_DIM:EMBED + (hh + 1) * HEAD_DIM]
            v_h = qkv[:, 2 * EMBED + hh * HEAD_DIM:2 * EMBED + (hh + 1) * HEAD_DIM]
            s = mm_tb(q_h, k_h) * scale                                   # (8,8)
            s = s - jnp.max(s, axis=-1, keepdims=True)
            p = jnp.exp(s)
            p = p * pl.reciprocal(jnp.sum(p, axis=-1, keepdims=True), approx=True)
            # accumulate (p @ v_h) through this head's rows of the out-projection
            attn = attn + mm(mm(p, v_h), wo[hh * HEAD_DIM:(hh + 1) * HEAD_DIM, :])
        attn = attn + brow(r + 1, 32)                                     # out_proj bias
        x = layer_norm(x + attn, brow(r + 2, 32), brow(r + 3, 32))

        ff = jnp.maximum(mm(x, w1) + b2048[li:li + 1, :], 0.0)            # (8,2048)
        ff = mm(ff, w2) + brow(r + 4, 32)                                 # (8,32)
        x = layer_norm(x + ff, brow(r + 5, 32), brow(r + 6, 32))

    seq_feat = mm(jnp.mean(x, axis=0, keepdims=True),
                  w32[W32_TFW:W32_TFW + 32, :]) + brow(B_TFB, 32)         # (1,32)

    # ---- fusion (concat folded into 3 partial matmuls) + PPOActor + packed heads ----
    fused = (mm(graph_feat, w128[W128_FW:W128_FW + 32, :])
             + mm(img_feat, w128[W128_FW + 32:W128_FW + 64, :])
             + mm(seq_feat, w128[W128_FW + 64:W128_FW + 96, :])
             + brow(B_FB, 128))
    fused = jnp.maximum(fused, 0.0)                                       # (1,128)
    feat = jnp.maximum(mm(fused, w128[W128_AW:W128_AW + 128, :]) + brow(B_AB, 128), 0.0)
    out_ref[...] = mm(feat, w128[W128_HW:W128_HW + 128, :]) + brow(B_HB, 128)


def _vmem_spec(shape):
    zeros = (0,) * len(shape)
    return pl.BlockSpec(shape, lambda i, seq_ref, _z=zeros: _z)


def pcb_policy_forward(params, node_feats, edges, image, sequence):
    del edges  # accepted but unused, exactly as in the reference SimpleGCN
    seq = sequence.reshape(-1).astype(jnp.int32)                      # (8,) scalar-prefetch
    node_pad = jnp.pad(node_feats, ((0, 0), (0, 16 - node_feats.shape[1])))  # (6,16)
    img_row = image.reshape(1, -1)                                    # (1,256) flat HxW, Cin=1

    w2048, b2048, k1, k2, cb, w128, w32, bias = params['slabs']
    embed = params['embed']
    array_inputs = (node_pad, img_row, embed, w2048, b2048, k1, k2, cb, w128, w32, bias)

    in_specs = [
        _vmem_spec(node_pad.shape),
        _vmem_spec(img_row.shape),
        pl.BlockSpec(memory_space=pl.ANY),        # embedding table stays in HBM
    ] + [_vmem_spec(a.shape) for a in (w2048, b2048, k1, k2, cb, w128, w32, bias)]

    out = pl.pallas_call(
        _fused_policy_kernel,
        out_shape=jax.ShapeDtypeStruct((1, 128), jnp.float32),
        grid_spec=pltpu.PrefetchScalarGridSpec(
            num_scalar_prefetch=1,
            grid=(1,),
            in_specs=in_specs,
            out_specs=pl.BlockSpec((1, 128), lambda i, seq_ref: (0, 0)),
            scratch_shapes=[pltpu.VMEM((SEQ_LEN, EMBED), jnp.float32),
                            pltpu.SemaphoreType.DMA((SEQ_LEN,))]),
        compiler_params=pltpu.CompilerParams(
            dimension_semantics=("arbitrary",),
            vmem_limit_bytes=32 * 1024 * 1024),
    )(seq, *array_inputs)

    flat = out[0]
    logits, off = [], 0
    for d in ACTION_DIMS:
        logits.append(flat[off:off + d])
        off += d
    return logits


# ----------------------------- parameter init / packing -----------------------------

def init_linear(key, fan_in, fan_out, scale=0.05):
    kw, kb = jax.random.split(key)
    w = np.asarray(jax.random.normal(kw, (fan_in, fan_out), jnp.float32)) * scale
    b = np.asarray(jax.random.normal(kb, (fan_out,), jnp.float32)) * scale
    return w.astype(np.float32), b.astype(np.float32)


def conv_as_matmul(w, b, h_in, w_in, stride=2):
    """Fold Conv2d(k=3, stride=2, padding=0) into a dense matmul on a flattened input
    laid out position-major / channel-minor. w: (Cout, Cin, kh, kw) PyTorch layout."""
    c_out, c_in, kh, kw = w.shape
    h_out = (h_in - kh) // stride + 1
    w_out = (w_in - kw) // stride + 1
    m = np.zeros((h_in * w_in * c_in, h_out * w_out * c_out), np.float32)
    for ho in range(h_out):
        for wo in range(w_out):
            for co in range(c_out):
                col = (ho * w_out + wo) * c_out + co
                for ci in range(c_in):
                    for dy in range(kh):
                        for dx in range(kw):
                            row = ((ho * stride + dy) * w_in + (wo * stride + dx)) * c_in + ci
                            m[row, col] = w[co, ci, dy, dx]
    bias = np.tile(b.astype(np.float32), h_out * w_out)
    return m, bias, (h_out, w_out, c_out)


def avgpool_matrix(n_pos, c):
    m = np.zeros((n_pos * c, c), np.float32)
    for p in range(n_pos):
        for cc in range(c):
            m[p * c + cc, cc] = 1.0 / n_pos
    return m


def init_params(key):
    it = iter(jax.random.split(key, 64))
    nk = lambda: next(it)

    # SimpleGCN(3, 32, 32)
    gw1, gb1 = init_linear(nk(), 3, 32)
    gw2, gb2 = init_linear(nk(), 32, 32)

    # SimpleCNN(32): Conv2d(1,8,3,s2)+ReLU -> Conv2d(8,16,3,s2)+ReLU -> AvgPool(1) -> Linear(16,32)
    conv1_w = np.asarray(jax.random.normal(nk(), (8, 1, 3, 3), jnp.float32)) * 0.05
    conv1_b = np.asarray(jax.random.normal(nk(), (8,), jnp.float32)) * 0.05
    conv2_w = np.asarray(jax.random.normal(nk(), (16, 8, 3, 3), jnp.float32)) * 0.05
    conv2_b = np.asarray(jax.random.normal(nk(), (16,), jnp.float32)) * 0.05
    k1, cb1, (h1, w1s, c1) = conv_as_matmul(conv1_w, conv1_b, 16, 16)     # (256,392)
    k2, cb2, (h2, w2s, c2) = conv_as_matmul(conv2_w, conv2_b, h1, w1s)    # (392,144)
    pool = avgpool_matrix(h2 * w2s, c2)                                   # (144,16)
    cfw, cfb = init_linear(nk(), 16, 32)
    cnn_comb = pool @ cfw                                                 # fold pool + fc -> (144,32)

    # SimpleTransformer(2000, 32, 4, 32): embedding + 2 post-norm encoder layers, ffn=2048
    embed = jax.random.normal(nk(), (VOCAB, EMBED), jnp.float32) * 0.05
    layers = []
    for _ in range(2):
        wq, bq = init_linear(nk(), 32, 32)
        wk, bk = init_linear(nk(), 32, 32)
        wv, bv = init_linear(nk(), 32, 32)
        wo, bo = init_linear(nk(), 32, 32)
        w1, b1 = init_linear(nk(), 32, FFN)
        w2, b2 = init_linear(nk(), FFN, 32)
        layers.append(dict(
            wqkv=np.concatenate([wq, wk, wv], axis=1), bqkv=np.concatenate([bq, bk, bv]),
            wo=wo, bo=bo, w1=w1, b1=b1, w2=w2, b2=b2,
            ln1g=np.ones(32, np.float32), ln1b=np.zeros(32, np.float32),
            ln2g=np.ones(32, np.float32), ln2b=np.zeros(32, np.float32)))
    tfw, tfb = init_linear(nk(), 32, 32)

    # fusion + PPOActor (6 heads packed into one zero-padded lane-dense matmul)
    fw, fb = init_linear(nk(), 96, 128)
    aw, ab = init_linear(nk(), 128, 128)
    hw = np.zeros((128, 128), np.float32)
    hb = np.zeros(128, np.float32)
    off = 0
    for d in ACTION_DIMS:
        w, b = init_linear(nk(), 128, d)
        hw[:, off:off + d] = w
        hb[off:off + d] = b
        off += d

    # ---- pack everything into a few lane-dense slabs ----
    w32 = np.zeros((W32_ROWS, 32), np.float32)
    w32[W32_GW1:W32_GW1 + 3] = gw1
    w32[W32_GW2:W32_GW2 + 32] = gw2
    w32[W32_CNN:W32_CNN + 144] = cnn_comb
    for li, L in enumerate(layers):
        w32[W32_WO[li]:W32_WO[li] + 32] = L['wo']
        w32[W32_W2[li]:W32_W2[li] + FFN] = L['w2']
    w32[W32_TFW:W32_TFW + 32] = tfw

    w128 = np.zeros((W128_ROWS, 128), np.float32)
    for li, L in enumerate(layers):
        w128[W128_WQKV[li]:W128_WQKV[li] + 32, :96] = L['wqkv']
    w128[W128_FW:W128_FW + 96] = fw
    w128[W128_AW:W128_AW + 128] = aw
    w128[W128_HW:W128_HW + 128] = hw

    w2048 = np.zeros((W2048_ROWS, FFN), np.float32)
    for li, L in enumerate(layers):
        w2048[W2048_W1[li]:W2048_W1[li] + 32] = L['w1']
    b2048 = np.stack([layers[0]['b1'], layers[1]['b1']])                  # (2,2048) f32

    cbias = np.zeros((2, 392), np.float32)
    cbias[0, :392] = cb1
    cbias[1, :144] = cb2

    bias = np.zeros((B_ROWS, 128), np.float32)
    bias[B_GB1, :32] = gb1
    bias[B_GB2, :32] = gb2
    bias[B_CFB, :32] = cfb
    for li, L in enumerate(layers):
        r = B_LAYER + li * 7
        bias[r + 0, :96] = L['bqkv']
        bias[r + 1, :32] = L['bo']
        bias[r + 2, :32] = L['ln1g']
        bias[r + 3, :32] = L['ln1b']
        bias[r + 4, :32] = L['b2']
        bias[r + 5, :32] = L['ln2g']
        bias[r + 6, :32] = L['ln2b']
    bias[B_TFB, :32] = tfb
    bias[B_FB, :128] = fb
    bias[B_AB, :128] = ab
    bias[B_HB, :128] = hb

    slabs = (jnp.asarray(w2048, jnp.bfloat16),   # FFN up-proj weights
             jnp.asarray(b2048, jnp.float32),    # FFN up-proj biases
             jnp.asarray(k1, jnp.bfloat16),      # conv1 as matmul
             jnp.asarray(k2, jnp.bfloat16),      # conv2 as matmul
             jnp.asarray(cbias, jnp.float32),    # conv biases (position-tiled)
             jnp.asarray(w128, jnp.bfloat16),    # qkv / fusion / actor / heads
             jnp.asarray(w32, jnp.bfloat16),     # gcn / cnn-fc / wo / ffn-down / trans-fc
             jnp.asarray(bias, jnp.float32))     # all small biases + LayerNorm params
    return {'embed': embed, 'slabs': slabs}


# ----------------------------- main -----------------------------

if __name__ == "__main__":
    key = jax.random.PRNGKey(0)
    kp, kn, ke, ki, ks = jax.random.split(key, 5)

    params = init_params(kp)

    node_feats = jax.random.normal(kn, (6, 3), jnp.float32)              # 6 nodes, 3 feats
    edges = jax.random.randint(ke, (10, 2), 0, 6, dtype=jnp.int32)       # unused by the GCN
    image = jax.random.normal(ki, (1, 16, 16), jnp.float32)              # (batch=1, H, W)
    sequence = jax.random.randint(ks, (1, 8), 0, 2000, dtype=jnp.int32)  # (batch=1, L)

    fwd = jax.jit(pcb_policy_forward)
    logits = fwd(params, node_feats, edges, image, sequence)
    logits = jax.block_until_ready(logits)

    assert [tuple(l.shape) for l in logits] == [(d,) for d in ACTION_DIMS]
    assert all(bool(jnp.all(jnp.isfinite(l))) for l in logits)
    print("KERNEL_OK")
</pallas_src>

<mosaic_0001>
module attributes {stable_mosaic.version = 11 : i64} {
  func.func @_fused_policy_kernel(%arg0: i32, %arg1: memref<8xi32, #tpu.memory_space<smem>>, %arg2: memref<6x16xf32, #tpu.memory_space<vmem>>, %arg3: memref<1x256xf32, #tpu.memory_space<vmem>>, %arg4: memref<2000x32xf32, #tpu.memory_space<any>>, %arg5: memref<64x2048xbf16, #tpu.memory_space<vmem>>, %arg6: memref<2x2048xf32, #tpu.memory_space<vmem>>, %arg7: memref<256x392xbf16, #tpu.memory_space<vmem>>, %arg8: memref<392x144xbf16, #tpu.memory_space<vmem>>, %arg9: memref<2x392xf32, #tpu.memory_space<vmem>>, %arg10: memref<416x128xbf16, #tpu.memory_space<vmem>>, %arg11: memref<4384x32xbf16, #tpu.memory_space<vmem>>, %arg12: memref<21x128xf32, #tpu.memory_space<vmem>>, %arg13: memref<1x128xf32, #tpu.memory_space<vmem>>, %arg14: memref<8x32xf32, #tpu.memory_space<vmem>>, %arg15: memref<8x!tpu.dma_semaphore, #tpu.memory_space<semaphore_mem>>) attributes {dimension_semantics = [#tpu.dimension_semantics<arbitrary>], iteration_bounds = array<i64: 1>, scalar_prefetch = 1 : i64, scratch_operands = 2 : i64, tpu.core_type = #tpu.core_type<tc>, window_params = [{pipeline_mode = #tpu.pipeline_mode<synchronous>, transform_indices = @transform_0, window_bounds = array<i64: 6, 16>}, {pipeline_mode = #tpu.pipeline_mode<synchronous>, transform_indices = @transform_1, window_bounds = array<i64: 1, 256>}, {}, {pipeline_mode = #tpu.pipeline_mode<synchronous>, transform_indices = @transform_3, window_bounds = array<i64: 64, 2048>}, {pipeline_mode = #tpu.pipeline_mode<synchronous>, transform_indices = @transform_4, window_bounds = array<i64: 2, 2048>}, {pipeline_mode = #tpu.pipeline_mode<synchronous>, transform_indices = @transform_5, window_bounds = array<i64: 256, 392>}, {pipeline_mode = #tpu.pipeline_mode<synchronous>, transform_indices = @transform_6, window_bounds = array<i64: 392, 144>}, {pipeline_mode = #tpu.pipeline_mode<synchronous>, transform_indices = @transform_7, window_bounds = array<i64: 2, 392>}, {pipeline_mode = #tpu.pipeline_mode<synchronous>, transform_indices = @transform_8, window_bounds = array<i64: 416, 128>}, {pipeline_mode = #tpu.pipeline_mode<synchronous>, transform_indices = @transform_9, window_bounds = array<i64: 4384, 32>}, {pipeline_mode = #tpu.pipeline_mode<synchronous>, transform_indices = @transform_10, window_bounds = array<i64: 21, 128>}, {pipeline_mode = #tpu.pipeline_mode<synchronous>, transform_indices = @transform_11, window_bounds = array<i64: 1, 128>}]} {
    %c0 = arith.constant 0 : index
    %0 = memref.load %arg1[%c0] : memref<8xi32, #tpu.memory_space<smem>>
    %c0_i32 = arith.constant 0 : i32
    %c0_i32_0 = arith.constant 0 : i32
    %1 = tpu.memref_slice %arg4[%0, %c0_i32_0] : memref<2000x32xf32, #tpu.memory_space<any>> -> memref<1x32xf32, #tpu.memory_space<any>>
    %c0_i32_1 = arith.constant 0 : i32
    %c0_i32_2 = arith.constant 0 : i32
    %2 = tpu.memref_slice %arg14[%c0_i32_1, %c0_i32_2] : memref<8x32xf32, #tpu.memory_space<vmem>> -> memref<1x32xf32, #tpu.memory_space<vmem>>
    %3 = tpu.memref_slice %arg15[%c0_i32] : memref<8x!tpu.dma_semaphore, #tpu.memory_space<semaphore_mem>> -> memref<1x!tpu.dma_semaphore, #tpu.memory_space<semaphore_mem>>
    %4 = tpu.memref_squeeze %3 : memref<1x!tpu.dma_semaphore, #tpu.memory_space<semaphore_mem>> -> memref<!tpu.dma_semaphore, #tpu.memory_space<semaphore_mem>>
    tpu.enqueue_dma source(%1 : memref<1x32xf32, #tpu.memory_space<any>>) target(%2 : memref<1x32xf32, #tpu.memory_space<vmem>>) target_semaphore(%4 : memref<!tpu.dma_semaphore, #tpu.memory_space<semaphore_mem>>)
    %c1 = arith.constant 1 : index
    %5 = memref.load %arg1[%c1] : memref<8xi32, #tpu.memory_space<smem>>
    %c1_i32 = arith.constant 1 : i32
    %c0_i32_3 = arith.constant 0 : i32
    %6 = tpu.memref_slice %arg4[%5, %c0_i32_3] : memref<2000x32xf32, #tpu.memory_space<any>> -> memref<1x32xf32, #tpu.memory_space<any>>
    %c1_i32_4 = arith.constant 1 : i32
    %c0_i32_5 = arith.constant 0 : i32
    %7 = tpu.memref_slice %arg14[%c1_i32_4, %c0_i32_5] : memref<8x32xf32, #tpu.memory_space<vmem>> -> memref<1x32xf32, #tpu.memory_space<vmem>>
    %8 = tpu.memref_slice %arg15[%c1_i32] : memref<8x!tpu.dma_semaphore, #tpu.memory_space<semaphore_mem>> -> memref<1x!tpu.dma_semaphore, #tpu.memory_space<semaphore_mem>>
    %9 = tpu.memref_squeeze %8 : memref<1x!tpu.dma_semaphore, #tpu.memory_space<semaphore_mem>> -> memref<!tpu.dma_semaphore, #tpu.memory_space<semaphore_mem>>
    tpu.enqueue_dma source(%6 : memref<1x32xf32, #tpu.memory_space<any>>) target(%7 : memref<1x32xf32, #tpu.memory_space<vmem>>) target_semaphore(%9 : memref<!tpu.dma_semaphore, #tpu.memory_space<semaphore_mem>>)
    %c2 = arith.constant 2 : index
    %10 = memref.load %arg1[%c2] : memref<8xi32, #tpu.memory_space<smem>>
    %c2_i32 = arith.constant 2 : i32
    %c0_i32_6 = arith.constant 0 : i32
    %11 = tpu.memref_slice %arg4[%10, %c0_i32_6] : memref<2000x32xf32, #tpu.memory_space<any>> -> memref<1x32xf32, #tpu.memory_space<any>>
    %c2_i32_7 = arith.constant 2 : i32
    %c0_i32_8 = arith.constant 0 : i32
    %12 = tpu.memref_slice %arg14[%c2_i32_7, %c0_i32_8] : memref<8x32xf32, #tpu.memory_space<vmem>> -> memref<1x32xf32, #tpu.memory_space<vmem>>
    %13 = tpu.memref_slice %arg15[%c2_i32] : memref<8x!tpu.dma_semaphore, #tpu.memory_space<semaphore_mem>> -> memref<1x!tpu.dma_semaphore, #tpu.memory_space<semaphore_mem>>
    %14 = tpu.memref_squeeze %13 : memref<1x!tpu.dma_semaphore, #tpu.memory_space<semaphore_mem>> -> memref<!tpu.dma_semaphore, #tpu.memory_space<semaphore_mem>>
    tpu.enqueue_dma source(%11 : memref<1x32xf32, #tpu.memory_space<any>>) target(%12 : memref<1x32xf32, #tpu.memory_space<vmem>>) target_semaphore(%14 : memref<!tpu.dma_semaphore, #tpu.memory_space<semaphore_mem>>)
    %c3 = arith.constant 3 : index
    %15 = memref.load %arg1[%c3] : memref<8xi32, #tpu.memory_space<smem>>
    %c3_i32 = arith.constant 3 : i32
    %c0_i32_9 = arith.constant 0 : i32
    %16 = tpu.memref_slice %arg4[%15, %c0_i32_9] : memref<2000x32xf32, #tpu.memory_space<any>> -> memref<1x32xf32, #tpu.memory_space<any>>
    %c3_i32_10 = arith.constant 3 : i32
    %c0_i32_11 = arith.constant 0 : i32
    %17 = tpu.memref_slice %arg14[%c3_i32_10, %c0_i32_11] : memref<8x32xf32, #tpu.memory_space<vmem>> -> memref<1x32xf32, #tpu.memory_space<vmem>>
    %18 = tpu.memref_slice %arg15[%c3_i32] : memref<8x!tpu.dma_semaphore, #tpu.memory_space<semaphore_mem>> -> memref<1x!tpu.dma_semaphore, #tpu.memory_space<semaphore_mem>>
    %19 = tpu.memref_squeeze %18 : memref<1x!tpu.dma_semaphore, #tpu.memory_space<semaphore_mem>> -> memref<!tpu.dma_semaphore, #tpu.memory_space<semaphore_mem>>
    tpu.enqueue_dma source(%16 : memref<1x32xf32, #tpu.memory_space<any>>) target(%17 : memref<1x32xf32, #tpu.memory_space<vmem>>) target_semaphore(%19 : memref<!tpu.dma_semaphore, #tpu.memory_space<semaphore_mem>>)
    %c4 = arith.constant 4 : index
    %20 = memref.load %arg1[%c4] : memref<8xi32, #tpu.memory_space<smem>>
    %c4_i32 = arith.constant 4 : i32
    %c0_i32_12 = arith.constant 0 : i32
    %21 = tpu.memref_slice %arg4[%20, %c0_i32_12] : memref<2000x32xf32, #tpu.memory_space<any>> -> memref<1x32xf32, #tpu.memory_space<any>>
    %c4_i32_13 = arith.constant 4 : i32
    %c0_i32_14 = arith.constant 0 : i32
    %22 = tpu.memref_slice %arg14[%c4_i32_13, %c0_i32_14] : memref<8x32xf32, #tpu.memory_space<vmem>> -> memref<1x32xf32, #tpu.memory_space<vmem>>
    %23 = tpu.memref_slice %arg15[%c4_i32] : memref<8x!tpu.dma_semaphore, #tpu.memory_space<semaphore_mem>> -> memref<1x!tpu.dma_semaphore, #tpu.memory_space<semaphore_mem>>
    %24 = tpu.memref_squeeze %23 : memref<1x!tpu.dma_semaphore, #tpu.memory_space<semaphore_mem>> -> memref<!tpu.dma_semaphore, #tpu.memory_space<semaphore_mem>>
    tpu.enqueue_dma source(%21 : memref<1x32xf32, #tpu.memory_space<any>>) target(%22 : memref<1x32xf32, #tpu.memory_space<vmem>>) target_semaphore(%24 : memref<!tpu.dma_semaphore, #tpu.memory_space<semaphore_mem>>)
    %c5 = arith.constant 5 : index
    %25 = memref.load %arg1[%c5] : memref<8xi32, #tpu.memory_space<smem>>
    %c5_i32 = arith.constant 5 : i32
    %c0_i32_15 = arith.constant 0 : i32
    %26 = tpu.memref_slice %arg4[%25, %c0_i32_15] : memref<2000x32xf32, #tpu.memory_space<any>> -> memref<1x32xf32, #tpu.memory_space<any>>
    %c5_i32_16 = arith.constant 5 : i32
    %c0_i32_17 = arith.constant 0 : i32
    %27 = tpu.memref_slice %arg14[%c5_i32_16, %c0_i32_17] : memref<8x32xf32, #tpu.memory_space<vmem>> -> memref<1x32xf32, #tpu.memory_space<vmem>>
    %28 = tpu.memref_slice %arg15[%c5_i32] : memref<8x!tpu.dma_semaphore, #tpu.memory_space<semaphore_mem>> -> memref<1x!tpu.dma_semaphore, #tpu.memory_space<semaphore_mem>>
    %29 = tpu.memref_squeeze %28 : memref<1x!tpu.dma_semaphore, #tpu.memory_space<semaphore_mem>> -> memref<!tpu.dma_semaphore, #tpu.memory_space<semaphore_mem>>
    tpu.enqueue_dma source(%26 : memref<1x32xf32, #tpu.memory_space<any>>) target(%27 : memref<1x32xf32, #tpu.memory_space<vmem>>) target_semaphore(%29 : memref<!tpu.dma_semaphore, #tpu.memory_space<semaphore_mem>>)
    %c6 = arith.constant 6 : index
    %30 = memref.load %arg1[%c6] : memref<8xi32, #tpu.memory_space<smem>>
    %c6_i32 = arith.constant 6 : i32
    %c0_i32_18 = arith.constant 0 : i32
    %31 = tpu.memref_slice %arg4[%30, %c0_i32_18] : memref<2000x32xf32, #tpu.memory_space<any>> -> memref<1x32xf32, #tpu.memory_space<any>>
    %c6_i32_19 = arith.constant 6 : i32
    %c0_i32_20 = arith.constant 0 : i32
    %32 = tpu.memref_slice %arg14[%c6_i32_19, %c0_i32_20] : memref<8x32xf32, #tpu.memory_space<vmem>> -> memref<1x32xf32, #tpu.memory_space<vmem>>
    %33 = tpu.memref_slice %arg15[%c6_i32] : memref<8x!tpu.dma_semaphore, #tpu.memory_space<semaphore_mem>> -> memref<1x!tpu.dma_semaphore, #tpu.memory_space<semaphore_mem>>
    %34 = tpu.memref_squeeze %33 : memref<1x!tpu.dma_semaphore, #tpu.memory_space<semaphore_mem>> -> memref<!tpu.dma_semaphore, #tpu.memory_space<semaphore_mem>>
    tpu.enqueue_dma source(%31 : memref<1x32xf32, #tpu.memory_space<any>>) target(%32 : memref<1x32xf32, #tpu.memory_space<vmem>>) target_semaphore(%34 : memref<!tpu.dma_semaphore, #tpu.memory_space<semaphore_mem>>)
    %c7 = arith.constant 7 : index
    %35 = memref.load %arg1[%c7] : memref<8xi32, #tpu.memory_space<smem>>
    %c7_i32 = arith.constant 7 : i32
    %c0_i32_21 = arith.constant 0 : i32
    %36 = tpu.memref_slice %arg4[%35, %c0_i32_21] : memref<2000x32xf32, #tpu.memory_space<any>> -> memref<1x32xf32, #tpu.memory_space<any>>
    %c7_i32_22 = arith.constant 7 : i32
    %c0_i32_23 = arith.constant 0 : i32
    %37 = tpu.memref_slice %arg14[%c7_i32_22, %c0_i32_23] : memref<8x32xf32, #tpu.memory_space<vmem>> -> memref<1x32xf32, #tpu.memory_space<vmem>>
    %38 = tpu.memref_slice %arg15[%c7_i32] : memref<8x!tpu.dma_semaphore, #tpu.memory_space<semaphore_mem>> -> memref<1x!tpu.dma_semaphore, #tpu.memory_space<semaphore_mem>>
    %39 = tpu.memref_squeeze %38 : memref<1x!tpu.dma_semaphore, #tpu.memory_space<semaphore_mem>> -> memref<!tpu.dma_semaphore, #tpu.memory_space<semaphore_mem>>
    tpu.enqueue_dma source(%36 : memref<1x32xf32, #tpu.memory_space<any>>) target(%37 : memref<1x32xf32, #tpu.memory_space<vmem>>) target_semaphore(%39 : memref<!tpu.dma_semaphore, #tpu.memory_space<semaphore_mem>>)
    %c0_24 = arith.constant 0 : index
    %c0_25 = arith.constant 0 : index
    %40 = vector.load %arg2[%c0_24, %c0_25] : memref<6x16xf32, #tpu.memory_space<vmem>>, vector<6x16xf32>
    %c0_26 = arith.constant 0 : index
    %c0_27 = arith.constant 0 : index
    %41 = vector.load %arg11[%c0_26, %c0_27] : memref<4384x32xbf16, #tpu.memory_space<vmem>>, vector<16x32xbf16>
    %42 = arith.truncf %40 : vector<6x16xf32> to vector<6x16xbf16>
    %cst = arith.constant dense<0.000000e+00> : vector<6x32xf32>
    %43 = tpu.matmul %42, %41, %cst {dimension_numbers = #tpu.dot_dimension_numbers<[1], [0], [0], [1], [0, 0, 1, 1], [], []>} : vector<6x16xbf16>, vector<16x32xbf16>, vector<6x32xf32> -> vector<6x32xf32>
    %c0_28 = arith.constant 0 : index
    %c0_29 = arith.constant 0 : index
    %44 = vector.load %arg12[%c0_28, %c0_29] : memref<21x128xf32, #tpu.memory_space<vmem>>, vector<1x32xf32>
    %45 = vector.broadcast %44 : vector<1x32xf32> to vector<6x32xf32>
    %46 = arith.addf %43, %45 : vector<6x32xf32>
    %cst_30 = arith.constant 0.000000e+00 : f32
    %47 = vector.broadcast %cst_30 : f32 to vector<6x32xf32>
    %48 = arith.maximumf %46, %47 : vector<6x32xf32>
    %c16 = arith.constant 16 : index
    %c0_31 = arith.constant 0 : index
    %49 = vector.load %arg11[%c16, %c0_31] : memref<4384x32xbf16, #tpu.memory_space<vmem>>, vector<32x32xbf16>
    %50 = arith.truncf %48 : vector<6x32xf32> to vector<6x32xbf16>
    %cst_32 = arith.constant dense<0.000000e+00> : vector<6x32xf32>
    %51 = tpu.matmul %50, %49, %cst_32 {dimension_numbers = #tpu.dot_dimension_numbers<[1], [0], [0], [1], [0, 0, 1, 1], [], []>} : vector<6x32xbf16>, vector<32x32xbf16>, vector<6x32xf32> -> vector<6x32xf32>
    %c1_33 = arith.constant 1 : index
    %c0_34 = arith.constant 0 : index
    %52 = vector.load %arg12[%c1_33, %c0_34] : memref<21x128xf32, #tpu.memory_space<vmem>>, vector<1x32xf32>
    %53 = vector.broadcast %52 : vector<1x32xf32> to vector<6x32xf32>
    %54 = arith.addf %51, %53 : vector<6x32xf32>
    %cst_35 = arith.constant dense<0.000000e+00> : vector<32xf32>
    %55 = vector.multi_reduction <add>, %54, %cst_35 [0] : vector<6x32xf32> to vector<32xf32>
    %56 = vector.shape_cast %55 : vector<32xf32> to vector<1x32xf32>
    %cst_36 = arith.constant 6.000000e+00 : f32
    %57 = vector.broadcast %cst_36 : f32 to vector<1x32xf32>
    %58 = arith.divf %56, %57 : vector<1x32xf32>
    %c0_37 = arith.constant 0 : index
    %c0_38 = arith.constant 0 : index
    %59 = vector.load %arg3[%c0_37, %c0_38] : memref<1x256xf32, #tpu.memory_space<vmem>>, vector<1x256xf32>
    %c0_39 = arith.constant 0 : index
    %c0_40 = arith.constant 0 : index
    %60 = vector.load %arg7[%c0_39, %c0_40] : memref<256x392xbf16, #tpu.memory_space<vmem>>, vector<256x392xbf16>
    %61 = arith.truncf %59 : vector<1x256xf32> to vector<1x256xbf16>
    %cst_41 = arith.constant dense<0.000000e+00> : vector<1x392xf32>
    %62 = tpu.matmul %61, %60, %cst_41 {dimension_numbers = #tpu.dot_dimension_numbers<[1], [0], [0], [1], [0, 0, 1, 1], [], []>} : vector<1x256xbf16>, vector<256x392xbf16>, vector<1x392xf32> -> vector<1x392xf32>
    %c0_42 = arith.constant 0 : index
    %c0_43 = arith.constant 0 : index
    %63 = vector.load %arg9[%c0_42, %c0_43] : memref<2x392xf32, #tpu.memory_space<vmem>>, vector<1x392xf32>
    %64 = arith.addf %62, %63 : vector<1x392xf32>
    %cst_44 = arith.constant 0.000000e+00 : f32
    %65 = vector.broadcast %cst_44 : f32 to vector<1x392xf32>
    %66 = arith.maximumf %64, %65 : vector<1x392xf32>
    %c0_45 = arith.constant 0 : index
    %c0_46 = arith.constant 0 : index
    %67 = vector.load %arg8[%c0_45, %c0_46] : memref<392x144xbf16, #tpu.memory_space<vmem>>, vector<392x144xbf16>
    %68 = arith.truncf %66 : vector<1x392xf32> to vector<1x392xbf16>
    %cst_47 = arith.constant dense<0.000000e+00> : vector<1x144xf32>
    %69 = tpu.matmul %68, %67, %cst_47 {dimension_numbers = #tpu.dot_dimension_numbers<[1], [0], [0], [1], [0, 0, 1, 1], [], []>} : vector<1x392xbf16>, vector<392x144xbf16>, vector<1x144xf32> -> vector<1x144xf32>
    %c1_48 = arith.constant 1 : index
    %c0_49 = arith.constant 0 : index
    %70 = vector.load %arg9[%c1_48, %c0_49] : memref<2x392xf32, #tpu.memory_space<vmem>>, vector<1x144xf32>
    %71 = arith.addf %69, %70 : vector<1x144xf32>
    %cst_50 = arith.constant 0.000000e+00 : f32
    %72 = vector.broadcast %cst_50 : f32 to vector<1x144xf32>
    %73 = arith.maximumf %71, %72 : vector<1x144xf32>
    %c48 = arith.constant 48 : index
    %c0_51 = arith.constant 0 : index
    %74 = vector.load %arg11[%c48, %c0_51] : memref<4384x32xbf16, #tpu.memory_space<vmem>>, vector<144x32xbf16>
    %75 = arith.truncf %73 : vector<1x144xf32> to vector<1x144xbf16>
    %cst_52 = arith.constant dense<0.000000e+00> : vector<1x32xf32>
    %76 = tpu.matmul %75, %74, %cst_52 {dimension_numbers = #tpu.dot_dimension_numbers<[1], [0], [0], [1], [0, 0, 1, 1], [], []>} : vector<1x144xbf16>, vector<144x32xbf16>, vector<1x32xf32> -> vector<1x32xf32>
    %c2_53 = arith.constant 2 : index
    %c0_54 = arith.constant 0 : index
    %77 = vector.load %arg12[%c2_53, %c0_54] : memref<21x128xf32, #tpu.memory_space<vmem>>, vector<1x32xf32>
    %78 = arith.addf %76, %77 : vector<1x32xf32>
    %c0_i32_55 = arith.constant 0 : i32
    %c0_i32_56 = arith.constant 0 : i32
    %79 = tpu.memref_slice %arg4[%0, %c0_i32_56] : memref<2000x32xf32, #tpu.memory_space<any>> -> memref<1x32xf32, #tpu.memory_space<any>>
    %c0_i32_57 = arith.constant 0 : i32
    %c0_i32_58 = arith.constant 0 : i32
    %80 = tpu.memref_slice %arg14[%c0_i32_57, %c0_i32_58] : memref<8x32xf32, #tpu.memory_space<vmem>> -> memref<1x32xf32, #tpu.memory_space<vmem>>
    %81 = tpu.memref_slice %arg15[%c0_i32_55] : memref<8x!tpu.dma_semaphore, #tpu.memory_space<semaphore_mem>> -> memref<1x!tpu.dma_semaphore, #tpu.memory_space<semaphore_mem>>
    %82 = tpu.memref_squeeze %81 : memref<1x!tpu.dma_semaphore, #tpu.memory_space<semaphore_mem>> -> memref<!tpu.dma_semaphore, #tpu.memory_space<semaphore_mem>>
    tpu.wait_dma2 semaphore(%82 : memref<!tpu.dma_semaphore, #tpu.memory_space<semaphore_mem>>) src(%79 : memref<1x32xf32, #tpu.memory_space<any>>) dst(%80 : memref<1x32xf32, #tpu.memory_space<vmem>>)
    %c1_i32_59 = arith.constant 1 : i32
    %c0_i32_60 = arith.constant 0 : i32
    %83 = tpu.memref_slice %arg4[%5, %c0_i32_60] : memref<2000x32xf32, #tpu.memory_space<any>> -> memref<1x32xf32, #tpu.memory_space<any>>
    %c1_i32_61 = arith.constant 1 : i32
    %c0_i32_62 = arith.constant 0 : i32
    %84 = tpu.memref_slice %arg14[%c1_i32_61, %c0_i32_62] : memref<8x32xf32, #tpu.memory_space<vmem>> -> memref<1x32xf32, #tpu.memory_space<vmem>>
    %85 = tpu.memref_slice %arg15[%c1_i32_59] : memref<8x!tpu.dma_semaphore, #tpu.memory_space<semaphore_mem>> -> memref<1x!tpu.dma_semaphore, #tpu.memory_space<semaphore_mem>>
    %86 = tpu.memref_squeeze %85 : memref<1x!tpu.dma_semaphore, #tpu.memory_space<semaphore_mem>> -> memref<!tpu.dma_semaphore, #tpu.memory_space<semaphore_mem>>
    tpu.wait_dma2 semaphore(%86 : memref<!tpu.dma_semaphore, #tpu.memory_space<semaphore_mem>>) src(%83 : memref<1x32xf32, #tpu.memory_space<any>>) dst(%84 : memref<1x32xf32, #tpu.memory_space<vmem>>)
    %c2_i32_63 = arith.constant 2 : i32
    %c0_i32_64 = arith.constant 0 : i32
    %87 = tpu.memref_slice %arg4[%10, %c0_i32_64] : memref<2000x32xf32, #tpu.memory_space<any>> -> memref<1x32xf32, #tpu.memory_space<any>>
    %c2_i32_65 = arith.constant 2 : i32
    %c0_i32_66 = arith.constant 0 : i32
    %88 = tpu.memref_slice %arg14[%c2_i32_65, %c0_i32_66] : memref<8x32xf32, #tpu.memory_space<vmem>> -> memref<1x32xf32, #tpu.memory_space<vmem>>
    %89 = tpu.memref_slice %arg15[%c2_i32_63] : memref<8x!tpu.dma_semaphore, #tpu.memory_space<semaphore_mem>> -> memref<1x!tpu.dma_semaphore, #tpu.memory_space<semaphore_mem>>
    %90 = tpu.memref_squeeze %89 : memref<1x!tpu.dma_semaphore, #tpu.memory_space<semaphore_mem>> -> memref<!tpu.dma_semaphore, #tpu.memory_space<semaphore_mem>>
    tpu.wait_dma2 semaphore(%90 : memref<!tpu.dma_semaphore, #tpu.memory_space<semaphore_mem>>) src(%87 : memref<1x32xf32, #tpu.memory_space<any>>) dst(%88 : memref<1x32xf32, #tpu.memory_space<vmem>>)
    %c3_i32_67 = arith.constant 3 : i32
    %c0_i32_68 = arith.constant 0 : i32
    %91 = tpu.memref_slice %arg4[%15, %c0_i32_68] : memref<2000x32xf32, #tpu.memory_space<any>> -> memref<1x32xf32, #tpu.memory_space<any>>
    %c3_i32_69 = arith.constant 3 : i32
    %c0_i32_70 = arith.constant 0 : i32
    %92 = tpu.memref_slice %arg14[%c3_i32_69, %c0_i32_70] : memref<8x32xf32, #tpu.memory_space<vmem>> -> memref<1x32xf32, #tpu.memory_space<vmem>>
    %93 = tpu.memref_slice %arg15[%c3_i32_67] : memref<8x!tpu.dma_semaphore, #tpu.memory_space<semaphore_mem>> -> memref<1x!tpu.dma_semaphore, #tpu.memory_space<semaphore_mem>>
    %94 = tpu.memref_squeeze %93 : memref<1x!tpu.dma_semaphore, #tpu.memory_space<semaphore_mem>> -> memref<!tpu.dma_semaphore, #tpu.memory_space<semaphore_mem>>
    tpu.wait_dma2 semaphore(%94 : memref<!tpu.dma_semaphore, #tpu.memory_space<semaphore_mem>>) src(%91 : memref<1x32xf32, #tpu.memory_space<any>>) dst(%92 : memref<1x32xf32, #tpu.memory_space<vmem>>)
    %c4_i32_71 = arith.constant 4 : i32
    %c0_i32_72 = arith.constant 0 : i32
    %95 = tpu.memref_slice %arg4[%20, %c0_i32_72] : memref<2000x32xf32, #tpu.memory_space<any>> -> memref<1x32xf32, #tpu.memory_space<any>>
    %c4_i32_73 = arith.constant 4 : i32
    %c0_i32_74 = arith.constant 0 : i32
    %96 = tpu.memref_slice %arg14[%c4_i32_73, %c0_i32_74] : memref<8x32xf32, #tpu.memory_space<vmem>> -> memref<1x32xf32, #tpu.memory_space<vmem>>
    %97 = tpu.memref_slice %arg15[%c4_i32_71] : memref<8x!tpu.dma_semaphore, #tpu.memory_space<semaphore_mem>> -> memref<1x!tpu.dma_semaphore, #tpu.memory_space<semaphore_mem>>
    %98 = tpu.memref_squeeze %97 : memref<1x!tpu.dma_semaphore, #tpu.memory_space<semaphore_mem>> -> memref<!tpu.dma_semaphore, #tpu.memory_space<semaphore_mem>>
    tpu.wait_dma2 semaphore(%98 : memref<!tpu.dma_semaphore, #tpu.memory_space<semaphore_mem>>) src(%95 : memref<1x32xf32, #tpu.memory_space<any>>) dst(%96 : memref<1x32xf32, #tpu.memory_space<vmem>>)
    %c5_i32_75 = arith.constant 5 : i32
    %c0_i32_76 = arith.constant 0 : i32
    %99 = tpu.memref_slice %arg4[%25, %c0_i32_76] : memref<2000x32xf32, #tpu.memory_space<any>> -> memref<1x32xf32, #tpu.memory_space<any>>
    %c5_i32_77 = arith.constant 5 : i32
    %c0_i32_78 = arith.constant 0 : i32
    %100 = tpu.memref_slice %arg14[%c5_i32_77, %c0_i32_78] : memref<8x32xf32, #tpu.memory_space<vmem>> -> memref<1x32xf32, #tpu.memory_space<vmem>>
    %101 = tpu.memref_slice %arg15[%c5_i32_75] : memref<8x!tpu.dma_semaphore, #tpu.memory_space<semaphore_mem>> -> memref<1x!tpu.dma_semaphore, #tpu.memory_space<semaphore_mem>>
    %102 = tpu.memref_squeeze %101 : memref<1x!tpu.dma_semaphore, #tpu.memory_space<semaphore_mem>> -> memref<!tpu.dma_semaphore, #tpu.memory_space<semaphore_mem>>
    tpu.wait_dma2 semaphore(%102 : memref<!tpu.dma_semaphore, #tpu.memory_space<semaphore_mem>>) src(%99 : memref<1x32xf32, #tpu.memory_space<any>>) dst(%100 : memref<1x32xf32, #tpu.memory_space<vmem>>)
    %c6_i32_79 = arith.constant 6 : i32
    %c0_i32_80 = arith.constant 0 : i32
    %103 = tpu.memref_slice %arg4[%30, %c0_i32_80] : memref<2000x32xf32, #tpu.memory_space<any>> -> memref<1x32xf32, #tpu.memory_space<any>>
    %c6_i32_81 = arith.constant 6 : i32
    %c0_i32_82 = arith.constant 0 : i32
    %104 = tpu.memref_slice %arg14[%c6_i32_81, %c0_i32_82] : memref<8x32xf32, #tpu.memory_space<vmem>> -> memref<1x32xf32, #tpu.memory_space<vmem>>
    %105 = tpu.memref_slice %arg15[%c6_i32_79] : memref<8x!tpu.dma_semaphore, #tpu.memory_space<semaphore_mem>> -> memref<1x!tpu.dma_semaphore, #tpu.memory_space<semaphore_mem>>
    %106 = tpu.memref_squeeze %105 : memref<1x!tpu.dma_semaphore, #tpu.memory_space<semaphore_mem>> -> memref<!tpu.dma_semaphore, #tpu.memory_space<semaphore_mem>>
    tpu.wait_dma2 semaphore(%106 : memref<!tpu.dma_semaphore, #tpu.memory_space<semaphore_mem>>) src(%103 : memref<1x32xf32, #tpu.memory_space<any>>) dst(%104 : memref<1x32xf32, #tpu.memory_space<vmem>>)
    %c7_i32_83 = arith.constant 7 : i32
    %c0_i32_84 = arith.constant 0 : i32
    %107 = tpu.memref_slice %arg4[%35, %c0_i32_84] : memref<2000x32xf32, #tpu.memory_space<any>> -> memref<1x32xf32, #tpu.memory_space<any>>
    %c7_i32_85 = arith.constant 7 : i32
    %c0_i32_86 = arith.constant 0 : i32
    %108 = tpu.memref_slice %arg14[%c7_i32_85, %c0_i32_86] : memref<8x32xf32, #tpu.memory_space<vmem>> -> memref<1x32xf32, #tpu.memory_space<vmem>>
    %109 = tpu.memref_slice %arg15[%c7_i32_83] : memref<8x!tpu.dma_semaphore, #tpu.memory_space<semaphore_mem>> -> memref<1x!tpu.dma_semaphore, #tpu.memory_space<semaphore_mem>>
    %110 = tpu.memref_squeeze %109 : memref<1x!tpu.dma_semaphore, #tpu.memory_space<semaphore_mem>> -> memref<!tpu.dma_semaphore, #tpu.memory_space<semaphore_mem>>
    tpu.wait_dma2 semaphore(%110 : memref<!tpu.dma_semaphore, #tpu.memory_space<semaphore_mem>>) src(%107 : memref<1x32xf32, #tpu.memory_space<any>>) dst(%108 : memref<1x32xf32, #tpu.memory_space<vmem>>)
    %c0_87 = arith.constant 0 : index
    %c0_88 = arith.constant 0 : index
    %111 = vector.load %arg14[%c0_87, %c0_88] : memref<8x32xf32, #tpu.memory_space<vmem>>, vector<8x32xf32>
    %c0_89 = arith.constant 0 : index
    %c0_90 = arith.constant 0 : index
    %112 = vector.load %arg10[%c0_89, %c0_90] : memref<416x128xbf16, #tpu.memory_space<vmem>>, vector<32x128xbf16>
    %c192 = arith.constant 192 : index
    %c0_91 = arith.constant 0 : index
    %113 = vector.load %arg11[%c192, %c0_91] : memref<4384x32xbf16, #tpu.memory_space<vmem>>, vector<32x32xbf16>
    %c0_92 = arith.constant 0 : index
    %c0_93 = arith.constant 0 : index
    %114 = vector.load %arg5[%c0_92, %c0_93] : memref<64x2048xbf16, #tpu.memory_space<vmem>>, vector<32x2048xbf16>
    %c288 = arith.constant 288 : index
    %c0_94 = arith.constant 0 : index
    %115 = vector.load %arg11[%c288, %c0_94] : memref<4384x32xbf16, #tpu.memory_space<vmem>>, vector<2048x32xbf16>
    %116 = arith.truncf %111 : vector<8x32xf32> to vector<8x32xbf16>
    %cst_95 = arith.constant dense<0.000000e+00> : vector<8x128xf32>
    %117 = tpu.matmul %116, %112, %cst_95 {dimension_numbers = #tpu.dot_dimension_numbers<[1], [0], [0], [1], [0, 0, 1, 1], [], []>} : vector<8x32xbf16>, vector<32x128xbf16>, vector<8x128xf32> -> vector<8x128xf32>
    %c3_96 = arith.constant 3 : index
    %c0_97 = arith.constant 0 : index
    %118 = vector.load %arg12[%c3_96, %c0_97] : memref<21x128xf32, #tpu.memory_space<vmem>>, vector<1x128xf32>
    %119 = vector.broadcast %118 : vector<1x128xf32> to vector<8x128xf32>
    %120 = arith.addf %117, %119 : vector<8x128xf32>
    %cst_98 = arith.constant 0.000000e+00 : f32
    %121 = vector.broadcast %cst_98 : f32 to vector<8x32xf32>
    %122 = vector.extract_strided_slice %120 {offsets = [0, 0], sizes = [8, 8], strides = [1, 1]} : vector<8x128xf32> to vector<8x8xf32>
    %123 = vector.extract_strided_slice %120 {offsets = [0, 32], sizes = [8, 8], strides = [1, 1]} : vector<8x128xf32> to vector<8x8xf32>
    %124 = vector.extract_strided_slice %120 {offsets = [0, 64], sizes = [8, 8], strides = [1, 1]} : vector<8x128xf32> to vector<8x8xf32>
    %125 = arith.truncf %122 : vector<8x8xf32> to vector<8x8xbf16>
    %126 = arith.truncf %123 : vector<8x8xf32> to vector<8x8xbf16>
    %cst_99 = arith.constant dense<0.000000e+00> : vector<8x8xf32>
    %127 = tpu.matmul %125, %126, %cst_99 {dimension_numbers = #tpu.dot_dimension_numbers<[1], [1], [0], [0], [0, 0, 1, 0], [], []>} : vector<8x8xbf16>, vector<8x8xbf16>, vector<8x8xf32> -> vector<8x8xf32>
    %cst_100 = arith.constant 0.353553385 : f32
    %128 = vector.broadcast %cst_100 : f32 to vector<8x8xf32>
    %129 = arith.mulf %127, %128 : vector<8x8xf32>
    %cst_101 = arith.constant dense<0xFF800000> : vector<8xf32>
    %130 = vector.multi_reduction <maximumf>, %129, %cst_101 [1] : vector<8x8xf32> to vector<8xf32>
    %131 = vector.shape_cast %130 : vector<8xf32> to vector<8x1xf32>
    %132 = vector.broadcast %131 : vector<8x1xf32> to vector<8x8xf32>
    %133 = arith.subf %129, %132 : vector<8x8xf32>
    %134 = math.exp %133 : vector<8x8xf32>
    %cst_102 = arith.constant dense<0.000000e+00> : vector<8xf32>
    %135 = vector.multi_reduction <add>, %134, %cst_102 [1] : vector<8x8xf32> to vector<8xf32>
    %136 = vector.shape_cast %135 : vector<8xf32> to vector<8x1xf32>
    %137 = tpu.reciprocal %136 {approx = true} : vector<8x1xf32> -> vector<8x1xf32>
    %138 = vector.broadcast %137 : vector<8x1xf32> to vector<8x8xf32>
    %139 = arith.mulf %134, %138 : vector<8x8xf32>
    %140 = arith.truncf %139 : vector<8x8xf32> to vector<8x8xbf16>
    %141 = arith.truncf %124 : vector<8x8xf32> to vector<8x8xbf16>
    %cst_103 = arith.constant dense<0.000000e+00> : vector<8x8xf32>
    %142 = tpu.matmul %140, %141, %cst_103 {dimension_numbers = #tpu.dot_dimension_numbers<[1], [0], [0], [1], [0, 0, 1, 1], [], []>} : vector<8x8xbf16>, vector<8x8xbf16>, vector<8x8xf32> -> vector<8x8xf32>
    %143 = vector.extract_strided_slice %113 {offsets = [0, 0], sizes = [8, 32], strides = [1, 1]} : vector<32x32xbf16> to vector<8x32xbf16>
    %144 = arith.truncf %142 : vector<8x8xf32> to vector<8x8xbf16>
    %cst_104 = arith.constant dense<0.000000e+00> : vector<8x32xf32>
    %145 = tpu.matmul %144, %143, %cst_104 {dimension_numbers = #tpu.dot_dimension_numbers<[1], [0], [0], [1], [0, 0, 1, 1], [], []>} : vector<8x8xbf16>, vector<8x32xbf16>, vector<8x32xf32> -> vector<8x32xf32>
    %146 = arith.addf %121, %145 : vector<8x32xf32>
    %147 = vector.extract_strided_slice %120 {offsets = [0, 8], sizes = [8, 8], strides = [1, 1]} : vector<8x128xf32> to vector<8x8xf32>
    %148 = vector.extract_strided_slice %120 {offsets = [0, 40], sizes = [8, 8], strides = [1, 1]} : vector<8x128xf32> to vector<8x8xf32>
    %149 = vector.extract_strided_slice %120 {offsets = [0, 72], sizes = [8, 8], strides = [1, 1]} : vector<8x128xf32> to vector<8x8xf32>
    %150 = arith.truncf %147 : vector<8x8xf32> to vector<8x8xbf16>
    %151 = arith.truncf %148 : vector<8x8xf32> to vector<8x8xbf16>
    %cst_105 = arith.constant dense<0.000000e+00> : vector<8x8xf32>
    %152 = tpu.matmul %150, %151, %cst_105 {dimension_numbers = #tpu.dot_dimension_numbers<[1], [1], [0], [0], [0, 0, 1, 0], [], []>} : vector<8x8xbf16>, vector<8x8xbf16>, vector<8x8xf32> -> vector<8x8xf32>
    %cst_106 = arith.constant 0.353553385 : f32
    %153 = vector.broadcast %cst_106 : f32 to vector<8x8xf32>
    %154 = arith.mulf %152, %153 : vector<8x8xf32>
    %cst_107 = arith.constant dense<0xFF800000> : vector<8xf32>
    %155 = vector.multi_reduction <maximumf>, %154, %cst_107 [1] : vector<8x8xf32> to vector<8xf32>
    %156 = vector.shape_cast %155 : vector<8xf32> to vector<8x1xf32>
    %157 = vector.broadcast %156 : vector<8x1xf32> to vector<8x8xf32>
    %158 = arith.subf %154, %157 : vector<8x8xf32>
    %159 = math.exp %158 : vector<8x8xf32>
    %cst_108 = arith.constant dense<0.000000e+00> : vector<8xf32>
    %160 = vector.multi_reduction <add>, %159, %cst_108 [1] : vector<8x8xf32> to vector<8xf32>
    %161 = vector.shape_cast %160 : vector<8xf32> to vector<8x1xf32>
    %162 = tpu.reciprocal %161 {approx = true} : vector<8x1xf32> -> vector<8x1xf32>
    %163 = vector.broadcast %162 : vector<8x1xf32> to vector<8x8xf32>
    %164 = arith.mulf %159, %163 : vector<8x8xf32>
    %165 = arith.truncf %164 : vector<8x8xf32> to vector<8x8xbf16>
    %166 = arith.truncf %149 : vector<8x8xf32> to vector<8x8xbf16>
    %cst_109 = arith.constant dense<0.000000e+00> : vector<8x8xf32>
    %167 = tpu.matmul %165, %166, %cst_109 {dimension_numbers = #tpu.dot_dimension_numbers<[1], [0], [0], [1], [0, 0, 1, 1], [], []>} : vector<8x8xbf16>, vector<8x8xbf16>, vector<8x8xf32> -> vector<8x8xf32>
    %168 = vector.extract_strided_slice %113 {offsets = [8, 0], sizes = [8, 32], strides = [1, 1]} : vector<32x32xbf16> to vector<8x32xbf16>
    %169 = arith.truncf %167 : vector<8x8xf32> to vector<8x8xbf16>
    %cst_110 = arith.constant dense<0.000000e+00> : vector<8x32xf32>
    %170 = tpu.matmul %169, %168, %cst_110 {dimension_numbers = #tpu.dot_dimension_numbers<[1], [0], [0], [1], [0, 0, 1, 1], [], []>} : vector<8x8xbf16>, vector<8x32xbf16>, vector<8x32xf32> -> vector<8x32xf32>
    %171 = arith.addf %146, %170 : vector<8x32xf32>
    %172 = vector.extract_strided_slice %120 {offsets = [0, 16], sizes = [8, 8], strides = [1, 1]} : vector<8x128xf32> to vector<8x8xf32>
    %173 = vector.extract_strided_slice %120 {offsets = [0, 48], sizes = [8, 8], strides = [1, 1]} : vector<8x128xf32> to vector<8x8xf32>
    %174 = vector.extract_strided_slice %120 {offsets = [0, 80], sizes = [8, 8], strides = [1, 1]} : vector<8x128xf32> to vector<8x8xf32>
    %175 = arith.truncf %172 : vector<8x8xf32> to vector<8x8xbf16>
    %176 = arith.truncf %173 : vector<8x8xf32> to vector<8x8xbf16>
    %cst_111 = arith.constant dense<0.000000e+00> : vector<8x8xf32>
    %177 = tpu.matmul %175, %176, %cst_111 {dimension_numbers = #tpu.dot_dimension_numbers<[1], [1], [0], [0], [0, 0, 1, 0], [], []>} : vector<8x8xbf16>, vector<8x8xbf16>, vector<8x8xf32> -> vector<8x8xf32>
    %cst_112 = arith.constant 0.353553385 : f32
    %178 = vector.broadcast %cst_112 : f32 to vector<8x8xf32>
    %179 = arith.mulf %177, %178 : vector<8x8xf32>
    %cst_113 = arith.constant dense<0xFF800000> : vector<8xf32>
    %180 = vector.multi_reduction <maximumf>, %179, %cst_113 [1] : vector<8x8xf32> to vector<8xf32>
    %181 = vector.shape_cast %180 : vector<8xf32> to vector<8x1xf32>
    %182 = vector.broadcast %181 : vector<8x1xf32> to vector<8x8xf32>
    %183 = arith.subf %179, %182 : vector<8x8xf32>
    %184 = math.exp %183 : vector<8x8xf32>
    %cst_114 = arith.constant dense<0.000000e+00> : vector<8xf32>
    %185 = vector.multi_reduction <add>, %184, %cst_114 [1] : vector<8x8xf32> to vector<8xf32>
    %186 = vector.shape_cast %185 : vector<8xf32> to vector<8x1xf32>
    %187 = tpu.reciprocal %186 {approx = true} : vector<8x1xf32> -> vector<8x1xf32>
    %188 = vector.broadcast %187 : vector<8x1xf32> to vector<8x8xf32>
    %189 = arith.mulf %184, %188 : vector<8x8xf32>
    %190 = arith.truncf %189 : vector<8x8xf32> to vector<8x8xbf16>
    %191 = arith.truncf %174 : vector<8x8xf32> to vector<8x8xbf16>
    %cst_115 = arith.constant dense<0.000000e+00> : vector<8x8xf32>
    %192 = tpu.matmul %190, %191, %cst_115 {dimension_numbers = #tpu.dot_dimension_numbers<[1], [0], [0], [1], [0, 0, 1, 1], [], []>} : vector<8x8xbf16>, vector<8x8xbf16>, vector<8x8xf32> -> vector<8x8xf32>
    %193 = vector.extract_strided_slice %113 {offsets = [16, 0], sizes = [8, 32], strides = [1, 1]} : vector<32x32xbf16> to vector<8x32xbf16>
    %194 = arith.truncf %192 : vector<8x8xf32> to vector<8x8xbf16>
    %cst_116 = arith.constant dense<0.000000e+00> : vector<8x32xf32>
    %195 = tpu.matmul %194, %193, %cst_116 {dimension_numbers = #tpu.dot_dimension_numbers<[1], [0], [0], [1], [0, 0, 1, 1], [], []>} : vector<8x8xbf16>, vector<8x32xbf16>, vector<8x32xf32> -> vector<8x32xf32>
    %196 = arith.addf %171, %195 : vector<8x32xf32>
    %197 = vector.extract_strided_slice %120 {offsets = [0, 24], sizes = [8, 8], strides = [1, 1]} : vector<8x128xf32> to vector<8x8xf32>
    %198 = vector.extract_strided_slice %120 {offsets = [0, 56], sizes = [8, 8], strides = [1, 1]} : vector<8x128xf32> to vector<8x8xf32>
    %199 = vector.extract_strided_slice %120 {offsets = [0, 88], sizes = [8, 8], strides = [1, 1]} : vector<8x128xf32> to vector<8x8xf32>
    %200 = arith.truncf %197 : vector<8x8xf32> to vector<8x8xbf16>
    %201 = arith.truncf %198 : vector<8x8xf32> to vector<8x8xbf16>
    %cst_117 = arith.constant dense<0.000000e+00> : vector<8x8xf32>
    %202 = tpu.matmul %200, %201, %cst_117 {dimension_numbers = #tpu.dot_dimension_numbers<[1], [1], [0], [0], [0, 0, 1, 0], [], []>} : vector<8x8xbf16>, vector<8x8xbf16>, vector<8x8xf32> -> vector<8x8xf32>
    %cst_118 = arith.constant 0.353553385 : f32
    %203 = vector.broadcast %cst_118 : f32 to vector<8x8xf32>
    %204 = arith.mulf %202, %203 : vector<8x8xf32>
    %cst_119 = arith.constant dense<0xFF800000> : vector<8xf32>
    %205 = vector.multi_reduction <maximumf>, %204, %cst_119 [1] : vector<8x8xf32> to vector<8xf32>
    %206 = vector.shape_cast %205 : vector<8xf32> to vector<8x1xf32>
    %207 = vector.broadcast %206 : vector<8x1xf32> to vector<8x8xf32>
    %208 = arith.subf %204, %207 : vector<8x8xf32>
    %209 = math.exp %208 : vector<8x8xf32>
    %cst_120 = arith.constant dense<0.000000e+00> : vector<8xf32>
    %210 = vector.multi_reduction <add>, %209, %cst_120 [1] : vector<8x8xf32> to vector<8xf32>
    %211 = vector.shape_cast %210 : vector<8xf32> to vector<8x1xf32>
    %212 = tpu.reciprocal %211 {approx = true} : vector<8x1xf32> -> vector<8x1xf32>
    %213 = vector.broadcast %212 : vector<8x1xf32> to vector<8x8xf32>
    %214 = arith.mulf %209, %213 : vector<8x8xf32>
    %215 = arith.truncf %214 : vector<8x8xf32> to vector<8x8xbf16>
    %216 = arith.truncf %199 : vector<8x8xf32> to vector<8x8xbf16>
    %cst_121 = arith.constant dense<0.000000e+00> : vector<8x8xf32>
    %217 = tpu.matmul %215, %216, %cst_121 {dimension_numbers = #tpu.dot_dimension_numbers<[1], [0], [0], [1], [0, 0, 1, 1], [], []>} : vector<8x8xbf16>, vector<8x8xbf16>, vector<8x8xf32> -> vector<8x8xf32>
    %218 = vector.extract_strided_slice %113 {offsets = [24, 0], sizes = [8, 32], strides = [1, 1]} : vector<32x32xbf16> to vector<8x32xbf16>
    %219 = arith.truncf %217 : vector<8x8xf32> to vector<8x8xbf16>
    %cst_122 = arith.constant dense<0.000000e+00> : vector<8x32xf32>
    %220 = tpu.matmul %219, %218, %cst_122 {dimension_numbers = #tpu.dot_dimension_numbers<[1], [0], [0], [1], [0, 0, 1, 1], [], []>} : vector<8x8xbf16>, vector<8x32xbf16>, vector<8x32xf32> -> vector<8x32xf32>
    %221 = arith.addf %196, %220 : vector<8x32xf32>
    %c4_123 = arith.constant 4 : index
    %c0_124 = arith.constant 0 : index
    %222 = vector.load %arg12[%c4_123, %c0_124] : memref<21x128xf32, #tpu.memory_space<vmem>>, vector<1x32xf32>
    %223 = vector.broadcast %222 : vector<1x32xf32> to vector<8x32xf32>
    %224 = arith.addf %221, %223 : vector<8x32xf32>
    %225 = arith.addf %111, %224 : vector<8x32xf32>
    %c5_125 = arith.constant 5 : index
    %c0_126 = arith.constant 0 : index
    %226 = vector.load %arg12[%c5_125, %c0_126] : memref<21x128xf32, #tpu.memory_space<vmem>>, vector<1x32xf32>
    %c6_127 = arith.constant 6 : index
    %c0_128 = arith.constant 0 : index
    %227 = vector.load %arg12[%c6_127, %c0_128] : memref<21x128xf32, #tpu.memory_space<vmem>>, vector<1x32xf32>
    %cst_129 = arith.constant dense<0.000000e+00> : vector<8xf32>
    %228 = vector.multi_reduction <add>, %225, %cst_129 [1] : vector<8x32xf32> to vector<8xf32>
    %229 = vector.shape_cast %228 : vector<8xf32> to vector<8x1xf32>
    %cst_130 = arith.constant 3.200000e+01 : f32
    %230 = vector.broadcast %cst_130 : f32 to vector<8x1xf32>
    %231 = arith.divf %229, %230 : vector<8x1xf32>
    %232 = vector.broadcast %231 : vector<8x1xf32> to vector<8x32xf32>
    %233 = arith.subf %225, %232 : vector<8x32xf32>
    %234 = arith.mulf %233, %233 : vector<8x32xf32>
    %cst_131 = arith.constant dense<0.000000e+00> : vector<8xf32>
    %235 = vector.multi_reduction <add>, %234, %cst_131 [1] : vector<8x32xf32> to vector<8xf32>
    %236 = vector.shape_cast %235 : vector<8xf32> to vector<8x1xf32>
    %cst_132 = arith.constant 3.200000e+01 : f32
    %237 = vector.broadcast %cst_132 : f32 to vector<8x1xf32>
    %238 = arith.divf %236, %237 : vector<8x1xf32>
    %239 = vector.broadcast %231 : vector<8x1xf32> to vector<8x32xf32>
    %240 = arith.subf %225, %239 : vector<8x32xf32>
    %cst_133 = arith.constant 9.99999974E-6 : f32
    %241 = vector.broadcast %cst_133 : f32 to vector<8x1xf32>
    %242 = arith.addf %238, %241 : vector<8x1xf32>
    %243 = math.rsqrt %242 : vector<8x1xf32>
    %244 = vector.broadcast %243 : vector<8x1xf32> to vector<8x32xf32>
    %245 = arith.mulf %240, %244 : vector<8x32xf32>
    %246 = vector.broadcast %226 : vector<1x32xf32> to vector<8x32xf32>
    %247 = arith.mulf %245, %246 : vector<8x32xf32>
    %248 = vector.broadcast %227 : vector<1x32xf32> to vector<8x32xf32>
    %249 = arith.addf %247, %248 : vector<8x32xf32>
    %250 = arith.truncf %249 : vector<8x32xf32> to vector<8x32xbf16>
    %cst_134 = arith.constant dense<0.000000e+00> : vector<8x2048xf32>
    %251 = tpu.matmul %250, %114, %cst_134 {dimension_numbers = #tpu.dot_dimension_numbers<[1], [0], [0], [1], [0, 0, 1, 1], [], []>} : vector<8x32xbf16>, vector<32x2048xbf16>, vector<8x2048xf32> -> vector<8x2048xf32>
    %c0_135 = arith.constant 0 : index
    %c0_136 = arith.constant 0 : index
    %252 = vector.load %arg6[%c0_135, %c0_136] : memref<2x2048xf32, #tpu.memory_space<vmem>>, vector<1x2048xf32>
    %253 = vector.broadcast %252 : vector<1x2048xf32> to vector<8x2048xf32>
    %254 = arith.addf %251, %253 : vector<8x2048xf32>
    %cst_137 = arith.constant 0.000000e+00 : f32
    %255 = vector.broadcast %cst_137 : f32 to vector<8x2048xf32>
    %256 = arith.maximumf %254, %255 : vector<8x2048xf32>
    %257 = arith.truncf %256 : vector<8x2048xf32> to vector<8x2048xbf16>
    %cst_138 = arith.constant dense<0.000000e+00> : vector<8x32xf32>
    %258 = tpu.matmul %257, %115, %cst_138 {dimension_numbers = #tpu.dot_dimension_numbers<[1], [0], [0], [1], [0, 0, 1, 1], [], []>} : vector<8x2048xbf16>, vector<2048x32xbf16>, vector<8x32xf32> -> vector<8x32xf32>
    %c7_139 = arith.constant 7 : index
    %c0_140 = arith.constant 0 : index
    %259 = vector.load %arg12[%c7_139, %c0_140] : memref<21x128xf32, #tpu.memory_space<vmem>>, vector<1x32xf32>
    %260 = vector.broadcast %259 : vector<1x32xf32> to vector<8x32xf32>
    %261 = arith.addf %258, %260 : vector<8x32xf32>
    %262 = arith.addf %249, %261 : vector<8x32xf32>
    %c8 = arith.constant 8 : index
    %c0_141 = arith.constant 0 : index
    %263 = vector.load %arg12[%c8, %c0_141] : memref<21x128xf32, #tpu.memory_space<vmem>>, vector<1x32xf32>
    %c9 = arith.constant 9 : index
    %c0_142 = arith.constant 0 : index
    %264 = vector.load %arg12[%c9, %c0_142] : memref<21x128xf32, #tpu.memory_space<vmem>>, vector<1x32xf32>
    %cst_143 = arith.constant dense<0.000000e+00> : vector<8xf32>
    %265 = vector.multi_reduction <add>, %262, %cst_143 [1] : vector<8x32xf32> to vector<8xf32>
    %266 = vector.shape_cast %265 : vector<8xf32> to vector<8x1xf32>
    %cst_144 = arith.constant 3.200000e+01 : f32
    %267 = vector.broadcast %cst_144 : f32 to vector<8x1xf32>
    %268 = arith.divf %266, %267 : vector<8x1xf32>
    %269 = vector.broadcast %268 : vector<8x1xf32> to vector<8x32xf32>
    %270 = arith.subf %262, %269 : vector<8x32xf32>
    %271 = arith.mulf %270, %270 : vector<8x32xf32>
    %cst_145 = arith.constant dense<0.000000e+00> : vector<8xf32>
    %272 = vector.multi_reduction <add>, %271, %cst_145 [1] : vector<8x32xf32> to vector<8xf32>
    %273 = vector.shape_cast %272 : vector<8xf32> to vector<8x1xf32>
    %cst_146 = arith.constant 3.200000e+01 : f32
    %274 = vector.broadcast %cst_146 : f32 to vector<8x1xf32>
    %275 = arith.divf %273, %274 : vector<8x1xf32>
    %276 = vector.broadcast %268 : vector<8x1xf32> to vector<8x32xf32>
    %277 = arith.subf %262, %276 : vector<8x32xf32>
    %cst_147 = arith.constant 9.99999974E-6 : f32
    %278 = vector.broadcast %cst_147 : f32 to vector<8x1xf32>
    %279 = arith.addf %275, %278 : vector<8x1xf32>
    %280 = math.rsqrt %279 : vector<8x1xf32>
    %281 = vector.broadcast %280 : vector<8x1xf32> to vector<8x32xf32>
    %282 = arith.mulf %277, %281 : vector<8x32xf32>
    %283 = vector.broadcast %263 : vector<1x32xf32> to vector<8x32xf32>
    %284 = arith.mulf %282, %283 : vector<8x32xf32>
    %285 = vector.broadcast %264 : vector<1x32xf32> to vector<8x32xf32>
    %286 = arith.addf %284, %285 : vector<8x32xf32>
    %c32 = arith.constant 32 : index
    %c0_148 = arith.constant 0 : index
    %287 = vector.load %arg10[%c32, %c0_148] : memref<416x128xbf16, #tpu.memory_space<vmem>>, vector<32x128xbf16>
    %c224 = arith.constant 224 : index
    %c0_149 = arith.constant 0 : index
    %288 = vector.load %arg11[%c224, %c0_149] : memref<4384x32xbf16, #tpu.memory_space<vmem>>, vector<32x32xbf16>
    %c32_150 = arith.constant 32 : index
    %c0_151 = arith.constant 0 : index
    %289 = vector.load %arg5[%c32_150, %c0_151] : memref<64x2048xbf16, #tpu.memory_space<vmem>>, vector<32x2048xbf16>
    %c2336 = arith.constant 2336 : index
    %c0_152 = arith.constant 0 : index
    %290 = vector.load %arg11[%c2336, %c0_152] : memref<4384x32xbf16, #tpu.memory_space<vmem>>, vector<2048x32xbf16>
    %291 = arith.truncf %286 : vector<8x32xf32> to vector<8x32xbf16>
    %cst_153 = arith.constant dense<0.000000e+00> : vector<8x128xf32>
    %292 = tpu.matmul %291, %287, %cst_153 {dimension_numbers = #tpu.dot_dimension_numbers<[1], [0], [0], [1], [0, 0, 1, 1], [], []>} : vector<8x32xbf16>, vector<32x128xbf16>, vector<8x128xf32> -> vector<8x128xf32>
    %c10 = arith.constant 10 : index
    %c0_154 = arith.constant 0 : index
    %293 = vector.load %arg12[%c10, %c0_154] : memref<21x128xf32, #tpu.memory_space<vmem>>, vector<1x128xf32>
    %294 = vector.broadcast %293 : vector<1x128xf32> to vector<8x128xf32>
    %295 = arith.addf %292, %294 : vector<8x128xf32>
    %cst_155 = arith.constant 0.000000e+00 : f32
    %296 = vector.broadcast %cst_155 : f32 to vector<8x32xf32>
    %297 = vector.extract_strided_slice %295 {offsets = [0, 0], sizes = [8, 8], strides = [1, 1]} : vector<8x128xf32> to vector<8x8xf32>
    %298 = vector.extract_strided_slice %295 {offsets = [0, 32], sizes = [8, 8], strides = [1, 1]} : vector<8x128xf32> to vector<8x8xf32>
    %299 = vector.extract_strided_slice %295 {offsets = [0, 64], sizes = [8, 8], strides = [1, 1]} : vector<8x128xf32> to vector<8x8xf32>
    %300 = arith.truncf %297 : vector<8x8xf32> to vector<8x8xbf16>
    %301 = arith.truncf %298 : vector<8x8xf32> to vector<8x8xbf16>
    %cst_156 = arith.constant dense<0.000000e+00> : vector<8x8xf32>
    %302 = tpu.matmul %300, %301, %cst_156 {dimension_numbers = #tpu.dot_dimension_numbers<[1], [1], [0], [0], [0, 0, 1, 0], [], []>} : vector<8x8xbf16>, vector<8x8xbf16>, vector<8x8xf32> -> vector<8x8xf32>
    %cst_157 = arith.constant 0.353553385 : f32
    %303 = vector.broadcast %cst_157 : f32 to vector<8x8xf32>
    %304 = arith.mulf %302, %303 : vector<8x8xf32>
    %cst_158 = arith.constant dense<0xFF800000> : vector<8xf32>
    %305 = vector.multi_reduction <maximumf>, %304, %cst_158 [1] : vector<8x8xf32> to vector<8xf32>
    %306 = vector.shape_cast %305 : vector<8xf32> to vector<8x1xf32>
    %307 = vector.broadcast %306 : vector<8x1xf32> to vector<8x8xf32>
    %308 = arith.subf %304, %307 : vector<8x8xf32>
    %309 = math.exp %308 : vector<8x8xf32>
    %cst_159 = arith.constant dense<0.000000e+00> : vector<8xf32>
    %310 = vector.multi_reduction <add>, %309, %cst_159 [1] : vector<8x8xf32> to vector<8xf32>
    %311 = vector.shape_cast %310 : vector<8xf32> to vector<8x1xf32>
    %312 = tpu.reciprocal %311 {approx = true} : vector<8x1xf32> -> vector<8x1xf32>
    %313 = vector.broadcast %312 : vector<8x1xf32> to vector<8x8xf32>
    %314 = arith.mulf %309, %313 : vector<8x8xf32>
    %315 = arith.truncf %314 : vector<8x8xf32> to vector<8x8xbf16>
    %316 = arith.truncf %299 : vector<8x8xf32> to vector<8x8xbf16>
    %cst_160 = arith.constant dense<0.000000e+00> : vector<8x8xf32>
    %317 = tpu.matmul %315, %316, %cst_160 {dimension_numbers = #tpu.dot_dimension_numbers<[1], [0], [0], [1], [0, 0, 1, 1], [], []>} : vector<8x8xbf16>, vector<8x8xbf16>, vector<8x8xf32> -> vector<8x8xf32>
    %318 = vector.extract_strided_slice %288 {offsets = [0, 0], sizes = [8, 32], strides = [1, 1]} : vector<32x32xbf16> to vector<8x32xbf16>
    %319 = arith.truncf %317 : vector<8x8xf32> to vector<8x8xbf16>
    %cst_161 = arith.constant dense<0.000000e+00> : vector<8x32xf32>
    %320 = tpu.matmul %319, %318, %cst_161 {dimension_numbers = #tpu.dot_dimension_numbers<[1], [0], [0], [1], [0, 0, 1, 1], [], []>} : vector<8x8xbf16>, vector<8x32xbf16>, vector<8x32xf32> -> vector<8x32xf32>
    %321 = arith.addf %296, %320 : vector<8x32xf32>
    %322 = vector.extract_strided_slice %295 {offsets = [0, 8], sizes = [8, 8], strides = [1, 1]} : vector<8x128xf32> to vector<8x8xf32>
    %323 = vector.extract_strided_slice %295 {offsets = [0, 40], sizes = [8, 8], strides = [1, 1]} : vector<8x128xf32> to vector<8x8xf32>
    %324 = vector.extract_strided_slice %295 {offsets = [0, 72], sizes = [8, 8], strides = [1, 1]} : vector<8x128xf32> to vector<8x8xf32>
    %325 = arith.truncf %322 : vector<8x8xf32> to vector<8x8xbf16>
    %326 = arith.truncf %323 : vector<8x8xf32> to vector<8x8xbf16>
    %cst_162 = arith.constant dense<0.000000e+00> : vector<8x8xf32>
    %327 = tpu.matmul %325, %326, %cst_162 {dimension_numbers = #tpu.dot_dimension_numbers<[1], [1], [0], [0], [0, 0, 1, 0], [], []>} : vector<8x8xbf16>, vector<8x8xbf16>, vector<8x8xf32> -> vector<8x8xf32>
    %cst_163 = arith.constant 0.353553385 : f32
    %328 = vector.broadcast %cst_163 : f32 to vector<8x8xf32>
    %329 = arith.mulf %327, %328 : vector<8x8xf32>
    %cst_164 = arith.constant dense<0xFF800000> : vector<8xf32>
    %330 = vector.multi_reduction <maximumf>, %329, %cst_164 [1] : vector<8x8xf32> to vector<8xf32>
    %331 = vector.shape_cast %330 : vector<8xf32> to vector<8x1xf32>
    %332 = vector.broadcast %331 : vector<8x1xf32> to vector<8x8xf32>
    %333 = arith.subf %329, %332 : vector<8x8xf32>
    %334 = math.exp %333 : vector<8x8xf32>
    %cst_165 = arith.constant dense<0.000000e+00> : vector<8xf32>
    %335 = vector.multi_reduction <add>, %334, %cst_165 [1] : vector<8x8xf32> to vector<8xf32>
    %336 = vector.shape_cast %335 : vector<8xf32> to vector<8x1xf32>
    %337 = tpu.reciprocal %336 {approx = true} : vector<8x1xf32> -> vector<8x1xf32>
    %338 = vector.broadcast %337 : vector<8x1xf32> to vector<8x8xf32>
    %339 = arith.mulf %334, %338 : vector<8x8xf32>
    %340 = arith.truncf %339 : vector<8x8xf32> to vector<8x8xbf16>
    %341 = arith.truncf %324 : vector<8x8xf32> to vector<8x8xbf16>
    %cst_166 = arith.constant dense<0.000000e+00> : vector<8x8xf32>
    %342 = tpu.matmul %340, %341, %cst_166 {dimension_numbers = #tpu.dot_dimension_numbers<[1], [0], [0], [1], [0, 0, 1, 1], [], []>} : vector<8x8xbf16>, vector<8x8xbf16>, vector<8x8xf32> -> vector<8x8xf32>
    %343 = vector.extract_strided_slice %288 {offsets = [8, 0], sizes = [8, 32], strides = [1, 1]} : vector<32x32xbf16> to vector<8x32xbf16>
    %344 = arith.truncf %342 : vector<8x8xf32> to vector<8x8xbf16>
    %cst_167 = arith.constant dense<0.000000e+00> : vector<8x32xf32>
    %345 = tpu.matmul %344, %343, %cst_167 {dimension_numbers = #tpu.dot_dimension_numbers<[1], [0], [0], [1], [0, 0, 1, 1], [], []>} : vector<8x8xbf16>, vector<8x32xbf16>, vector<8x32xf32> -> vector<8x32xf32>
    %346 = arith.addf %321, %345 : vector<8x32xf32>
    %347 = vector.extract_strided_slice %295 {offsets = [0, 16], sizes = [8, 8], strides = [1, 1]} : vector<8x128xf32> to vector<8x8xf32>
    %348 = vector.extract_strided_slice %295 {offsets = [0, 48], sizes = [8, 8], strides = [1, 1]} : vector<8x128xf32> to vector<8x8xf32>
    %349 = vector.extract_strided_slice %295 {offsets = [0, 80], sizes = [8, 8], strides = [1, 1]} : vector<8x128xf32> to vector<8x8xf32>
    %350 = arith.truncf %347 : vector<8x8xf32> to vector<8x8xbf16>
    %351 = arith.truncf %348 : vector<8x8xf32> to vector<8x8xbf16>
    %cst_168 = arith.constant dense<0.000000e+00> : vector<8x8xf32>
    %352 = tpu.matmul %350, %351, %cst_168 {dimension_numbers = #tpu.dot_dimension_numbers<[1], [1], [0], [0], [0, 0, 1, 0], [], []>} : vector<8x8xbf16>, vector<8x8xbf16>, vector<8x8xf32> -> vector<8x8xf32>
    %cst_169 = arith.constant 0.353553385 : f32
    %353 = vector.broadcast %cst_169 : f32 to vector<8x8xf32>
    %354 = arith.mulf %352, %353 : vector<8x8xf32>
    %cst_170 = arith.constant dense<0xFF800000> : vector<8xf32>
    %355 = vector.multi_reduction <maximumf>, %354, %cst_170 [1] : vector<8x8xf32> to vector<8xf32>
    %356 = vector.shape_cast %355 : vector<8xf32> to vector<8x1xf32>
    %357 = vector.broadcast %356 : vector<8x1xf32> to vector<8x8xf32>
    %358 = arith.subf %354, %357 : vector<8x8xf32>
    %359 = math.exp %358 : vector<8x8xf32>
    %cst_171 = arith.constant dense<0.000000e+00> : vector<8xf32>
    %360 = vector.multi_reduction <add>, %359, %cst_171 [1] : vector<8x8xf32> to vector<8xf32>
    %361 = vector.shape_cast %360 : vector<8xf32> to vector<8x1xf32>
    %362 = tpu.reciprocal %361 {approx = true} : vector<8x1xf32> -> vector<8x1xf32>
    %363 = vector.broadcast %362 : vector<8x1xf32> to vector<8x8xf32>
    %364 = arith.mulf %359, %363 : vector<8x8xf32>
    %365 = arith.truncf %364 : vector<8x8xf32> to vector<8x8xbf16>
    %366 = arith.truncf %349 : vector<8x8xf32> to vector<8x8xbf16>
    %cst_172 = arith.constant dense<0.000000e+00> : vector<8x8xf32>
    %367 = tpu.matmul %365, %366, %cst_172 {dimension_numbers = #tpu.dot_dimension_numbers<[1], [0], [0], [1], [0, 0, 1, 1], [], []>} : vector<8x8xbf16>, vector<8x8xbf16>, vector<8x8xf32> -> vector<8x8xf32>
    %368 = vector.extract_strided_slice %288 {offsets = [16, 0], sizes = [8, 32], strides = [1, 1]} : vector<32x32xbf16> to vector<8x32xbf16>
    %369 = arith.truncf %367 : vector<8x8xf32> to vector<8x8xbf16>
    %cst_173 = arith.constant dense<0.000000e+00> : vector<8x32xf32>
    %370 = tpu.matmul %369, %368, %cst_173 {dimension_numbers = #tpu.dot_dimension_numbers<[1], [0], [0], [1], [0, 0, 1, 1], [], []>} : vector<8x8xbf16>, vector<8x32xbf16>, vector<8x32xf32> -> vector<8x32xf32>
    %371 = arith.addf %346, %370 : vector<8x32xf32>
    %372 = vector.extract_strided_slice %295 {offsets = [0, 24], sizes = [8, 8], strides = [1, 1]} : vector<8x128xf32> to vector<8x8xf32>
    %373 = vector.extract_strided_slice %295 {offsets = [0, 56], sizes = [8, 8], strides = [1, 1]} : vector<8x128xf32> to vector<8x8xf32>
    %374 = vector.extract_strided_slice %295 {offsets = [0, 88], sizes = [8, 8], strides = [1, 1]} : vector<8x128xf32> to vector<8x8xf32>
    %375 = arith.truncf %372 : vector<8x8xf32> to vector<8x8xbf16>
    %376 = arith.truncf %373 : vector<8x8xf32> to vector<8x8xbf16>
    %cst_174 = arith.constant dense<0.000000e+00> : vector<8x8xf32>
    %377 = tpu.matmul %375, %376, %cst_174 {dimension_numbers = #tpu.dot_dimension_numbers<[1], [1], [0], [0], [0, 0, 1, 0], [], []>} : vector<8x8xbf16>, vector<8x8xbf16>, vector<8x8xf32> -> vector<8x8xf32>
    %cst_175 = arith.constant 0.353553385 : f32
    %378 = vector.broadcast %cst_175 : f32 to vector<8x8xf32>
    %379 = arith.mulf %377, %378 : vector<8x8xf32>
    %cst_176 = arith.constant dense<0xFF800000> : vector<8xf32>
    %380 = vector.multi_reduction <maximumf>, %379, %cst_176 [1] : vector<8x8xf32> to vector<8xf32>
    %381 = vector.shape_cast %380 : vector<8xf32> to vector<8x1xf32>
    %382 = vector.broadcast %381 : vector<8x1xf32> to vector<8x8xf32>
    %383 = arith.subf %379, %382 : vector<8x8xf32>
    %384 = math.exp %383 : vector<8x8xf32>
    %cst_177 = arith.constant dense<0.000000e+00> : vector<8xf32>
    %385 = vector.multi_reduction <add>, %384, %cst_177 [1] : vector<8x8xf32> to vector<8xf32>
    %386 = vector.shape_cast %385 : vector<8xf32> to vector<8x1xf32>
    %387 = tpu.reciprocal %386 {approx = true} : vector<8x1xf32> -> vector<8x1xf32>
    %388 = vector.broadcast %387 : vector<8x1xf32> to vector<8x8xf32>
    %389 = arith.mulf %384, %388 : vector<8x8xf32>
    %390 = arith.truncf %389 : vector<8x8xf32> to vector<8x8xbf16>
    %391 = arith.truncf %374 : vector<8x8xf32> to vector<8x8xbf16>
    %cst_178 = arith.constant dense<0.000000e+00> : vector<8x8xf32>
    %392 = tpu.matmul %390, %391, %cst_178 {dimension_numbers = #tpu.dot_dimension_numbers<[1], [0], [0], [1], [0, 0, 1, 1], [], []>} : vector<8x8xbf16>, vector<8x8xbf16>, vector<8x8xf32> -> vector<8x8xf32>
    %393 = vector.extract_strided_slice %288 {offsets = [24, 0], sizes = [8, 32], strides = [1, 1]} : vector<32x32xbf16> to vector<8x32xbf16>
    %394 = arith.truncf %392 : vector<8x8xf32> to vector<8x8xbf16>
    %cst_179 = arith.constant dense<0.000000e+00> : vector<8x32xf32>
    %395 = tpu.matmul %394, %393, %cst_179 {dimension_numbers = #tpu.dot_dimension_numbers<[1], [0], [0], [1], [0, 0, 1, 1], [], []>} : vector<8x8xbf16>, vector<8x32xbf16>, vector<8x32xf32> -> vector<8x32xf32>
    %396 = arith.addf %371, %395 : vector<8x32xf32>
    %c11 = arith.constant 11 : index
    %c0_180 = arith.constant 0 : index
    %397 = vector.load %arg12[%c11, %c0_180] : memref<21x128xf32, #tpu.memory_space<vmem>>, vector<1x32xf32>
    %398 = vector.broadcast %397 : vector<1x32xf32> to vector<8x32xf32>
    %399 = arith.addf %396, %398 : vector<8x32xf32>
    %400 = arith.addf %286, %399 : vector<8x32xf32>
    %c12 = arith.constant 12 : index
    %c0_181 = arith.constant 0 : index
    %401 = vector.load %arg12[%c12, %c0_181] : memref<21x128xf32, #tpu.memory_space<vmem>>, vector<1x32xf32>
    %c13 = arith.constant 13 : index
    %c0_182 = arith.constant 0 : index
    %402 = vector.load %arg12[%c13, %c0_182] : memref<21x128xf32, #tpu.memory_space<vmem>>, vector<1x32xf32>
    %cst_183 = arith.constant dense<0.000000e+00> : vector<8xf32>
    %403 = vector.multi_reduction <add>, %400, %cst_183 [1] : vector<8x32xf32> to vector<8xf32>
    %404 = vector.shape_cast %403 : vector<8xf32> to vector<8x1xf32>
    %cst_184 = arith.constant 3.200000e+01 : f32
    %405 = vector.broadcast %cst_184 : f32 to vector<8x1xf32>
    %406 = arith.divf %404, %405 : vector<8x1xf32>
    %407 = vector.broadcast %406 : vector<8x1xf32> to vector<8x32xf32>
    %408 = arith.subf %400, %407 : vector<8x32xf32>
    %409 = arith.mulf %408, %408 : vector<8x32xf32>
    %cst_185 = arith.constant dense<0.000000e+00> : vector<8xf32>
    %410 = vector.multi_reduction <add>, %409, %cst_185 [1] : vector<8x32xf32> to vector<8xf32>
    %411 = vector.shape_cast %410 : vector<8xf32> to vector<8x1xf32>
    %cst_186 = arith.constant 3.200000e+01 : f32
    %412 = vector.broadcast %cst_186 : f32 to vector<8x1xf32>
    %413 = arith.divf %411, %412 : vector<8x1xf32>
    %414 = vector.broadcast %406 : vector<8x1xf32> to vector<8x32xf32>
    %415 = arith.subf %400, %414 : vector<8x32xf32>
    %cst_187 = arith.constant 9.99999974E-6 : f32
    %416 = vector.broadcast %cst_187 : f32 to vector<8x1xf32>
    %417 = arith.addf %413, %416 : vector<8x1xf32>
    %418 = math.rsqrt %417 : vector<8x1xf32>
    %419 = vector.broadcast %418 : vector<8x1xf32> to vector<8x32xf32>
    %420 = arith.mulf %415, %419 : vector<8x32xf32>
    %421 = vector.broadcast %401 : vector<1x32xf32> to vector<8x32xf32>
    %422 = arith.mulf %420, %421 : vector<8x32xf32>
    %423 = vector.broadcast %402 : vector<1x32xf32> to vector<8x32xf32>
    %424 = arith.addf %422, %423 : vector<8x32xf32>
    %425 = arith.truncf %424 : vector<8x32xf32> to vector<8x32xbf16>
    %cst_188 = arith.constant dense<0.000000e+00> : vector<8x2048xf32>
    %426 = tpu.matmul %425, %289, %cst_188 {dimension_numbers = #tpu.dot_dimension_numbers<[1], [0], [0], [1], [0, 0, 1, 1], [], []>} : vector<8x32xbf16>, vector<32x2048xbf16>, vector<8x2048xf32> -> vector<8x2048xf32>
    %c1_189 = arith.constant 1 : index
    %c0_190 = arith.constant 0 : index
    %427 = vector.load %arg6[%c1_189, %c0_190] : memref<2x2048xf32, #tpu.memory_space<vmem>>, vector<1x2048xf32>
    %428 = vector.broadcast %427 : vector<1x2048xf32> to vector<8x2048xf32>
    %429 = arith.addf %426, %428 : vector<8x2048xf32>
    %cst_191 = arith.constant 0.000000e+00 : f32
    %430 = vector.broadcast %cst_191 : f32 to vector<8x2048xf32>
    %431 = arith.maximumf %429, %430 : vector<8x2048xf32>
    %432 = arith.truncf %431 : vector<8x2048xf32> to vector<8x2048xbf16>
    %cst_192 = arith.constant dense<0.000000e+00> : vector<8x32xf32>
    %433 = tpu.matmul %432, %290, %cst_192 {dimension_numbers = #tpu.dot_dimension_numbers<[1], [0], [0], [1], [0, 0, 1, 1], [], []>} : vector<8x2048xbf16>, vector<2048x32xbf16>, vector<8x32xf32> -> vector<8x32xf32>
    %c14 = arith.constant 14 : index
    %c0_193 = arith.constant 0 : index
    %434 = vector.load %arg12[%c14, %c0_193] : memref<21x128xf32, #tpu.memory_space<vmem>>, vector<1x32xf32>
    %435 = vector.broadcast %434 : vector<1x32xf32> to vector<8x32xf32>
    %436 = arith.addf %433, %435 : vector<8x32xf32>
    %437 = arith.addf %424, %436 : vector<8x32xf32>
    %c15 = arith.constant 15 : index
    %c0_194 = arith.constant 0 : index
    %438 = vector.load %arg12[%c15, %c0_194] : memref<21x128xf32, #tpu.memory_space<vmem>>, vector<1x32xf32>
    %c16_195 = arith.constant 16 : index
    %c0_196 = arith.constant 0 : index
    %439 = vector.load %arg12[%c16_195, %c0_196] : memref<21x128xf32, #tpu.memory_space<vmem>>, vector<1x32xf32>
    %cst_197 = arith.constant dense<0.000000e+00> : vector<8xf32>
    %440 = vector.multi_reduction <add>, %437, %cst_197 [1] : vector<8x32xf32> to vector<8xf32>
    %441 = vector.shape_cast %440 : vector<8xf32> to vector<8x1xf32>
    %cst_198 = arith.constant 3.200000e+01 : f32
    %442 = vector.broadcast %cst_198 : f32 to vector<8x1xf32>
    %443 = arith.divf %441, %442 : vector<8x1xf32>
    %444 = vector.broadcast %443 : vector<8x1xf32> to vector<8x32xf32>
    %445 = arith.subf %437, %444 : vector<8x32xf32>
    %446 = arith.mulf %445, %445 : vector<8x32xf32>
    %cst_199 = arith.constant dense<0.000000e+00> : vector<8xf32>
    %447 = vector.multi_reduction <add>, %446, %cst_199 [1] : vector<8x32xf32> to vector<8xf32>
    %448 = vector.shape_cast %447 : vector<8xf32> to vector<8x1xf32>
    %cst_200 = arith.constant 3.200000e+01 : f32
    %449 = vector.broadcast %cst_200 : f32 to vector<8x1xf32>
    %450 = arith.divf %448, %449 : vector<8x1xf32>
    %451 = vector.broadcast %443 : vector<8x1xf32> to vector<8x32xf32>
    %452 = arith.subf %437, %451 : vector<8x32xf32>
    %cst_201 = arith.constant 9.99999974E-6 : f32
    %453 = vector.broadcast %cst_201 : f32 to vector<8x1xf32>
    %454 = arith.addf %450, %453 : vector<8x1xf32>
    %455 = math.rsqrt %454 : vector<8x1xf32>
    %456 = vector.broadcast %455 : vector<8x1xf32> to vector<8x32xf32>
    %457 = arith.mulf %452, %456 : vector<8x32xf32>
    %458 = vector.broadcast %438 : vector<1x32xf32> to vector<8x32xf32>
    %459 = arith.mulf %457, %458 : vector<8x32xf32>
    %460 = vector.broadcast %439 : vector<1x32xf32> to vector<8x32xf32>
    %461 = arith.addf %459, %460 : vector<8x32xf32>
    %cst_202 = arith.constant dense<0.000000e+00> : vector<32xf32>
    %462 = vector.multi_reduction <add>, %461, %cst_202 [0] : vector<8x32xf32> to vector<32xf32>
    %463 = vector.shape_cast %462 : vector<32xf32> to vector<1x32xf32>
    %cst_203 = arith.constant 8.000000e+00 : f32
    %464 = vector.broadcast %cst_203 : f32 to vector<1x32xf32>
    %465 = arith.divf %463, %464 : vector<1x32xf32>
    %c256 = arith.constant 256 : index
    %c0_204 = arith.constant 0 : index
    %466 = vector.load %arg11[%c256, %c0_204] : memref<4384x32xbf16, #tpu.memory_space<vmem>>, vector<32x32xbf16>
    %467 = arith.truncf %465 : vector<1x32xf32> to vector<1x32xbf16>
    %cst_205 = arith.constant dense<0.000000e+00> : vector<1x32xf32>
    %468 = tpu.matmul %467, %466, %cst_205 {dimension_numbers = #tpu.dot_dimension_numbers<[1], [0], [0], [1], [0, 0, 1, 1], [], []>} : vector<1x32xbf16>, vector<32x32xbf16>, vector<1x32xf32> -> vector<1x32xf32>
    %c17 = arith.constant 17 : index
    %c0_206 = arith.constant 0 : index
    %469 = vector.load %arg12[%c17, %c0_206] : memref<21x128xf32, #tpu.memory_space<vmem>>, vector<1x32xf32>
    %470 = arith.addf %468, %469 : vector<1x32xf32>
    %c64 = arith.constant 64 : index
    %c0_207 = arith.constant 0 : index
    %471 = vector.load %arg10[%c64, %c0_207] : memref<416x128xbf16, #tpu.memory_space<vmem>>, vector<32x128xbf16>
    %472 = arith.truncf %58 : vector<1x32xf32> to vector<1x32xbf16>
    %cst_208 = arith.constant dense<0.000000e+00> : vector<1x128xf32>
    %473 = tpu.matmul %472, %471, %cst_208 {dimension_numbers = #tpu.dot_dimension_numbers<[1], [0], [0], [1], [0, 0, 1, 1], [], []>} : vector<1x32xbf16>, vector<32x128xbf16>, vector<1x128xf32> -> vector<1x128xf32>
    %c96 = arith.constant 96 : index
    %c0_209 = arith.constant 0 : index
    %474 = vector.load %arg10[%c96, %c0_209] : memref<416x128xbf16, #tpu.memory_space<vmem>>, vector<32x128xbf16>
    %475 = arith.truncf %78 : vector<1x32xf32> to vector<1x32xbf16>
    %cst_210 = arith.constant dense<0.000000e+00> : vector<1x128xf32>
    %476 = tpu.matmul %475, %474, %cst_210 {dimension_numbers = #tpu.dot_dimension_numbers<[1], [0], [0], [1], [0, 0, 1, 1], [], []>} : vector<1x32xbf16>, vector<32x128xbf16>, vector<1x128xf32> -> vector<1x128xf32>
    %477 = arith.addf %473, %476 : vector<1x128xf32>
    %c128 = arith.constant 128 : index
    %c0_211 = arith.constant 0 : index
    %478 = vector.load %arg10[%c128, %c0_211] : memref<416x128xbf16, #tpu.memory_space<vmem>>, vector<32x128xbf16>
    %479 = arith.truncf %470 : vector<1x32xf32> to vector<1x32xbf16>
    %cst_212 = arith.constant dense<0.000000e+00> : vector<1x128xf32>
    %480 = tpu.matmul %479, %478, %cst_212 {dimension_numbers = #tpu.dot_dimension_numbers<[1], [0], [0], [1], [0, 0, 1, 1], [], []>} : vector<1x32xbf16>, vector<32x128xbf16>, vector<1x128xf32> -> vector<1x128xf32>
    %481 = arith.addf %477, %480 : vector<1x128xf32>
    %c18 = arith.constant 18 : index
    %c0_213 = arith.constant 0 : index
    %482 = vector.load %arg12[%c18, %c0_213] : memref<21x128xf32, #tpu.memory_space<vmem>>, vector<1x128xf32>
    %483 = arith.addf %481, %482 : vector<1x128xf32>
    %cst_214 = arith.constant 0.000000e+00 : f32
    %484 = vector.broadcast %cst_214 : f32 to vector<1x128xf32>
    %485 = arith.maximumf %483, %484 : vector<1x128xf32>
    %c160 = arith.constant 160 : index
    %c0_215 = arith.constant 0 : index
    %486 = vector.load %arg10[%c160, %c0_215] : memref<416x128xbf16, #tpu.memory_space<vmem>>, vector<128x128xbf16>
    %487 = arith.truncf %485 : vector<1x128xf32> to vector<1x128xbf16>
    %cst_216 = arith.constant dense<0.000000e+00> : vector<1x128xf32>
    %488 = tpu.matmul %487, %486, %cst_216 {dimension_numbers = #tpu.dot_dimension_numbers<[1], [0], [0], [1], [0, 0, 1, 1], [], []>} : vector<1x128xbf16>, vector<128x128xbf16>, vector<1x128xf32> -> vector<1x128xf32>
    %c19 = arith.constant 19 : index
    %c0_217 = arith.constant 0 : index
    %489 = vector.load %arg12[%c19, %c0_217] : memref<21x128xf32, #tpu.memory_space<vmem>>, vector<1x128xf32>
    %490 = arith.addf %488, %489 : vector<1x128xf32>
    %cst_218 = arith.constant 0.000000e+00 : f32
    %491 = vector.broadcast %cst_218 : f32 to vector<1x128xf32>
    %492 = arith.maximumf %490, %491 : vector<1x128xf32>
    %c288_219 = arith.constant 288 : index
    %c0_220 = arith.constant 0 : index
    %493 = vector.load %arg10[%c288_219, %c0_220] : memref<416x128xbf16, #tpu.memory_space<vmem>>, vector<128x128xbf16>
    %494 = arith.truncf %492 : vector<1x128xf32> to vector<1x128xbf16>
    %cst_221 = arith.constant dense<0.000000e+00> : vector<1x128xf32>
    %495 = tpu.matmul %494, %493, %cst_221 {dimension_numbers = #tpu.dot_dimension_numbers<[1], [0], [0], [1], [0, 0, 1, 1], [], []>} : vector<1x128xbf16>, vector<128x128xbf16>, vector<1x128xf32> -> vector<1x128xf32>
    %c20 = arith.constant 20 : index
    %c0_222 = arith.constant 0 : index
    %496 = vector.load %arg12[%c20, %c0_222] : memref<21x128xf32, #tpu.memory_space<vmem>>, vector<1x128xf32>
    %497 = arith.addf %495, %496 : vector<1x128xf32>
    %c0_223 = arith.constant 0 : index
    %c0_224 = arith.constant 0 : index
    %498 = vector.load %arg13[%c0_223, %c0_224] : memref<1x128xf32, #tpu.memory_space<vmem>>, vector<1x128xf32>
    tpu.vector_store %arg13[%c0_223, %c0_224], %497 {strides = array<i32>} : memref<1x128xf32, #tpu.memory_space<vmem>>, vector<1x128xf32>,
    return
  }
  func.func @transform_0(%arg0: i32, %arg1: memref<8xi32, #tpu.memory_space<smem>>) -> (i32, i32) {
    %c0_i32 = arith.constant 0 : i32
    %c0_i32_0 = arith.constant 0 : i32
    %c0_i32_1 = arith.constant 0 : i32
    return %c0_i32, %c0_i32_0 : i32, i32
  }
  func.func @transform_1(%arg0: i32, %arg1: memref<8xi32, #tpu.memory_space<smem>>) -> (i32, i32) {
    %c0_i32 = arith.constant 0 : i32
    %c0_i32_0 = arith.constant 0 : i32
    %c0_i32_1 = arith.constant 0 : i32
    return %c0_i32, %c0_i32_0 : i32, i32
  }
  func.func @transform_3(%arg0: i32, %arg1: memref<8xi32, #tpu.memory_space<smem>>) -> (i32, i32) {
    %c0_i32 = arith.constant 0 : i32
    %c0_i32_0 = arith.constant 0 : i32
    %c0_i32_1 = arith.constant 0 : i32
    return %c0_i32, %c0_i32_0 : i32, i32
  }
  func.func @transform_4(%arg0: i32, %arg1: memref<8xi32, #tpu.memory_space<smem>>) -> (i32, i32) {
    %c0_i32 = arith.constant 0 : i32
    %c0_i32_0 = arith.constant 0 : i32
    %c0_i32_1 = arith.constant 0 : i32
    return %c0_i32, %c0_i32_0 : i32, i32
  }
  func.func @transform_5(%arg0: i32, %arg1: memref<8xi32, #tpu.memory_space<smem>>) -> (i32, i32) {
    %c0_i32 = arith.constant 0 : i32
    %c0_i32_0 = arith.constant 0 : i32
    %c0_i32_1 = arith.constant 0 : i32
    return %c0_i32, %c0_i32_0 : i32, i32
  }
  func.func @transform_6(%arg0: i32, %arg1: memref<8xi32, #tpu.memory_space<smem>>) -> (i32, i32) {
    %c0_i32 = arith.constant 0 : i32
    %c0_i32_0 = arith.constant 0 : i32
    %c0_i32_1 = arith.constant 0 : i32
    return %c0_i32, %c0_i32_0 : i32, i32
  }
  func.func @transform_7(%arg0: i32, %arg1: memref<8xi32, #tpu.memory_space<smem>>) -> (i32, i32) {
    %c0_i32 = arith.constant 0 : i32
    %c0_i32_0 = arith.constant 0 : i32
    %c0_i32_1 = arith.constant 0 : i32
    return %c0_i32, %c0_i32_0 : i32, i32
  }
  func.func @transform_8(%arg0: i32, %arg1: memref<8xi32, #tpu.memory_space<smem>>) -> (i32, i32) {
    %c0_i32 = arith.constant 0 : i32
    %c0_i32_0 = arith.constant 0 : i32
    %c0_i32_1 = arith.constant 0 : i32
    return %c0_i32, %c0_i32_0 : i32, i32
  }
  func.func @transform_9(%arg0: i32, %arg1: memref<8xi32, #tpu.memory_space<smem>>) -> (i32, i32) {
    %c0_i32 = arith.constant 0 : i32
    %c0_i32_0 = arith.constant 0 : i32
    %c0_i32_1 = arith.constant 0 : i32
    return %c0_i32, %c0_i32_0 : i32, i32
  }
  func.func @transform_10(%arg0: i32, %arg1: memref<8xi32, #tpu.memory_space<smem>>) -> (i32, i32) {
    %c0_i32 = arith.constant 0 : i32
    %c0_i32_0 = arith.constant 0 : i32
    %c0_i32_1 = arith.constant 0 : i32
    return %c0_i32, %c0_i32_0 : i32, i32
  }
  func.func @transform_11(%arg0: i32, %arg1: memref<8xi32, #tpu.memory_space<smem>>) -> (i32, i32) {
    %c0_i32 = arith.constant 0 : i32
    %c0_i32_0 = arith.constant 0 : i32
    %c0_i32_1 = arith.constant 0 : i32
    return %c0_i32, %c0_i32_0 : i32, i32
  }
}

</mosaic_0001>

<bundles_post_ra>
// kernel: pcb_policy_forward.1
= control target key start
LH: loop header
LB: loop body
LE: loop exit
PB: predicated region body
PF: predicated region fallthrough
CT: control target
= control target key end

     0   :  { %s11693_s0 = inlined_call_operand.vmem [shape: s32[8], index: 0, kind: input, shape index: {}]   ;;  %s11694_s1 = inlined_call_operand.vmem [shape: f32[6,16], index: 1, kind: input, shape index: {}]   ;;  %s11695_s2 = inlined_call_operand.vmem [shape: f32[1,256], index: 2, kind: input, shape index: {}]   ;;  %s11696_s3 = inlined_call_operand.vmem [shape: f32[2000,32], index: 3, kind: input, shape index: {}]   ;;  %s11697_s4 = inlined_call_operand.vmem [shape: bf16[64,2048], index: 4, kind: input, shape index: {}]   ;;  %s11698_s5 = inlined_call_operand.vmem [shape: f32[2,2048], index: 5, kind: input, shape index: {}]   ;;  %s11699_s6 = inlined_call_operand.vmem [shape: bf16[256,392], index: 6, kind: input, shape index: {}]   ;;  %s11700_s7 = inlined_call_operand.vmem [shape: bf16[392,144], index: 7, kind: input, shape index: {}]   ;;  %s11701_s8 = inlined_call_operand.vmem [shape: f32[2,392], index: 8, kind: input, shape index: {}]   ;;  %s11702_s9 = inlined_call_operand.vmem [shape: bf16[416,128], index: 9, kind: input, shape index: {}]   ;;  %s11703_s10 = inlined_call_operand.vmem [shape: bf16[4384,32], index: 10, kind: input, shape index: {}]   ;;  %s11704_s11 = inlined_call_operand.vmem [shape: f32[21,128], index: 11, kind: input, shape index: {}]   ;;  %s11705_s12 = inlined_call_operand.vmem [shape: f32[1,128], index: 12, kind: output, shape index: {}]  }
   0x1   :  { %s17_s23 = sshll.u32 %s11693_s0, 4  ;;  %s18_s23 = int_to_ptr.vmem [resolvable:$true] %s17_s23 }
   0x2   :  { %s9511_s24 = scalar_lea.vmem %s18_s23, 16  ;;  %p9516_p1 = scmp.lt.s32.totalorder %s18_s23, %s18_s23 }
   0x3   :  { %p9512_p0 = scmp.ne.s32.totalorder %s18_s23, %s9511_s24  ;;  %p9517_p2 = scmp.lt.s32.totalorder %s9511_s24, %s9511_s24 }
   0x5   :  { %p9518_p3 = por %p9517_p2, %p9516_p1 }
   0x7   :  { %p9519_p4 = pnand %p9518_p3, %p9512_p0 }
   0x9   :  { %9522 = shalt.err (!%p9519_p4)  }
   0xa   :  { %s9541_s25 = smov [#allocation5]  }
   0xb   :  { %20 = dma.vmem_to_smem %s18_s23, 16, %s9541_s25, [#allocation4] }
   0xc   :  { %9523 = dma.done.wait [#allocation4], 16 }
   0xd   :  { %9524 = vsyncadd [#allocation4], 4294967280 }
   0xe   :  { %22 = sfence }
   0xf   :  { %s44_s26 = sld [smem:[#allocation5]] }
  0x15   :  { %s45_s29 = scalar_lea.vmem %s11696_s3, %s44_s26 }
  0x16   :  { %v63_v0 = vld [vmem:[%s45_s29] sm:$0x1] }
  0x17   :  { %64 = vst [vmem:[#allocation2] sm:$0x1] %v63_v0 }
  0x18   :  { %89 = vsyncadd [#allocation3], 16  ;;  %s7736_s0 = sld [smem:[#allocation5 + $0x1]] }
  0x1e   :  { %s91_s14 = scalar_lea.vmem %s11696_s3, %s7736_s0 }
  0x1f   :  { %v111_v1 = vld [vmem:[%s91_s14] sm:$0x1] }
  0x20   :  { %112 = vst [vmem:[#allocation2 + $0x1] sm:$0x1] %v111_v1 }
  0x21   :  { %137 = vsyncadd [#allocation3 + $0x1], 16  ;;  %s7737_s15 = sld [smem:[#allocation5 + $0x2]] }
  0x27   :  { %s139_s18 = scalar_lea.vmem %s11696_s3, %s7737_s15 }
  0x28   :  { %v159_v2 = vld [vmem:[%s139_s18] sm:$0x1] }
  0x29   :  { %160 = vst [vmem:[#allocation2 + $0x2] sm:$0x1] %v159_v2 }
  0x2a   :  { %185 = vsyncadd [#allocation3 + $0x2], 16  ;;  %s7738_s19 = sld [smem:[#allocation5 + $0x3]] }
  0x30   :  { %s187_s22 = scalar_lea.vmem %s11696_s3, %s7738_s19 }
  0x31   :  { %v207_v3 = vld [vmem:[%s187_s22] sm:$0x1] }
  0x32   :  { %208 = vst [vmem:[#allocation2 + $0x3] sm:$0x1] %v207_v3 }
  0x33   :  { %233 = vsyncadd [#allocation3 + $0x3], 16  ;;  %s7739_s23 = sld [smem:[#allocation5 + $0x4]] }
  0x39   :  { %s235_s26 = scalar_lea.vmem %s11696_s3, %s7739_s23 }
  0x3a   :  { %v255_v4 = vld [vmem:[%s235_s26] sm:$0x1] }
  0x3b   :  { %256 = vst [vmem:[#allocation2 + $0x4] sm:$0x1] %v255_v4 }
  0x3c   :  { %281 = vsyncadd [#allocation3 + $0x4], 16  ;;  %s7740_s27 = sld [smem:[#allocation5 + $0x5]] }
  0x42   :  { %s283_s0 = scalar_lea.vmem %s11696_s3, %s7740_s27 }
  0x43   :  { %v303_v5 = vld [vmem:[%s283_s0] sm:$0x1] }
  0x44   :  { %304 = vst [vmem:[#allocation2 + $0x5] sm:$0x1] %v303_v5 }
  0x45   :  { %329 = vsyncadd [#allocation3 + $0x5], 16  ;;  %s7741_s30 = sld [smem:[#allocation5 + $0x6]] }
  0x4b   :  { %s331_s15 = scalar_lea.vmem %s11696_s3, %s7741_s30 }
  0x4c   :  { %v351_v6 = vld [vmem:[%s331_s15] sm:$0x1] }
  0x4d   :  { %352 = vst [vmem:[#allocation2 + $0x6] sm:$0x1] %v351_v6 }
  0x4e   :  { %377 = vsyncadd [#allocation3 + $0x6], 16  ;;  %s7742_s16 = sld [smem:[#allocation5 + $0x7]] }
  0x54   :  { %s379_s19 = scalar_lea.vmem %s11696_s3, %s7742_s16 }
  0x55   :  { %v399_v7 = vld [vmem:[%s379_s19] sm:$0x1] }
  0x56   :  { %400 = vst [vmem:[#allocation2 + $0x7] sm:$0x1] %v399_v7 }
  0x57   :  { %425 = vsyncadd [#allocation3 + $0x7], 16  ;;  %v9004_v8 = vld [vmem:[%s11703_s10] sm:$0xff]   ;;  %v9542_v9 = vmov 0.0   ;;  %vm9543_vm0 = vmmov 0   ;;  %vm441_vm1 = vcmask 130048   ;;  %v628_v43 = vlaneseq }
  0x58   :  { %8737 = vmatprep.subr.bf16.mxu0 %v9542_v9  ;;  %v426_v10 = vld [vmem:[%s11694_s1] sm:$0x3f]  ;;  %8743 = vmatprep.subr.bf16.mxu1 %v9542_v9  ;;  %v9029_v21 = vld [vmem:[%s11703_s10 + $0x8] sm:$0xff]   ;;  %v9033_v31 = vld [vmem:[%s11703_s10 + $0x10] sm:$0xff]   ;;  %vm508_vm2 = vcmask 261120   ;;  %vm1383_vm3 = vcmask 1043456  }
  0x59   :  { %8738 = vmatpush3.bf16.msra.mxu0 %v9004_v8  ;;  %8739 = vmatprep.mubr.msk.bf16.mxu0 %vm9543_vm0, %v9542_v9  ;;  %v429_v11 = vpack.c.bf16 %v426_v10, %v426_v10  ;;  %v9005_v12 = vld [vmem:[%s11699_s6] ss:$16 sps:$4 sm:$0xff]   ;;  %v9007_v13 = vld [vmem:[%s11699_s6 + $0x4] ss:$16 sps:$4 sm:$0xff]   ;;  %v9039_v34 = vld [vmem:[%s11699_s6 + $0xc] ss:$16 sps:$4 sm:$0xff]  }
  0x5a   :  { %8747 = vmatprep.mubr.msk.bf16.mxu1 %vm9543_vm0, %v9542_v9  ;;  %v9010_v14 = vld [vmem:[%s11699_s6 + $0x24] ss:$16 sps:$4 sm:$0xff]   ;;  %982 = vmatprep.subr.bf16.mxu0 %v9007_v13  ;;  %v9008_v15 = vld [vmem:[%s11699_s6 + $0x20] ss:$16 sps:$4 sm:$0xff]   ;;  %v9761_v46 = vshrl.u32 %v628_v43, 7  ;;  %vm552_vm4 = vcmask 259072  }
  0x5b   :  { %v9013_v16 = vld [vmem:[%s11699_s6 + $0x44] ss:$16 sps:$4 sm:$0xff]   ;;  %v9011_v17 = vld [vmem:[%s11699_s6 + $0x40] ss:$16 sps:$4 sm:$0xff]   ;;  %8744 = vmatpush3.bf16.msra.mxu1 %v9029_v21  ;;  %v9049_v21 = vld [vmem:[%s11699_s6 + $0x48] ss:$16 sps:$4 sm:$0xff]  }
  0x5c   :  { %8740 = vmatmul.mubr.msk.bf16.vlgmr.msra.gmra.mrb[0].mxu0 %vm441_vm1, %v429_v11  ;;  %v9016_v18 = vld [vmem:[%s11699_s6 + $0x64] ss:$16 sps:$4 sm:$0xff]   ;;  %v9014_v19 = vld [vmem:[%s11699_s6 + $0x60] ss:$16 sps:$4 sm:$0xff]   ;;  %8745 = vmatprep.subr.bf16.mxu1 %v9542_v9  ;;  %v9770_v49 = vsub.s32 0, %v9761_v46  ;;  %v9773_v50 = vsub.s32 1, %v9761_v46 }
  0x5d   :  { %983 = vmatpush1.bf16.msra.mxu0 %v9005_v12  ;;  %v9019_v20 = vld [vmem:[%s11699_s6 + $0x84] ss:$16 sps:$4 sm:$0xff]   ;;  %v9017_v22 = vld [vmem:[%s11699_s6 + $0x80] ss:$16 sps:$4 sm:$0xff]   ;;  %v9094_v43 = vld [vmem:[%s11699_s6 + $0x1a8] ss:$16 sps:$4 sm:$0xff]  }
  0x5e   :  { %984 = vmatprep.subr.bf16.mxu0 %v9010_v14  ;;  %v9022_v23 = vld [vmem:[%s11699_s6 + $0xa4] ss:$16 sps:$4 sm:$0xff]   ;;  %v9020_v24 = vld [vmem:[%s11699_s6 + $0xa0] ss:$16 sps:$4 sm:$0xff]   ;;  %vm1379_vm5 = vcmask 64512  }
  0x5f   :  { %v9025_v25 = vld [vmem:[%s11699_s6 + $0xc4] ss:$16 sps:$4 sm:$0xff]   ;;  %v9023_v26 = vld [vmem:[%s11699_s6 + $0xc0] ss:$16 sps:$4 sm:$0xff]   ;;  %8746 = vmatpush3.bf16.msra.mxu1 %v9033_v31  ;;  %v9076_v31 = vld [vmem:[%s11699_s6 + $0xe8] ss:$16 sps:$4 sm:$0xff]  }
  0x60   :  { %v9028_v27 = vld [vmem:[%s11699_s6 + $0xe4] ss:$16 sps:$4 sm:$0xff]   ;;  %v9026_v28 = vld [vmem:[%s11699_s6 + $0xe0] ss:$16 sps:$4 sm:$0xff]   ;;  %1023 = vmatprep.subr.bf16.mxu1 %v9039_v34  ;;  %v9084_v34 = vld [vmem:[%s11699_s6 + $0x12c] ss:$16 sps:$4 sm:$0xff]  }
  0x61   :  { %985 = vmatpush1.bf16.msra.mxu0 %v9008_v15  ;;  %v9032_v29 = vld [vmem:[%s11699_s6 + $0x104] ss:$16 sps:$4 sm:$0xff]   ;;  %v9030_v30 = vld [vmem:[%s11699_s6 + $0x100] ss:$16 sps:$4 sm:$0xff]  }
  0x62   :  { %986 = vmatprep.subr.bf16.mxu0 %v9013_v16  ;;  %v9036_v32 = vld [vmem:[%s11699_s6 + $0x124] ss:$16 sps:$4 sm:$0xff]   ;;  %v9034_v33 = vld [vmem:[%s11699_s6 + $0x120] ss:$16 sps:$4 sm:$0xff]   ;;  %v9037_v16 = vld [vmem:[%s11699_s6 + $0x8] ss:$16 sps:$4 sm:$0xff]  }
  0x63   :  { %v9042_v35 = vld [vmem:[%s11699_s6 + $0x144] ss:$16 sps:$4 sm:$0xff]   ;;  %v9040_v36 = vld [vmem:[%s11699_s6 + $0x140] ss:$16 sps:$4 sm:$0xff]  }
  0x64   :  { %v9048_v37 = vld [vmem:[%s11699_s6 + $0x164] ss:$16 sps:$4 sm:$0xff]   ;;  %v9046_v38 = vld [vmem:[%s11699_s6 + $0x160] ss:$16 sps:$4 sm:$0xff]  }
  0x65   :  { %987 = vmatpush1.bf16.msra.mxu0 %v9011_v17  ;;  %v9054_v39 = vld [vmem:[%s11699_s6 + $0x184] ss:$16 sps:$4 sm:$0xff]   ;;  %v9052_v40 = vld [vmem:[%s11699_s6 + $0x180] ss:$16 sps:$4 sm:$0xff]  }
  0x66   :  { %988 = vmatprep.subr.bf16.mxu0 %v9016_v18  ;;  %v9060_v41 = vld [vmem:[%s11699_s6 + $0x1a4] ss:$16 sps:$4 sm:$0xff]   ;;  %v9058_v42 = vld [vmem:[%s11699_s6 + $0x1a0] ss:$16 sps:$4 sm:$0xff]   ;;  %v9045_v18 = vld [vmem:[%s11699_s6 + $0x2c] ss:$16 sps:$4 sm:$0xff]  }
  0x67   :  { %v9066_v44 = vld [vmem:[%s11699_s6 + $0x1c4] ss:$16 sps:$4 sm:$0xff]   ;;  %v9064_v45 = vld [vmem:[%s11699_s6 + $0x1c0] ss:$16 sps:$4 sm:$0xff]  }
  0x68   :  { %v9072_v47 = vld [vmem:[%s11699_s6 + $0x1e4] ss:$16 sps:$4 sm:$0xff]   ;;  %v562_v48 = vld [vmem:[%s11695_s2] sm:$0x3]  ;;  %v9106_v59 = vld [vmem:[%s11700_s7 + $0x10] ss:$8 sps:$4 sm:$0xff]  }
  0x69   :  { %989 = vmatpush1.bf16.msra.mxu0 %v9014_v19  ;;  %v9070_v51 = vld [vmem:[%s11699_s6 + $0x1e0] ss:$16 sps:$4 sm:$0xff]   ;;  %v631_v52 = vrot.slane %v562_v48, %v9770_v49  ;;  %v635_v53 = vrot.slane %v562_v48, %v9773_v50  ;;  %v9105_v57 = vld [vmem:[%s11700_s7 + $0x4] ss:$8 sps:$4 sm:$0xff]   ;;  %v9108_v58 = vld [vmem:[%s11700_s7 + $0x14] ss:$8 sps:$4 sm:$0xff]  }
  0x6a   :  { %990 = vmatprep.subr.bf16.mxu0 %v9019_v20  ;;  %v9103_v56 = vld [vmem:[%s11700_s7] ss:$8 sps:$4 sm:$0xff]   ;;  %v9111_v60 = vld [vmem:[%s11700_s7 + $0x24] ss:$8 sps:$4 sm:$0xff]   ;;  %v9114_v62 = vld [vmem:[%s11700_s7 + $0x34] ss:$8 sps:$4 sm:$0xff]  }
  0x6b   :  { %v9780_v54 = vpack.c.bf16 %v631_v52, %v631_v52  ;;  %v639_v55 = vpack.c.bf16 %v635_v53, %v635_v53  ;;  %v9109_v61 = vld [vmem:[%s11700_s7 + $0x20] ss:$8 sps:$4 sm:$0xff]   ;;  %v9112_v63 = vld [vmem:[%s11700_s7 + $0x30] ss:$8 sps:$4 sm:$0xff]   ;;  %v9117_v0 = vld [vmem:[%s11700_s7 + $0x44] ss:$8 sps:$4 sm:$0xff]  }
  0x6c   :  { %v9115_v1 = vld [vmem:[%s11700_s7 + $0x40] ss:$8 sps:$4 sm:$0xff]   ;;  %v9120_v2 = vld [vmem:[%s11700_s7 + $0x54] ss:$8 sps:$4 sm:$0xff]   ;;  %v9118_v3 = vld [vmem:[%s11700_s7 + $0x50] ss:$8 sps:$4 sm:$0xff]  }
  0x6d   :  { %991 = vmatpush1.bf16.msra.mxu0 %v9017_v22  ;;  %1014 = vmatprep.mubr.bf16.mxu0 %v639_v55  ;;  %v9123_v4 = vld [vmem:[%s11700_s7 + $0x64] ss:$8 sps:$4 sm:$0xff]   ;;  %v9121_v5 = vld [vmem:[%s11700_s7 + $0x60] ss:$8 sps:$4 sm:$0xff]   ;;  %v9126_v6 = vld [vmem:[%s11700_s7 + $0x74] ss:$8 sps:$4 sm:$0xff]  }
  0x6e   :  { %992 = vmatprep.subr.bf16.mxu0 %v9022_v23  ;;  %v9124_v7 = vld [vmem:[%s11700_s7 + $0x70] ss:$8 sps:$4 sm:$0xff]   ;;  %v7743_v8 = vld [vmem:[%s11704_s11] ss:$0 sm:$0xff]  ;;  %v9051_v20 = vld [vmem:[%s11699_s6 + $0x4c] ss:$16 sps:$4 sm:$0xff]  }
  0x6f   :  { %v9043_v19 = vld [vmem:[%s11699_s6 + $0x28] ss:$16 sps:$4 sm:$0xff]   ;;  %v9057_v22 = vld [vmem:[%s11699_s6 + $0x6c] ss:$16 sps:$4 sm:$0xff]  }
  0x70   :  { %v9055_v23 = vld [vmem:[%s11699_s6 + $0x68] ss:$16 sps:$4 sm:$0xff]   ;;  %v9132_v53 = vld [vmem:[%s11700_s7 + $0x94] ss:$8 sps:$4 sm:$0xff]  }
  0x71   :  { %993 = vmatpush1.bf16.msra.mxu0 %v9020_v24  ;;  %v9063_v24 = vld [vmem:[%s11699_s6 + $0x8c] ss:$16 sps:$4 sm:$0xff]   ;;  %v9100_v48 = vld [vmem:[%s11699_s6 + $0x1e8] ss:$16 sps:$4 sm:$0xff]  }
  0x72   :  { %994 = vmatprep.subr.bf16.mxu0 %v9025_v25  ;;  %v9061_v25 = vld [vmem:[%s11699_s6 + $0x88] ss:$16 sps:$4 sm:$0xff]  }
  0x73   :  { %v9127_v52 = vld [vmem:[%s11700_s7 + $0x80] ss:$8 sps:$4 sm:$0xff]  }
  0x75   :  { %995 = vmatpush1.bf16.msra.mxu0 %v9023_v26  ;;  %v9069_v26 = vld [vmem:[%s11699_s6 + $0xac] ss:$16 sps:$4 sm:$0xff]  }
  0x76   :  { %996 = vmatprep.subr.bf16.mxu0 %v9028_v27  ;;  %v9067_v27 = vld [vmem:[%s11699_s6 + $0xa8] ss:$16 sps:$4 sm:$0xff]  }
  0x79   :  { %997 = vmatpush1.bf16.msra.mxu0 %v9026_v28  ;;  %v9075_v28 = vld [vmem:[%s11699_s6 + $0xcc] ss:$16 sps:$4 sm:$0xff]  }
  0x7a   :  { %998 = vmatprep.subr.bf16.mxu0 %v9032_v29  ;;  %v9073_v29 = vld [vmem:[%s11699_s6 + $0xc8] ss:$16 sps:$4 sm:$0xff]  }
  0x7d   :  { %999 = vmatpush1.bf16.msra.mxu0 %v9030_v30  ;;  %v9078_v30 = vld [vmem:[%s11699_s6 + $0xec] ss:$16 sps:$4 sm:$0xff]  }
  0x7e   :  { %1000 = vmatprep.subr.bf16.mxu0 %v9036_v32  ;;  %v9081_v32 = vld [vmem:[%s11699_s6 + $0x10c] ss:$16 sps:$4 sm:$0xff]  }
  0x81   :  { %1001 = vmatpush1.bf16.msra.mxu0 %v9034_v33  ;;  %v9079_v33 = vld [vmem:[%s11699_s6 + $0x108] ss:$16 sps:$4 sm:$0xff]  }
  0x82   :  { %1002 = vmatprep.subr.bf16.mxu0 %v9042_v35  ;;  %v9082_v35 = vld [vmem:[%s11699_s6 + $0x128] ss:$16 sps:$4 sm:$0xff]  }
  0x85   :  { %1003 = vmatpush1.bf16.msra.mxu0 %v9040_v36  ;;  %v9087_v36 = vld [vmem:[%s11699_s6 + $0x14c] ss:$16 sps:$4 sm:$0xff]  }
  0x86   :  { %1004 = vmatprep.subr.bf16.mxu0 %v9048_v37  ;;  %v9085_v37 = vld [vmem:[%s11699_s6 + $0x148] ss:$16 sps:$4 sm:$0xff]  }
  0x89   :  { %1005 = vmatpush1.bf16.msra.mxu0 %v9046_v38  ;;  %v9090_v38 = vld [vmem:[%s11699_s6 + $0x16c] ss:$16 sps:$4 sm:$0xff]  }
  0x8a   :  { %1006 = vmatprep.subr.bf16.mxu0 %v9054_v39  ;;  %v9088_v39 = vld [vmem:[%s11699_s6 + $0x168] ss:$16 sps:$4 sm:$0xff]  }
  0x8d   :  { %1007 = vmatpush1.bf16.msra.mxu0 %v9052_v40  ;;  %v9093_v40 = vld [vmem:[%s11699_s6 + $0x18c] ss:$16 sps:$4 sm:$0xff]  }
  0x8e   :  { %1008 = vmatprep.subr.bf16.mxu0 %v9060_v41  ;;  %v9091_v41 = vld [vmem:[%s11699_s6 + $0x188] ss:$16 sps:$4 sm:$0xff]  }
  0x91   :  { %1009 = vmatpush1.bf16.msra.mxu0 %v9058_v42  ;;  %v9096_v42 = vld [vmem:[%s11699_s6 + $0x1ac] ss:$16 sps:$4 sm:$0xff]  }
  0x92   :  { %1010 = vmatprep.subr.bf16.mxu0 %v9066_v44  ;;  %v9099_v44 = vld [vmem:[%s11699_s6 + $0x1cc] ss:$16 sps:$4 sm:$0xff]  }
  0x95   :  { %1011 = vmatpush1.bf16.msra.mxu0 %v9064_v45  ;;  %v9097_v45 = vld [vmem:[%s11699_s6 + $0x1c8] ss:$16 sps:$4 sm:$0xff]  }
  0x96   :  { %1012 = vmatprep.subr.bf16.mxu0 %v9072_v47  ;;  %v9102_v47 = vld [vmem:[%s11699_s6 + $0x1ec] ss:$16 sps:$4 sm:$0xff]  }
  0x99   :  { %1013 = vmatpush1.bf16.msra.mxu0 %v9070_v51  ;;  %v9129_v51 = vld [vmem:[%s11700_s7 + $0x84] ss:$8 sps:$4 sm:$0xff]  }
  0x9a   :  { %1390 = vmatprep.subr.bf16.mxu0 %v9105_v57  ;;  %v9138_v57 = vld [vmem:[%s11700_s7 + $0xb4] ss:$8 sps:$4 sm:$0xff]  }
  0x9c   :  { %1015 = vmatmul.mubr.bf16.vlgmr.msra.gmra.mrb[4].mxu0 %v9780_v54 }
  0x9d   :  { %1391 = vmatpush1.bf16.msra.mxu0 %v9103_v56  ;;  %v9133_v56 = vld [vmem:[%s11700_s7 + $0xa0] ss:$8 sps:$4 sm:$0xff]  }
  0x9e   :  { %1392 = vmatprep.subr.bf16.mxu0 %v9108_v58  ;;  %v9136_v58 = vld [vmem:[%s11700_s7 + $0xb0] ss:$8 sps:$4 sm:$0xff]  }
  0xa1   :  { %1393 = vmatpush1.bf16.msra.mxu0 %v9106_v59  ;;  %v9141_v59 = vld [vmem:[%s11700_s7 + $0xc4] ss:$8 sps:$4 sm:$0xff]  }
  0xa2   :  { %1394 = vmatprep.subr.bf16.mxu0 %v9111_v60  ;;  %v9139_v60 = vld [vmem:[%s11700_s7 + $0xc0] ss:$8 sps:$4 sm:$0xff]  }
  0xa5   :  { %1395 = vmatpush1.bf16.msra.mxu0 %v9109_v61  ;;  %v9144_v61 = vld [vmem:[%s11700_s7 + $0xd4] ss:$8 sps:$4 sm:$0xff]  }
  0xa6   :  { %1396 = vmatprep.subr.bf16.mxu0 %v9114_v62  ;;  %v9142_v62 = vld [vmem:[%s11700_s7 + $0xd0] ss:$8 sps:$4 sm:$0xff]  }
  0xa9   :  { %1397 = vmatpush1.bf16.msra.mxu0 %v9112_v63  ;;  %v9968_v63 = vld [vmem:[%s11701_s8] ss:$2 sm:$0xf] }
  0xaa   :  { %1398 = vmatprep.subr.bf16.mxu0 %v9117_v0  ;;  %v9147_v0 = vld [vmem:[%s11700_s7 + $0xe4] ss:$8 sps:$4 sm:$0xff]  }
  0xad   :  { %1399 = vmatpush1.bf16.msra.mxu0 %v9115_v1  ;;  %v965_v1 = vrot.slane %v9968_v63, %v9770_v49 }
  0xae   :  { %1400 = vmatprep.subr.bf16.mxu0 %v9120_v2  ;;  %v969_v2 = vrot.slane %v9968_v63, %v9773_v50 }
  0xb1   :  { %1401 = vmatpush1.bf16.msra.mxu0 %v9118_v3  ;;  %v9145_v3 = vld [vmem:[%s11700_s7 + $0xe0] ss:$8 sps:$4 sm:$0xff]  }
  0xb2   :  { %1402 = vmatprep.subr.bf16.mxu0 %v9123_v4  ;;  %v9150_v4 = vld [vmem:[%s11700_s7 + $0xf4] ss:$8 sps:$4 sm:$0xff]  }
  0xb5   :  { %1403 = vmatpush1.bf16.msra.mxu0 %v9121_v5 }
  0xb6   :  { %1404 = vmatprep.subr.bf16.mxu0 %v9126_v6 }
  0xb9   :  { %1405 = vmatpush1.bf16.msra.mxu0 %v9124_v7 }
  0xba   :  { %1406 = vmatprep.subr.bf16.mxu0 %v9129_v51 }
  0xbd   :  { %1407 = vmatpush1.bf16.msra.mxu0 %v9127_v52 }
  0xbe   :  { %1408 = vmatprep.subr.bf16.mxu0 %v9132_v53 }
 0x12f   :  { %v479_v10 = vpop.f32.mrb[0].mxu0 }
 0x130   :  { %v480_v11 = vadd.f32 %v7743_v8, %v479_v10  ;;  %v8741_v12 = vpop.f32.mrb[1].mxu0 }
 0x131   :  { %v482_v13 = vpop.f32.mrb[2].mxu0 }
 0x132   :  { %v485_v14 = vmax.f32 %v480_v11, 0.0  ;;  %v8742_v15 = vpop.f32.mrb[3].mxu0  ;;  %v9148_v11 = vld [vmem:[%s11700_s7 + $0xf0] ss:$8 sps:$4 sm:$0xff]  }
 0x134   :  { %v490_v17 = vpack.c.bf16 %v485_v14, %v485_v14  ;;  %v9153_v14 = vld [vmem:[%s11700_s7 + $0x104] ss:$8 sps:$4 sm:$0xff]  }
 0x136   :  { %8748 = vmatmul.mubr.msk.bf16.vlgmr.msra.gmra.mrb[0].mxu1 %vm508_vm2, %v490_v17 }
 0x137   :  { %1024 = vmatpush1.bf16.msra.mxu1 %v9037_v16  ;;  %1055 = vmatprep.mubr.bf16.mxu1 %v639_v55  ;;  %v9130_v55 = vld [vmem:[%s11700_s7 + $0x90] ss:$8 sps:$4 sm:$0xff]  }
 0x138   :  { %1025 = vmatprep.subr.bf16.mxu1 %v9045_v18  ;;  %1409 = vmatpush1.bf16.msra.mxu0 %v9130_v55  ;;  %v9151_v18 = vld [vmem:[%s11700_s7 + $0x100] ss:$8 sps:$4 sm:$0xff]  }
 0x13b   :  { %1026 = vmatpush1.bf16.msra.mxu1 %v9043_v19  ;;  %v9156_v19 = vld [vmem:[%s11700_s7 + $0x114] ss:$8 sps:$4 sm:$0xff]  }
 0x13c   :  { %1027 = vmatprep.subr.bf16.mxu1 %v9051_v20  ;;  %v9154_v20 = vld [vmem:[%s11700_s7 + $0x110] ss:$8 sps:$4 sm:$0xff]  }
 0x13f   :  { %1028 = vmatpush1.bf16.msra.mxu1 %v9049_v21  ;;  %v9159_v21 = vld [vmem:[%s11700_s7 + $0x124] ss:$8 sps:$4 sm:$0xff]  }
 0x140   :  { %1029 = vmatprep.subr.bf16.mxu1 %v9057_v22  ;;  %v9157_v22 = vld [vmem:[%s11700_s7 + $0x120] ss:$8 sps:$4 sm:$0xff]  }
 0x143   :  { %1030 = vmatpush1.bf16.msra.mxu1 %v9055_v23  ;;  %v9162_v23 = vld [vmem:[%s11700_s7 + $0x134] ss:$8 sps:$4 sm:$0xff]  }
 0x144   :  { %1031 = vmatprep.subr.bf16.mxu1 %v9063_v24  ;;  %v9160_v24 = vld [vmem:[%s11700_s7 + $0x130] ss:$8 sps:$4 sm:$0xff]  }
 0x147   :  { %1032 = vmatpush1.bf16.msra.mxu1 %v9061_v25  ;;  %v9165_v25 = vld [vmem:[%s11700_s7 + $0x144] ss:$8 sps:$4 sm:$0xff]  }
 0x148   :  { %1033 = vmatprep.subr.bf16.mxu1 %v9069_v26  ;;  %v9163_v26 = vld [vmem:[%s11700_s7 + $0x140] ss:$8 sps:$4 sm:$0xff]  }
 0x14b   :  { %1034 = vmatpush1.bf16.msra.mxu1 %v9067_v27  ;;  %v9168_v27 = vld [vmem:[%s11700_s7 + $0x154] ss:$8 sps:$4 sm:$0xff]  }
 0x14c   :  { %1035 = vmatprep.subr.bf16.mxu1 %v9075_v28  ;;  %v9166_v28 = vld [vmem:[%s11700_s7 + $0x150] ss:$8 sps:$4 sm:$0xff]  }
 0x14f   :  { %1036 = vmatpush1.bf16.msra.mxu1 %v9073_v29  ;;  %v9171_v29 = vld [vmem:[%s11700_s7 + $0x164] ss:$8 sps:$4 sm:$0xff]  }
 0x150   :  { %1037 = vmatprep.subr.bf16.mxu1 %v9078_v30  ;;  %v9169_v30 = vld [vmem:[%s11700_s7 + $0x160] ss:$8 sps:$4 sm:$0xff]  }
 0x153   :  { %1038 = vmatpush1.bf16.msra.mxu1 %v9076_v31  ;;  %v9174_v31 = vld [vmem:[%s11700_s7 + $0x174] ss:$8 sps:$4 sm:$0xff]  }
 0x154   :  { %1039 = vmatprep.subr.bf16.mxu1 %v9081_v32  ;;  %v9172_v32 = vld [vmem:[%s11700_s7 + $0x170] ss:$8 sps:$4 sm:$0xff]  }
 0x157   :  { %1040 = vmatpush1.bf16.msra.mxu1 %v9079_v33  ;;  %v1116_v33 = vld [vmem:[%s11700_s7 + $0x180] sm:$0xff] }
 0x158   :  { %1041 = vmatprep.subr.bf16.mxu1 %v9084_v34  ;;  %v7864_v34 = vcombine.high %v1116_v33, %v1116_v33 }
 0x15b   :  { %1042 = vmatpush1.bf16.msra.mxu1 %v9082_v35  ;;  %v7863_v35 = vcombine.low %v1116_v33, %v1116_v33 }
 0x15c   :  { %1043 = vmatprep.subr.bf16.mxu1 %v9087_v36 }
 0x15d   :  { %v1385_v36 = vsel %vm1383_vm3, %v7863_v35, 0 }
 0x15f   :  { %1044 = vmatpush1.bf16.msra.mxu1 %v9085_v37  ;;  %v9177_v37 = vld [vmem:[%s11703_s10 + $0x18] sm:$0xff]  }
 0x160   :  { %1045 = vmatprep.subr.bf16.mxu1 %v9090_v38  ;;  %v9544_v38 = vmov 0  }
 0x163   :  { %1046 = vmatpush1.bf16.msra.mxu1 %v9088_v39  ;;  %v9178_v39 = vld [vmem:[%s11703_s10 + $0x20] sm:$0xff]  }
 0x164   :  { %1047 = vmatprep.subr.bf16.mxu1 %v9093_v40  ;;  %v9179_v40 = vld [vmem:[%s11703_s10 + $0x28] sm:$0xff]  }
 0x167   :  { %1048 = vmatpush1.bf16.msra.mxu1 %v9091_v41  ;;  %v9180_v41 = vld [vmem:[%s11703_s10 + $0x30] sm:$0xff]  }
 0x168   :  { %1049 = vmatprep.subr.bf16.mxu1 %v9096_v42  ;;  %v9181_v42 = vld [vmem:[%s11703_s10 + $0x38] sm:$0xff]  }
 0x16b   :  { %1050 = vmatpush1.bf16.msra.mxu1 %v9094_v43  ;;  %v9182_v43 = vld [vmem:[%s11703_s10 + $0x40] sm:$0xff]  }
 0x16c   :  { %1051 = vmatprep.subr.bf16.mxu1 %v9099_v44  ;;  %v9183_v44 = vld [vmem:[%s11703_s10 + $0x48] sm:$0xff]  }
 0x16f   :  { %1052 = vmatpush1.bf16.msra.mxu1 %v9097_v45  ;;  %v1016_v5 = vpop.f32.mrb[4].mxu0  ;;  %v7746_v45 = vld [vmem:[%s11704_s11 + $0x1] ss:$0 sm:$0xff] }
 0x170   :  { %1053 = vmatprep.subr.bf16.mxu1 %v9102_v47  ;;  %v1017_v6 = vadd.f32 %v1016_v5, %v965_v1  ;;  %v1018_v7 = vpop.f32.mrb[5].mxu0 }
 0x171   :  { %v1019_v8 = vadd.f32 %v1018_v7, %v969_v2  ;;  %v1020_v10 = vpop.f32.mrb[6].mxu0 }
 0x172   :  { %v1064_v12 = vmax.f32 %v1017_v6, 0.0  ;;  %v1021_v13 = vpop.f32.mrb[7].mxu0 }
 0x173   :  { %1054 = vmatpush1.bf16.msra.mxu1 %v9100_v48  ;;  %v1065_v15 = vmax.f32 %v1019_v8, 0.0 }
 0x174   :  { %v1117_v16 = vpack.c.bf16 %v1064_v12, %v1064_v12  ;;  %1552 = vmatprep.subr.bf16.mxu1 %v9544_v38 }
 0x175   :  { %v1118_v17 = vpack.c.bf16 %v1065_v15, %v1065_v15  ;;  %v7814_v15 = vld [vmem:[%s11701_s8 + $0x1] ss:$2 sm:$0x3] }
 0x176   :  { %1056 = vmatmul.mubr.bf16.vlgmr.msra.gmra.mrb[4].mxu1 %v9780_v54  ;;  %v9135_v54 = vld [vmem:[%s11700_s7 + $0xa4] ss:$8 sps:$4 sm:$0xff]  }
 0x177   :  { %1410 = vmatprep.subr.bf16.mxu0 %v9135_v54  ;;  %1422 = vmatprep.mubr.bf16.mxu0 %v1118_v17  ;;  %v1376_v17 = vrot.slane %v7814_v15, %v9773_v50 }
 0x178   :  { %1411 = vmatpush1.bf16.msra.mxu0 %v9133_v56  ;;  %1553 = vmatpush1.bf16.msra.mxu1 %v9177_v37 }
 0x179   :  { %1412 = vmatprep.subr.bf16.mxu0 %v9138_v57  ;;  %1554 = vmatprep.subr.bf16.mxu1 %v9544_v38 }
 0x17c   :  { %1413 = vmatpush1.bf16.msra.mxu0 %v9136_v58  ;;  %1555 = vmatpush1.bf16.msra.mxu1 %v9178_v39 }
 0x17d   :  { %1414 = vmatprep.subr.bf16.mxu0 %v9141_v59  ;;  %1556 = vmatprep.subr.bf16.mxu1 %v9544_v38 }
 0x180   :  { %1415 = vmatpush1.bf16.msra.mxu0 %v9139_v60  ;;  %1557 = vmatpush1.bf16.msra.mxu1 %v9179_v40 }
 0x181   :  { %1416 = vmatprep.subr.bf16.mxu0 %v9144_v61  ;;  %1558 = vmatprep.subr.bf16.mxu1 %v9544_v38 }
 0x184   :  { %1417 = vmatpush1.bf16.msra.mxu0 %v9142_v62  ;;  %1559 = vmatpush1.bf16.msra.mxu1 %v9180_v41  ;;  %v10074_v62 = vsub.s32 2, %v9761_v46 }
 0x185   :  { %1418 = vmatprep.subr.bf16.mxu0 %v9147_v0  ;;  %1560 = vmatprep.subr.bf16.mxu1 %v9544_v38  ;;  %v10077_v0 = vsub.s32 3, %v9761_v46 }
 0x186   :  { %v973_v1 = vrot.slane %v9968_v63, %v10074_v62 }
 0x187   :  { %v977_v2 = vrot.slane %v9968_v63, %v10077_v0  ;;  %v9185_v63 = vld [vmem:[%s11703_s10 + $0x58] sm:$0xff]  }
 0x188   :  { %1419 = vmatpush1.bf16.msra.mxu0 %v9145_v3  ;;  %1561 = vmatpush1.bf16.msra.mxu1 %v9181_v42 }
 0x189   :  { %1420 = vmatprep.subr.bf16.mxu0 %v9150_v4  ;;  %1562 = vmatprep.subr.bf16.mxu1 %v9544_v38 }
 0x18c   :  { %1421 = vmatpush1.bf16.msra.mxu0 %v9148_v11  ;;  %1563 = vmatpush1.bf16.msra.mxu1 %v9182_v43 }
 0x18d   :  { %1431 = vmatprep.subr.bf16.mxu0 %v9153_v14  ;;  %1564 = vmatprep.subr.bf16.mxu1 %v9544_v38  ;;  %v9184_v14 = vld [vmem:[%s11703_s10 + $0x50] sm:$0xff]  }
 0x18f   :  { %1423 = vmatmul.mubr.bf16.vlgmr.msra.gmra.mrb[8].mxu0 %v1117_v16  ;;  %v1372_v16 = vrot.slane %v7814_v15, %v9770_v49 }
 0x190   :  { %1432 = vmatpush1.bf16.msra.mxu0 %v9151_v18  ;;  %1565 = vmatpush1.bf16.msra.mxu1 %v9183_v44 }
 0x191   :  { %1433 = vmatprep.subr.bf16.mxu0 %v9156_v19  ;;  %1566 = vmatprep.subr.bf16.mxu1 %v9544_v38 }
 0x194   :  { %1434 = vmatpush1.bf16.msra.mxu0 %v9154_v20  ;;  %1567 = vmatpush1.bf16.msra.mxu1 %v9184_v14 }
 0x195   :  { %1435 = vmatprep.subr.bf16.mxu0 %v9159_v21  ;;  %1568 = vmatprep.subr.bf16.mxu1 %v9544_v38 }
 0x198   :  { %1436 = vmatpush1.bf16.msra.mxu0 %v9157_v22  ;;  %1569 = vmatpush1.bf16.msra.mxu1 %v9185_v63 }
 0x199   :  { %1437 = vmatprep.subr.bf16.mxu0 %v9162_v23 }
 0x19c   :  { %1438 = vmatpush1.bf16.msra.mxu0 %v9160_v24 }
 0x19d   :  { %1439 = vmatprep.subr.bf16.mxu0 %v9165_v25 }
 0x1a0   :  { %1440 = vmatpush1.bf16.msra.mxu0 %v9163_v26 }
 0x1a1   :  { %1441 = vmatprep.subr.bf16.mxu0 %v9168_v27 }
 0x1a4   :  { %1442 = vmatpush1.bf16.msra.mxu0 %v9166_v28  ;;  %v1494_v28 = vld [vmem:[%s11704_s11 + $0x2] sm:$0x1] }
 0x1a5   :  { %1443 = vmatprep.subr.bf16.mxu0 %v9171_v29 }
 0x1a8   :  { %1444 = vmatpush1.bf16.msra.mxu0 %v9169_v30 }
 0x1a9   :  { %1445 = vmatprep.subr.bf16.mxu0 %v9174_v31 }
 0x1ac   :  { %1446 = vmatpush1.bf16.msra.mxu0 %v9172_v32 }
 0x1ad   :  { %7865 = vmatprep.subr.msk.bf16.mxu0 %vm1383_vm3, %v7864_v34 }
 0x1b0   :  { %1448 = vmatpush1.bf16.msra.mxu0 %v1385_v36 }
 0x209   :  { %v546_v47 = vpop.f32.mrb[0].mxu1 }
 0x20a   :  { %v547_v48 = vadd.f32 %v7746_v45, %v546_v47  ;;  %v8749_v51 = vpop.f32.mrb[1].mxu1 }
 0x20b   :  { %v549_v52 = vpop.f32.mrb[2].mxu1 }
 0x20c   :  { %v553_v53 = vsel %vm552_vm4, %v547_v48, 0.0  ;;  %v8750_v55 = vpop.f32.mrb[3].mxu1 }
 0x20d   :  { %v554_v54 = vrot.slane %v553_v53, 4 }
 0x20f   :  { %v555_v56 = vadd.f32 %v554_v54, %v553_v53 }
 0x211   :  { %v556_v57 = vrot.slane %v555_v56, 2 }
 0x213   :  { %v557_v58 = vadd.f32 %v556_v57, %v555_v56 }
 0x215   :  { %v558_v59 = vrot.slane %v557_v58, 1 }
 0x217   :  { %v559_v60 = vadd.f32 %v558_v59, %v557_v58 }
 0x219   :  { %v10071_v61 = vmul.f32 0.16666667, %v559_v60 }
 0x249   :  { %v1057_v3 = vpop.f32.mrb[4].mxu1 }
 0x24a   :  { %v1058_v4 = vadd.f32 %v1057_v3, %v973_v1  ;;  %v1059_v5 = vpop.f32.mrb[5].mxu1 }
 0x24b   :  { %v1060_v6 = vadd.f32 %v1059_v5, %v977_v2  ;;  %v1061_v7 = vpop.f32.mrb[6].mxu1 }
 0x24c   :  { %v1066_v8 = vmax.f32 %v1058_v4, 0.0  ;;  %v1062_v10 = vpop.f32.mrb[7].mxu1 }
 0x24d   :  { %v1067_v11 = vmax.f32 %v1060_v6, 0.0 }
 0x24e   :  { %v1119_v13 = vpack.c.bf16 %v1066_v8, %v1066_v8 }
 0x24f   :  { %v1120_v12 = vpack.c.bf16 %v1067_v11, %v1067_v11 }
 0x251   :  { %7866 = vmatprep.mubr.msk.bf16.mxu0 %vm1379_vm5, %v1120_v12 }
 0x252   :  { %1464 = vmatmul.mubr.bf16.vlgmr.msra.gmra.mrb[8].mxu0 %v1119_v13 }
 0x325   :  { %v1465_v18 = vpop.f32.mrb[8].mxu0 }
 0x326   :  { %v8983_v19 = vadd.f32 %v1465_v18, %v1372_v16  ;;  %v1467_v20 = vpop.f32.mrb[9].mxu0 }
 0x327   :  { %v8984_v21 = vadd.f32 %v1467_v20, %v1376_v17  ;;  %v1469_v22 = vpop.f32.mrb[10].mxu0 }
 0x328   :  { %v1472_v23 = vmax.f32 %v8983_v19, 0.0  ;;  %v1470_v24 = vpop.f32.mrb[11].mxu0 }
 0x329   :  { %v1473_v25 = vmax.f32 %v8984_v21, 0.0 }
 0x32a   :  { %v1492_v27 = vpack.c.bf16 %v1472_v23, %v1472_v23 }
 0x32b   :  { %v1493_v26 = vpack.c.bf16 %v1473_v25, %v1473_v25 }
 0x32d   :  { %7876 = vmatprep.mubr.msk.bf16.mxu1 %vm441_vm1, %v1493_v26 }
 0x32e   :  { %1585 = vmatmul.mubr.bf16.vlgmr.msra.gmra.mrb[8].mxu1 %v1492_v27 }
 0x401   :  { %v1586_v29 = vpop.f32.mrb[8].mxu1 }
 0x402   :  { %v10100_v30 = vadd.f32 %v1586_v29, %v1494_v28  ;;  %v1588_v31 = vpop.f32.mrb[9].mxu1 }
 0x403   :  { %v1589_v32 = vpop.f32.mrb[10].mxu1 }
 0x404   :  { %v1590_v33 = vpop.f32.mrb[11].mxu1 }
 0x405   :  { %9525 = dma.done.wait [#allocation3], 16 }
 0x406   :  { %9526 = vsyncadd [#allocation3], 4294967280 }
 0x407   :  { %9527 = dma.done.wait [#allocation3 + $0x1], 16 }
 0x408   :  { %9528 = vsyncadd [#allocation3 + $0x1], 4294967280 }
 0x409   :  { %9529 = dma.done.wait [#allocation3 + $0x2], 16 }
 0x40a   :  { %9530 = vsyncadd [#allocation3 + $0x2], 4294967280 }
 0x40b   :  { %9531 = dma.done.wait [#allocation3 + $0x3], 16 }
 0x40c   :  { %9532 = vsyncadd [#allocation3 + $0x3], 4294967280 }
 0x40d   :  { %9533 = dma.done.wait [#allocation3 + $0x4], 16 }
 0x40e   :  { %9534 = vsyncadd [#allocation3 + $0x4], 4294967280 }
 0x40f   :  { %9535 = dma.done.wait [#allocation3 + $0x5], 16 }
 0x410   :  { %9536 = vsyncadd [#allocation3 + $0x5], 4294967280 }
 0x411   :  { %9537 = dma.done.wait [#allocation3 + $0x6], 16 }
 0x412   :  { %9538 = vsyncadd [#allocation3 + $0x6], 4294967280 }
 0x413   :  { %9539 = dma.done.wait [#allocation3 + $0x7], 16 }
 0x414   :  { %9540 = vsyncadd [#allocation3 + $0x7], 4294967280  ;;  %8751 = vmatprep.subr.bf16.mxu1 %v9542_v9  ;;  %8755 = vmatprep.mubr.msk.bf16.mxu1 %vm9543_vm0, %v9542_v9  ;;  %v9186_v34 = vld [vmem:[%s11702_s9] sm:$0xff]   ;;  %v9187_v35 = vld [vmem:[%s11702_s9 + $0x8] sm:$0xff]   ;;  %s9545_s22 = smov 64   ;;  %s9546_s23 = smov 96  }
 0x415   :  { %8801 = vmatprep.subr.bf16.mxu0 %v9542_v9  ;;  %8803 = vmatprep.mubr.msk.bf16.mxu0 %vm9543_vm0, %v9542_v9  ;;  %v1609_v36 = vld [vmem:[#allocation2] sm:$0xff]  ;;  %s9547_s3 = smov 88   ;;  %s9548_s24 = smov 120  }
 0x416   :  { %8752 = vmatpush3.bf16.msra.mxu1 %v9186_v34  ;;  %v1906_v37 = vpack.c.bf16 %v1609_v36, %v1609_v36  ;;  %v7877_v39 = vld [vmem:[%s11704_s11 + $0x3] ss:$0 sm:$0xff]  ;;  %s9549_s6 = smov 56   ;;  %s9550_s25 = smov 80   ;;  %v1615_v31 = vld [vmem:[%s11703_s10 + $0x64] sm:$0xf] }
 0x417   :  { %8753 = vmatprep.subr.bf16.mxu1 %v9542_v9  ;;  %s9551_s26 = smov 112   ;;  %v2195_v34 = vsel %vm1383_vm3, %v1615_v31, 0  ;;  %s9552_s0 = smov 48  }
 0x418   :  { %s9553_s2 = smov 72   ;;  %s9554_s30 = smov 104  }
 0x419   :  { %s9555_s15 = smov 40  }
 0x41a   :  { %8754 = vmatpush3.bf16.msra.mxu1 %v9187_v35  ;;  %v1614_v35 = vld [vmem:[%s11703_s10 + $0x60] sm:$0xf] }
 0x41b   :  { %8759 = vmatprep.subr.bf16.mxu1 %v9542_v9 }
 0x41d   :  { %8756 = vmatmul.mubr.msk.bf16.vlgmr.msra.gmra.mrb[12].mxu1 %vm508_vm2, %v1906_v37 }
 0x41e   :  { %8761 = vmatprep.mubr.msk.bf16.mxu1 %vm9543_vm0, %v9542_v9 }
 0x4f0   :  { %v1961_v40 = vpop.f32.mrb[12].mxu1 }
 0x4f1   :  { %v1962_v41 = vadd.f32 %v7877_v39, %v1961_v40  ;;  %v8757_v42 = vpop.f32.mrb[13].mxu1  ;;  %v2241_v40 = vsel %vm1383_vm3, %v1614_v35, 0 }
 0x4f2   :  { %v1964_v43 = vpop.f32.mrb[14].mxu1 }
 0x4f3   :  { %v10122_v44 = vpack.c.bf16 %v1962_v41, %v1962_v41  ;;  %v8758_v45 = vpop.f32.mrb[15].mxu1 }
 0x4f5   :  { %2030 = vrot.lane.b32.xlu1 %v10122_v44, %s9545_s22  ;;  %1969 = vrot.lane.b32.xlu0 %v10122_v44, %s9546_s23 }
 0x567   :  { %v1970_v47 = vpop.permute.xlu0 %1969  ;;  %v2031_v51 = vpop.permute.xlu1 %2030 }
 0x568   :  { %v1975_v48 = vsel %vm1379_vm5, %v1970_v47, 0  ;;  %v2036_v52 = vsel %vm1383_vm3, %v2031_v51, 0 }
 0x569   :  { %8760 = vmatpush3.bf16.xpose.msra.mxu1 %v1975_v48 }
 0x56a   :  { %8765 = vmatprep.subr.bf16.mxu1 %v9542_v9 }
 0x570   :  { %8762 = vmatmul.mubr.msk.bf16.vlgmr.msra.gmra.mrb[16].mxu1 %vm1379_vm5, %v10122_v44 }
 0x571   :  { %8766 = vmatpush3.bf16.msra.mxu1 %v2036_v52  ;;  %8767 = vmatprep.mubr.msk.bf16.mxu1 %vm9543_vm0, %v9542_v9 }
 0x572   :  { %8771 = vmatprep.subr.bf16.mxu1 %v9542_v9 }
 0x643   :  { %v2011_v53 = vpop.f32.mrb[16].mxu1 }
 0x644   :  { %v2017_v55 = vmul.f32 0.35355338, %v2011_v53  ;;  %v8763_v54 = vpop.f32.mrb[17].mxu1 }
 0x645   :  { %v2014_v56 = vpop.f32.mrb[18].mxu1 }
 0x646   :  { %v8764_v57 = vpop.f32.mrb[19].mxu1  ;;  %v2018_v58 = vsel %vm1379_vm5, %v2017_v55, -inf }
 0x647   :  { %2019 = vmax.xlane.f32.xlu0 %v2018_v58 }
 0x6d4   :  { %v2020_v59 = vpop.xlane.xlu0 %2019 }
 0x6d5   :  { %v2021_v60 = vsub.f32 %v2017_v55, %v2020_v59 }
 0x6d7   :  { %v2022_v1 = vmul.f32 1.442695, %v2021_v60 }
 0x6d9   :  { %9470 = vpow2.f32 %v2022_v1 }
 0x6e3   :  { %v9471_v2 = vpop.eup %9470 }
 0x6e4   :  { %v2024_v3 = vsel %vm1379_vm5, %v9471_v2, 0.0 }
 0x6e5   :  { %2025 = vadd.xlane.f32.xlu1 %v2024_v3 }
 0x6f6   :  { %2081 = vrot.lane.b32.xlu1 %v10122_v44, %s9547_s3 }
 0x6fa   :  { %2079 = vrot.lane.b32.xlu1 %v10122_v44, %s9548_s24 }
 0x772   :  { %v2026_v4 = vpop.xlane.xlu1 %2025 }
 0x773   :  { %9472 = vrcp.f32 %v2026_v4 }
 0x776   :  { %v2082_v7 = vpop.permute.xlu1 %2081 }
 0x777   :  { %v2087_v10 = vsel %vm1379_vm5, %v2082_v7, 0 }
 0x77a   :  { %v2080_v11 = vpop.permute.xlu1 %2079 }
 0x77d   :  { %v9473_v5 = vpop.eup %9472 }
 0x77e   :  { %v2028_v6 = vmul.f32 %v9473_v5, %v9471_v2 }
 0x780   :  { %v2029_v8 = vpack.c.bf16 %v2028_v6, %v2028_v6 }
 0x782   :  { %8768 = vmatmul.mubr.msk.bf16.vlgmr.msra.gmra.mrb[20].mxu1 %vm1379_vm5, %v2029_v8 }
 0x783   :  { %8772 = vmatpush3.bf16.xpose.msra.mxu1 %v2087_v10  ;;  %8773 = vmatprep.mubr.msk.bf16.mxu1 %vm9543_vm0, %v9542_v9 }
 0x784   :  { %8777 = vmatprep.subr.bf16.mxu1 %v9542_v9 }
 0x78a   :  { %8774 = vmatmul.mubr.msk.bf16.vlgmr.msra.gmra.mrb[24].mxu1 %vm1379_vm5, %v2080_v11 }
 0x78b   :  { %8779 = vmatprep.mubr.msk.bf16.mxu1 %vm9543_vm0, %v9542_v9 }
 0x855   :  { %v2072_v12 = vpop.f32.mrb[20].mxu1 }
 0x856   :  { %v8769_v13 = vpop.f32.mrb[21].mxu1  ;;  %v2078_v43 = vpack.c.bf16 %v2072_v12, %v2072_v12 }
 0x857   :  { %v2075_v14 = vpop.f32.mrb[22].mxu1 }
 0x858   :  { %v8770_v63 = vpop.f32.mrb[23].mxu1 }
 0x85d   :  { %v2123_v15 = vpop.f32.mrb[24].mxu1 }
 0x85e   :  { %v2129_v16 = vmul.f32 0.35355338, %v2123_v15  ;;  %v8775_v17 = vpop.f32.mrb[25].mxu1 }
 0x85f   :  { %v2126_v18 = vpop.f32.mrb[26].mxu1 }
 0x860   :  { %v8776_v19 = vpop.f32.mrb[27].mxu1  ;;  %v2130_v20 = vsel %vm1379_vm5, %v2129_v16, -inf }
 0x861   :  { %2131 = vmax.xlane.f32.xlu1 %v2130_v20  ;;  %v1616_v20 = vld [vmem:[%s11703_s10 + $0x68] sm:$0xf] }
 0x8ee   :  { %v2132_v21 = vpop.xlane.xlu1 %2131 }
 0x8ef   :  { %v2133_v22 = vsub.f32 %v2129_v16, %v2132_v21  ;;  %v2399_v21 = vsel %vm1383_vm3, %v1616_v20, 0  ;;  %v1627_v20 = vld [vmem:[%s11697_s4 + $0x48] sm:$0xff] }
 0x8f1   :  { %v2134_v23 = vmul.f32 1.442695, %v2133_v22 }
 0x8f3   :  { %9474 = vpow2.f32 %v2134_v23 }
 0x8fd   :  { %v9475_v24 = vpop.eup %9474 }
 0x8fe   :  { %v2136_v25 = vsel %vm1379_vm5, %v9475_v24, 0.0 }
 0x8ff   :  { %2137 = vadd.xlane.f32.xlu0 %v2136_v25 }
 0x915   :  { %2142 = vrot.lane.b32.xlu0 %v10122_v44, %s9549_s6 }
 0x919   :  { %2285 = vrot.lane.b32.xlu0 %v10122_v44, %s9550_s25 }
 0x91d   :  { %2283 = vrot.lane.b32.xlu0 %v10122_v44, %s9551_s26 }
 0x98c   :  { %v2138_v26 = vpop.xlane.xlu0 %2137 }
 0x98d   :  { %9476 = vrcp.f32 %v2138_v26 }
 0x990   :  { %v2143_v27 = vpop.permute.xlu0 %2142 }
 0x991   :  { %v2148_v28 = vsel %vm1383_vm3, %v2143_v27, 0 }
 0x992   :  { %8778 = vmatpush3.bf16.msra.mxu1 %v2148_v28 }
 0x993   :  { %8783 = vmatprep.subr.bf16.mxu1 %v9542_v9 }
 0x994   :  { %v2286_v45 = vpop.permute.xlu0 %2285 }
 0x995   :  { %v2291_v47 = vsel %vm1379_vm5, %v2286_v45, 0 }
 0x997   :  { %v9477_v29 = vpop.eup %9476 }
 0x998   :  { %v2140_v32 = vmul.f32 %v9477_v29, %v9475_v24  ;;  %v2284_v48 = vpop.permute.xlu0 %2283 }
 0x99a   :  { %v2141_v33 = vpack.c.bf16 %v2140_v32, %v2140_v32 }
 0x99c   :  { %8780 = vmatmul.mubr.msk.bf16.vlgmr.msra.gmra.mrb[28].mxu1 %vm1379_vm5, %v2141_v33 }
 0x99d   :  { %8784 = vmatpush3.bf16.msra.mxu1 %v2195_v34  ;;  %8785 = vmatprep.mubr.msk.bf16.mxu1 %vm9543_vm0, %v9542_v9 }
 0x99e   :  { %8789 = vmatprep.subr.bf16.mxu1 %v9542_v9 }
 0xa6f   :  { %v2184_v36 = vpop.f32.mrb[28].mxu1 }
 0xa70   :  { %v2190_v37 = vpack.c.bf16 %v2184_v36, %v2184_v36  ;;  %v8781_v39 = vpop.f32.mrb[29].mxu1 }
 0xa71   :  { %v2187_v41 = vpop.f32.mrb[30].mxu1 }
 0xa72   :  { %v8782_v42 = vpop.f32.mrb[31].mxu1  ;;  %8786 = vmatmul.mubr.msk.bf16.vlgmr.msra.gmra.mrb[32].mxu1 %vm1379_vm5, %v2190_v37 }
 0xa73   :  { %8790 = vmatpush3.bf16.msra.mxu1 %v2241_v40  ;;  %8791 = vmatprep.mubr.msk.bf16.mxu1 %vm9543_vm0, %v9542_v9 }
 0xa74   :  { %8795 = vmatprep.subr.bf16.mxu1 %v9542_v9 }
 0xa7a   :  { %8792 = vmatmul.mubr.msk.bf16.vlgmr.msra.gmra.mrb[36].mxu1 %vm1379_vm5, %v2078_v43 }
 0xa7b   :  { %8797 = vmatprep.mubr.msk.bf16.mxu1 %vm9543_vm0, %v9542_v9 }
 0xa7c   :  { %8796 = vmatpush3.bf16.xpose.msra.mxu1 %v2291_v47 }
 0xa7d   :  { %8807 = vmatprep.subr.bf16.mxu1 %v9542_v9 }
 0xa83   :  { %8798 = vmatmul.mubr.msk.bf16.vlgmr.msra.gmra.mrb[40].mxu1 %vm1379_vm5, %v2284_v48 }
 0xa84   :  { %8809 = vmatprep.mubr.msk.bf16.mxu1 %vm9543_vm0, %v9542_v9  ;;  %8808 = vmatpush3.bf16.msra.mxu1 %v2399_v21 }
 0xa85   :  { %8819 = vmatprep.subr.bf16.mxu1 %v9542_v9 }
 0xb45   :  { %v2231_v51 = vpop.f32.mrb[32].mxu1 }
 0xb46   :  { %v8787_v52 = vpop.f32.mrb[33].mxu1 }
 0xb47   :  { %v2234_v53 = vpop.f32.mrb[34].mxu1 }
 0xb48   :  { %v8788_v55 = vpop.f32.mrb[35].mxu1 }
 0xb4d   :  { %v2277_v54 = vpop.f32.mrb[36].mxu1 }
 0xb4e   :  { %v10184_v56 = vadd.f32 %v2277_v54, %v2231_v51  ;;  %v8793_v57 = vpop.f32.mrb[37].mxu1 }
 0xb4f   :  { %v2280_v58 = vpop.f32.mrb[38].mxu1 }
 0xb50   :  { %v8794_v59 = vpop.f32.mrb[39].mxu1 }
 0xb56   :  { %v2327_v60 = vpop.f32.mrb[40].mxu1 }
 0xb57   :  { %v2333_v1 = vmul.f32 0.35355338, %v2327_v60  ;;  %v8799_v2 = vpop.f32.mrb[41].mxu1 }
 0xb58   :  { %v2330_v3 = vpop.f32.mrb[42].mxu1  ;;  %v7893_v2 = vld [vmem:[%s11704_s11 + $0x4] ss:$0 sm:$0xff] }
 0xb59   :  { %v8800_v4 = vpop.f32.mrb[43].mxu1  ;;  %v2334_v5 = vsel %vm1379_vm5, %v2333_v1, -inf }
 0xb5a   :  { %2335 = vmax.xlane.f32.xlu1 %v2334_v5 }
 0xb6b   :  { %2346 = vrot.lane.b32.xlu1 %v10122_v44, %s9552_s0 }
 0xb6f   :  { %2444 = vrot.lane.b32.xlu1 %v10122_v44, %s9553_s2 }
 0xb73   :  { %2442 = vrot.lane.b32.xlu1 %v10122_v44, %s9554_s30 }
 0xbe7   :  { %v2336_v6 = vpop.xlane.xlu1 %2335 }
 0xbe8   :  { %v2337_v7 = vsub.f32 %v2333_v1, %v2336_v6 }
 0xbea   :  { %v2338_v8 = vmul.f32 1.442695, %v2337_v7 }
 0xbeb   :  { %v2347_v10 = vpop.permute.xlu1 %2346 }
 0xbec   :  { %9478 = vpow2.f32 %v2338_v8  ;;  %v2352_v11 = vsel %vm1383_vm3, %v2347_v10, 0  ;;  %v9510_v8 = vld [vmem:[#allocation2] sm:$0xff] }
 0xbed   :  { %8802 = vmatpush3.bf16.msra.mxu0 %v2352_v11 }
 0xbee   :  { %8813 = vmatprep.subr.bf16.mxu0 %v9542_v9 }
 0xbef   :  { %v2445_v16 = vpop.permute.xlu1 %2444 }
 0xbf0   :  { %v2450_v18 = vsel %vm1379_vm5, %v2445_v16, 0  ;;  %v1618_v16 = vld [vmem:[%s11697_s4] sm:$0xff] }
 0xbf3   :  { %v2443_v19 = vpop.permute.xlu1 %2442 }
 0xbf6   :  { %v9479_v12 = vpop.eup %9478 }
 0xbf7   :  { %v2340_v13 = vsel %vm1379_vm5, %v9479_v12, 0.0 }
 0xbf8   :  { %2341 = vadd.xlane.f32.xlu0 %v2340_v13 }
 0xc85   :  { %v2342_v14 = vpop.xlane.xlu0 %2341 }
 0xc86   :  { %9480 = vrcp.f32 %v2342_v14 }
 0xc90   :  { %v9481_v63 = vpop.eup %9480 }
 0xc91   :  { %v2344_v15 = vmul.f32 %v9481_v63, %v9479_v12 }
 0xc93   :  { %v2345_v17 = vpack.c.bf16 %v2344_v15, %v2344_v15 }
 0xc95   :  { %8804 = vmatmul.mubr.msk.bf16.vlgmr.msra.gmra.mrb[12].mxu0 %vm1379_vm5, %v2345_v17  ;;  %v1626_v17 = vld [vmem:[%s11697_s4 + $0x40] sm:$0xff] }
 0xc96   :  { %8814 = vmatpush3.bf16.xpose.msra.mxu0 %v2450_v18  ;;  %8815 = vmatprep.mubr.msk.bf16.mxu0 %vm9543_vm0, %v9542_v9  ;;  %v1619_v18 = vld [vmem:[%s11697_s4 + $0x8] sm:$0xff]  ;;  %v7897_v21 = vcombine.low %v1618_v16, %v1626_v17 }
 0xc97   :  { %8825 = vmatprep.subr.bf16.mxu0 %v9542_v9 }
 0xc9d   :  { %8816 = vmatmul.mubr.msk.bf16.vlgmr.msra.gmra.mrb[16].mxu0 %vm1379_vm5, %v2443_v19  ;;  %v7898_v19 = vcombine.high %v1618_v16, %v1626_v17  ;;  %v1624_v17 = vld [vmem:[%s11697_s4 + $0x30] sm:$0xff] }
 0xc9e   :  { %8827 = vmatprep.mubr.msk.bf16.mxu0 %vm9543_vm0, %v9542_v9 }
 0xd68   :  { %v2388_v22 = vpop.f32.mrb[12].mxu0 }
 0xd69   :  { %v2394_v23 = vpack.c.bf16 %v2388_v22, %v2388_v22  ;;  %v8805_v24 = vpop.f32.mrb[13].mxu0  ;;  %v7899_v22 = vcombine.low %v1619_v18, %v1627_v20 }
 0xd6a   :  { %v2391_v25 = vpop.f32.mrb[14].mxu0  ;;  %v1634_v24 = vld [vmem:[%s11697_s4 + $0x80] sm:$0xff] }
 0xd6b   :  { %v8806_v26 = vpop.f32.mrb[15].mxu0  ;;  %8810 = vmatmul.mubr.msk.bf16.vlgmr.msra.gmra.mrb[44].mxu1 %vm1379_vm5, %v2394_v23  ;;  %v7900_v23 = vcombine.high %v1619_v18, %v1627_v20  ;;  %v1642_v25 = vld [vmem:[%s11697_s4 + $0xc0] sm:$0xff]  ;;  %v1632_v18 = vld [vmem:[%s11697_s4 + $0x70] sm:$0xff]  ;;  %v1633_v20 = vld [vmem:[%s11697_s4 + $0x78] sm:$0xff] }
 0xd6c   :  { %8821 = vmatprep.mubr.msk.bf16.mxu1 %vm9543_vm0, %v9542_v9  ;;  %v1635_v26 = vld [vmem:[%s11697_s4 + $0x88] sm:$0xff] }
 0xd70   :  { %v2486_v27 = vpop.f32.mrb[16].mxu0 }
 0xd71   :  { %v2492_v28 = vmul.f32 0.35355338, %v2486_v27  ;;  %v8817_v29 = vpop.f32.mrb[17].mxu0  ;;  %v7914_v27 = vcombine.high %v1634_v24, %v1642_v25 }
 0xd72   :  { %v2489_v31 = vpop.f32.mrb[18].mxu0  ;;  %v7913_v29 = vcombine.low %v1634_v24, %v1642_v25  ;;  %v1640_v25 = vld [vmem:[%s11697_s4 + $0xb0] sm:$0xff] }
 0xd73   :  { %v8818_v32 = vpop.f32.mrb[19].mxu0  ;;  %v2493_v33 = vsel %vm1379_vm5, %v2492_v28, -inf }
 0xd74   :  { %2494 = vmax.xlane.f32.xlu1 %v2493_v33  ;;  %v1620_v33 = vld [vmem:[%s11697_s4 + $0x10] sm:$0xff] }
 0xe01   :  { %v2495_v34 = vpop.xlane.xlu1 %2494 }
 0xe02   :  { %v2496_v35 = vsub.f32 %v2492_v28, %v2495_v34  ;;  %v1643_v28 = vld [vmem:[%s11697_s4 + $0xc8] sm:$0xff]  ;;  %v1628_v34 = vld [vmem:[%s11697_s4 + $0x50] sm:$0xff] }
 0xe03   :  { %v7915_v31 = vcombine.low %v1635_v26, %v1643_v28  ;;  %v7916_v32 = vcombine.high %v1635_v26, %v1643_v28  ;;  %v1648_v26 = vld [vmem:[%s11697_s4 + $0xf0] sm:$0xff]  ;;  %v1649_v28 = vld [vmem:[%s11697_s4 + $0xf8] sm:$0xff] }
 0xe04   :  { %v2497_v36 = vmul.f32 1.442695, %v2496_v35  ;;  %v1621_v35 = vld [vmem:[%s11697_s4 + $0x18] sm:$0xff] }
 0xe06   :  { %9482 = vpow2.f32 %v2497_v36  ;;  %v7902_v36 = vcombine.high %v1620_v33, %v1628_v34 }
 0xe10   :  { %v9483_v37 = vpop.eup %9482 }
 0xe11   :  { %v2499_v39 = vsel %vm1379_vm5, %v9483_v37, 0.0 }
 0xe12   :  { %2500 = vadd.xlane.f32.xlu0 %v2499_v39  ;;  %v7901_v39 = vcombine.low %v1620_v33, %v1628_v34  ;;  %v7925_v34 = vcombine.low %v1640_v25, %v1648_v26 }
 0xe28   :  { %2505 = vrot.lane.b32.xlu0 %v10122_v44, %s9555_s15  ;;  %v1617_v44 = vld [vmem:[%s11703_s10 + $0x6c] sm:$0xf] }
 0xe29   :  { %v2558_v54 = vsel %vm1383_vm3, %v1617_v44, 0  ;;  %v1644_v44 = vld [vmem:[%s11697_s4 + $0xd0] sm:$0xff] }
 0xe2a   :  { %8826 = vmatpush3.bf16.msra.mxu0 %v2558_v54  ;;  %v1637_v54 = vld [vmem:[%s11697_s4 + $0x98] sm:$0xff] }
 0xe2b   :  { %2924 = vmatprep.subr.bf16.mxu0 %v7900_v23  ;;  %v7910_v23 = vcombine.high %v1624_v17, %v1632_v18 }
 0xe3e   :  { %v2435_v40 = vpop.f32.mrb[44].mxu1 }
 0xe3f   :  { %v2441_v41 = vadd.f32 %v2435_v40, %v10184_v56  ;;  %v8811_v42 = vpop.f32.mrb[45].mxu1 }
 0xe40   :  { %v2438_v43 = vpop.f32.mrb[46].mxu1 }
 0xe41   :  { %v8812_v45 = vpop.f32.mrb[47].mxu1 }
 0xe9f   :  { %v2501_v47 = vpop.xlane.xlu0 %2500 }
 0xea0   :  { %9484 = vrcp.f32 %v2501_v47 }
 0xea3   :  { %v2506_v48 = vpop.permute.xlu0 %2505 }
 0xea4   :  { %v2511_v51 = vsel %vm1383_vm3, %v2506_v48, 0  ;;  %v7894_v48 = vld [vmem:[%s11704_s11 + $0x5] ss:$0 sm:$0xff] }
 0xea5   :  { %8820 = vmatpush3.bf16.msra.mxu1 %v2511_v51 }
 0xea6   :  { %2883 = vmatprep.subr.bf16.mxu1 %v7898_v19  ;;  %v1625_v19 = vld [vmem:[%s11697_s4 + $0x38] sm:$0xff] }
 0xea7   :  { %v7912_v24 = vcombine.high %v1625_v19, %v1633_v20 }
 0xeaa   :  { %v9485_v52 = vpop.eup %9484 }
 0xeab   :  { %v2503_v53 = vmul.f32 %v9485_v52, %v9483_v37  ;;  %v1629_v37 = vld [vmem:[%s11697_s4 + $0x58] sm:$0xff]  ;;  %v7895_v52 = vld [vmem:[%s11704_s11 + $0x6] ss:$0 sm:$0xff] }
 0xeac   :  { %v7903_v40 = vcombine.low %v1621_v35, %v1629_v37 }
 0xead   :  { %v2504_v55 = vpack.c.bf16 %v2503_v53, %v2503_v53 }
 0xeaf   :  { %8822 = vmatmul.mubr.msk.bf16.vlgmr.msra.gmra.mrb[48].mxu1 %vm1379_vm5, %v2504_v55  ;;  %v1636_v55 = vld [vmem:[%s11697_s4 + $0x90] sm:$0xff] }
 0xeb0   :  { %2915 = vmatprep.mubr.bf16.mxu1 %v9544_v38  ;;  %2884 = vmatpush1.bf16.msra.mxu1 %v7897_v21 }
 0xeb1   :  { %2885 = vmatprep.subr.bf16.mxu1 %v7914_v27  ;;  %v1641_v27 = vld [vmem:[%s11697_s4 + $0xb8] sm:$0xff] }
 0xeb2   :  { %v7928_v33 = vcombine.high %v1641_v27, %v1649_v28 }
 0xeb4   :  { %2886 = vmatpush1.bf16.msra.mxu1 %v7913_v29  ;;  %v7909_v29 = vcombine.low %v1624_v17, %v1632_v18 }
 0xeb5   :  { %2965 = vmatprep.subr.bf16.mxu1 %v7902_v36  ;;  %v9188_v36 = vld [vmem:[%s11703_s10 + $0xd0] sm:$0xff]  }
 0xf82   :  { %v2547_v56 = vpop.f32.mrb[48].mxu1 }
 0xf83   :  { %v2553_v57 = vpack.c.bf16 %v2547_v56, %v2547_v56  ;;  %v8823_v58 = vpop.f32.mrb[49].mxu1  ;;  %v1645_v56 = vld [vmem:[%s11697_s4 + $0xd8] sm:$0xff] }
 0xf84   :  { %v2550_v59 = vpop.f32.mrb[50].mxu1 }
 0xf85   :  { %v8824_v60 = vpop.f32.mrb[51].mxu1  ;;  %8828 = vmatmul.mubr.msk.bf16.vlgmr.msra.gmra.mrb[20].mxu0 %vm1379_vm5, %v2553_v57  ;;  %v7918_v59 = vcombine.high %v1636_v55, %v1644_v44 }
 0xf86   :  { %2956 = vmatprep.mubr.bf16.mxu0 %v9544_v38  ;;  %2925 = vmatpush1.bf16.msra.mxu0 %v7899_v22  ;;  %v7920_v60 = vcombine.high %v1637_v54, %v1645_v56 }
 0xf87   :  { %2926 = vmatprep.subr.bf16.mxu0 %v7916_v32  ;;  %v7926_v32 = vcombine.high %v1640_v25, %v1648_v26 }
 0xf8a   :  { %2927 = vmatpush1.bf16.msra.mxu0 %v7915_v31  ;;  %v7911_v31 = vcombine.low %v1625_v19, %v1633_v20 }
0x1058   :  { %v2594_v1 = vpop.f32.mrb[20].mxu0 }
0x1059   :  { %v2600_v3 = vadd.f32 %v2594_v1, %v2441_v41  ;;  %v8829_v4 = vpop.f32.mrb[21].mxu0  ;;  %v7904_v41 = vcombine.high %v1621_v35, %v1629_v37  ;;  %v1622_v1 = vld [vmem:[%s11697_s4 + $0x20] sm:$0xff]  ;;  %v7927_v35 = vcombine.low %v1641_v27, %v1649_v28  ;;  %v9189_v37 = vld [vmem:[%s11703_s10 + $0x150] sm:$0xff]  }
0x105a   :  { %v2597_v5 = vpop.f32.mrb[22].mxu0  ;;  %v1631_v4 = vld [vmem:[%s11697_s4 + $0x68] sm:$0xff] }
0x105b   :  { %v2606_v6 = vadd.f32 %v7893_v2, %v2600_v3  ;;  %v8830_v7 = vpop.f32.mrb[23].mxu0  ;;  %3006 = vmatprep.subr.bf16.mxu0 %v7904_v41  ;;  %v1630_v2 = vld [vmem:[%s11697_s4 + $0x60] sm:$0xff]  ;;  %v1623_v3 = vld [vmem:[%s11697_s4 + $0x28] sm:$0xff]  ;;  %v7917_v5 = vcombine.low %v1636_v55, %v1644_v44  ;;  %v9192_v41 = vld [vmem:[%s11703_s10 + $0xd8] sm:$0xff]  }
0x105c   :  { %v7906_v7 = vcombine.high %v1622_v1, %v1630_v2  ;;  %v9201_v55 = vld [vmem:[%s11703_s10 + $0x168] sm:$0xff]  }
0x105d   :  { %v2607_v10 = vadd.f32 %v9510_v8, %v2606_v6  ;;  %v7919_v6 = vcombine.low %v1637_v54, %v1645_v56  ;;  %v7908_v8 = vcombine.high %v1623_v3, %v1631_v4  ;;  %v9202_v44 = vld [vmem:[%s11703_s10 + $0xa8] sm:$0xff]   ;;  %v9204_v56 = vld [vmem:[%s11703_s10 + $0xf0] sm:$0xff]  }
0x105e   :  { %v9203_v54 = vld [vmem:[%s11703_s10 + $0x128] sm:$0xff]  }
0x105f   :  { %v2610_v11 = vsel %vm508_vm2, %v2607_v10, 0.0 }
0x1060   :  { %2611 = vadd.xlane.f32.xlu0 %v2610_v11  ;;  %v1646_v11 = vld [vmem:[%s11697_s4 + $0xe0] sm:$0xff] }
0x10ed   :  { %v2612_v12 = vpop.xlane.xlu0 %2611 }
0x10ee   :  { %v2614_v13 = vmul.f32 0.03125, %v2612_v12  ;;  %v1639_v12 = vld [vmem:[%s11697_s4 + $0xa8] sm:$0xff] }
0x10f0   :  { %v2615_v14 = vsub.f32 %v2607_v10, %v2614_v13  ;;  %v1638_v10 = vld [vmem:[%s11697_s4 + $0xa0] sm:$0xff]  ;;  %v1647_v13 = vld [vmem:[%s11697_s4 + $0xe8] sm:$0xff] }
0x10f1   :  { %v7924_v16 = vcombine.high %v1639_v12, %v1647_v13  ;;  %v7921_v21 = vcombine.low %v1638_v10, %v1646_v11  ;;  %v7923_v22 = vcombine.low %v1639_v12, %v1647_v13  ;;  %v9218_v12 = vld [vmem:[%s11703_s10 + $0xc8] sm:$0xff]  }
0x10f2   :  { %v2616_v63 = vmul.f32 %v2615_v14, %v2615_v14  ;;  %v9219_v13 = vld [vmem:[%s11703_s10 + $0x148] sm:$0xff]  }
0x10f4   :  { %v2617_v15 = vsel %vm508_vm2, %v2616_v63, 0.0  ;;  %v7907_v63 = vcombine.low %v1623_v3, %v1631_v4  ;;  %v9210_v3 = vld [vmem:[%s11703_s10 + $0xb8] sm:$0xff]  }
0x10f5   :  { %2618 = vadd.xlane.f32.xlu1 %v2617_v15  ;;  %v7922_v15 = vcombine.high %v1638_v10, %v1646_v11  ;;  %v9211_v4 = vld [vmem:[%s11703_s10 + $0x138] sm:$0xff]   ;;  %v9216_v10 = vld [vmem:[%s11703_s10 + $0x108] sm:$0xff]  }
0x10f6   :  { %v9217_v11 = vld [vmem:[%s11703_s10 + $0x188] sm:$0xff]  }
0x1182   :  { %v2619_v42 = vpop.xlane.xlu1 %2618 }
0x1183   :  { %v2620_v43 = vmul.f32 0.03125, %v2619_v42  ;;  %v9193_v42 = vld [vmem:[%s11703_s10 + $0x158] sm:$0xff]  }
0x1185   :  { %v2621_v45 = vadd.f32 1e-05, %v2620_v43  ;;  %v9194_v43 = vld [vmem:[%s11703_s10 + $0x98] sm:$0xff]  }
0x1187   :  { %9486 = vrsqrt.f32 %v2621_v45  ;;  %v9195_v45 = vld [vmem:[%s11703_s10 + $0x118] sm:$0xff]  }
0x1191   :  { %v9487_v47 = vpop.eup %9486 }
0x1192   :  { %v2623_v51 = vmul.f32 %v9487_v47, %v2615_v14  ;;  %v7905_v14 = vcombine.low %v1622_v1, %v1630_v2  ;;  %v9196_v47 = vld [vmem:[%s11703_s10 + $0xe0] sm:$0xff]   ;;  %v9208_v1 = vld [vmem:[%s11703_s10 + $0xf8] sm:$0xff]  }
0x1193   :  { %v9209_v2 = vld [vmem:[%s11703_s10 + $0x178] sm:$0xff]  }
0x1194   :  { %v2628_v53 = vmul.f32 %v7894_v48, %v2623_v51  ;;  %v9197_v48 = vld [vmem:[%s11703_s10 + $0x160] sm:$0xff]  }
0x1195   :  { %v9198_v51 = vld [vmem:[%s11703_s10 + $0xa0] sm:$0xff]  }
0x1196   :  { %v10285_v57 = vadd.f32 %v7895_v52, %v2628_v53  ;;  %v9199_v52 = vld [vmem:[%s11703_s10 + $0x120] sm:$0xff]   ;;  %v9200_v53 = vld [vmem:[%s11703_s10 + $0xe8] sm:$0xff]  }
0x1198   :  { %v10289_v58 = vpack.c.bf16 %v10285_v57, %v10285_v57 }
0x119a   :  { %7929 = vmatmul.mubr.msk.bf16.vlgmr.msra.gmra.mrb[52].mxu1 %vm508_vm2, %v10289_v58  ;;  %7930 = vmatmul.mubr.msk.bf16.vlgmr.msra.gmra.mrb[24].mxu0 %vm508_vm2, %v10289_v58 }
0x119b   :  { %2966 = vmatpush1.bf16.msra.mxu1 %v7901_v39  ;;  %3007 = vmatpush1.bf16.msra.mxu0 %v7903_v40  ;;  %v9190_v39 = vld [vmem:[%s11703_s10 + $0x90] sm:$0xff]  }
0x119c   :  { %2967 = vmatprep.subr.bf16.mxu1 %v7918_v59  ;;  %3008 = vmatprep.subr.bf16.mxu0 %v7920_v60  ;;  %v9191_v40 = vld [vmem:[%s11703_s10 + $0x110] sm:$0xff]  }
0x119d   :  { %2997 = vmatprep.mubr.bf16.mxu1 %v9544_v38  ;;  %3038 = vmatprep.mubr.bf16.mxu0 %v9544_v38  ;;  %v9206_v59 = vld [vmem:[%s11703_s10 + $0xb0] sm:$0xff]  }
0x119e   :  { %v9207_v60 = vld [vmem:[%s11703_s10 + $0x130] sm:$0xff]  }
0x119f   :  { %2968 = vmatpush1.bf16.msra.mxu1 %v7917_v5  ;;  %3009 = vmatpush1.bf16.msra.mxu0 %v7919_v6  ;;  %v9212_v5 = vld [vmem:[%s11703_s10 + $0x100] sm:$0xff]  }
0x11a0   :  { %3047 = vmatprep.subr.bf16.mxu1 %v7906_v7  ;;  %3088 = vmatprep.subr.bf16.mxu0 %v7908_v8  ;;  %v9213_v6 = vld [vmem:[%s11703_s10 + $0x180] sm:$0xff]  }
0x11a1   :  { %v9214_v7 = vld [vmem:[%s11703_s10 + $0xc0] sm:$0xff]  }
0x11a2   :  { %7931 = vmatmul.mubr.msk.bf16.vlgmr.msra.gmra.mrb[56].mxu1 %vm508_vm2, %v10289_v58  ;;  %7932 = vmatmul.mubr.msk.bf16.vlgmr.msra.gmra.mrb[28].mxu0 %vm508_vm2, %v10289_v58  ;;  %v9215_v8 = vld [vmem:[%s11703_s10 + $0x140] sm:$0xff]  }
0x11a3   :  { %3048 = vmatpush1.bf16.msra.mxu1 %v7905_v14  ;;  %3089 = vmatpush1.bf16.msra.mxu0 %v7907_v63  ;;  %v9220_v14 = vld [vmem:[%s11703_s10 + $0x1d0] sm:$0xff]  }
0x11a4   :  { %3049 = vmatprep.subr.bf16.mxu1 %v7922_v15  ;;  %3090 = vmatprep.subr.bf16.mxu0 %v7924_v16  ;;  %v9221_v63 = vld [vmem:[%s11703_s10 + $0x250] sm:$0xff]   ;;  %v10466_v15 = vld [vmem:[%s11698_s5] ss:$2 sm:$0xff] }
0x11a5   :  { %3079 = vmatprep.mubr.bf16.mxu1 %v9544_v38  ;;  %3120 = vmatprep.mubr.bf16.mxu0 %v9544_v38  ;;  %v2643_v16 = vrot.slane %v10466_v15, %v9770_v49  ;;  %v2651_v17 = vrot.slane %v10466_v15, %v10074_v62  ;;  %v2647_v18 = vrot.slane %v10466_v15, %v9773_v50 }
0x11a6   :  { %v2655_v19 = vrot.slane %v10466_v15, %v10077_v0 }
0x11a7   :  { %3050 = vmatpush1.bf16.msra.mxu1 %v7921_v21  ;;  %3091 = vmatpush1.bf16.msra.mxu0 %v7923_v22 }
0x11a8   :  { %3129 = vmatprep.subr.bf16.mxu1 %v7910_v23  ;;  %3170 = vmatprep.subr.bf16.mxu0 %v7912_v24 }
0x11aa   :  { %7933 = vmatmul.mubr.msk.bf16.vlgmr.msra.gmra.mrb[60].mxu1 %vm508_vm2, %v10289_v58  ;;  %7934 = vmatmul.mubr.msk.bf16.vlgmr.msra.gmra.mrb[32].mxu0 %vm508_vm2, %v10289_v58 }
0x11ab   :  { %3130 = vmatpush1.bf16.msra.mxu1 %v7909_v29  ;;  %3171 = vmatpush1.bf16.msra.mxu0 %v7911_v31  ;;  %v10477_v31 = vsub.s32 5, %v9761_v46 }
0x11ac   :  { %3131 = vmatprep.subr.bf16.mxu1 %v7926_v32  ;;  %3172 = vmatprep.subr.bf16.mxu0 %v7928_v33  ;;  %v10480_v32 = vsub.s32 7, %v9761_v46 }
0x11ad   :  { %3161 = vmatprep.mubr.bf16.mxu1 %v9544_v38  ;;  %3202 = vmatprep.mubr.bf16.mxu0 %v9544_v38 }
0x11af   :  { %3132 = vmatpush1.bf16.msra.mxu1 %v7925_v34  ;;  %3173 = vmatpush1.bf16.msra.mxu0 %v7927_v35 }
0x11b0   :  { %8328 = vmatprep.subr.bf16.mxu1 %v9188_v36  ;;  %8350 = vmatprep.subr.bf16.mxu0 %v9189_v37 }
0x11b2   :  { %7935 = vmatmul.mubr.msk.bf16.vlgmr.msra.gmra.mrb[64].mxu1 %vm508_vm2, %v10289_v58  ;;  %7936 = vmatmul.mubr.msk.bf16.vlgmr.msra.gmra.mrb[36].mxu0 %vm508_vm2, %v10289_v58  ;;  %v9205_v58 = vld [vmem:[%s11703_s10 + $0x170] sm:$0xff]  }
0x11b3   :  { %8329 = vmatpush3.bf16.msra.mxu1 %v9190_v39  ;;  %8351 = vmatpush3.bf16.msra.mxu0 %v9191_v40 }
0x11b4   :  { %8330 = vmatprep.subr.bf16.mxu1 %v9192_v41  ;;  %8352 = vmatprep.subr.bf16.mxu0 %v9193_v42  ;;  %v2663_v42 = vrot.slane %v10466_v15, %v10477_v31 }
0x11b7   :  { %8331 = vmatpush3.bf16.msra.mxu1 %v9194_v43  ;;  %8353 = vmatpush3.bf16.msra.mxu0 %v9195_v45  ;;  %v2671_v43 = vrot.slane %v10466_v15, %v10480_v32  ;;  %v9222_v45 = vld [vmem:[%s11703_s10 + $0x190] sm:$0xff]  }
0x11b8   :  { %8332 = vmatprep.subr.bf16.mxu1 %v9196_v47  ;;  %8354 = vmatprep.subr.bf16.mxu0 %v9197_v48  ;;  %v9223_v47 = vld [vmem:[%s11703_s10 + $0x210] sm:$0xff]  }
0x11bb   :  { %8333 = vmatpush3.bf16.msra.mxu1 %v9198_v51  ;;  %8355 = vmatpush3.bf16.msra.mxu0 %v9199_v52  ;;  %v9224_v52 = vld [vmem:[%s11703_s10 + $0x1d8] sm:$0xff]  }
0x11bc   :  { %8334 = vmatprep.subr.bf16.mxu1 %v9200_v53  ;;  %8356 = vmatprep.subr.bf16.mxu0 %v9201_v55  ;;  %v9225_v53 = vld [vmem:[%s11703_s10 + $0x258] sm:$0xff]  }
0x11bf   :  { %8335 = vmatpush3.bf16.msra.mxu1 %v9202_v44  ;;  %8357 = vmatpush3.bf16.msra.mxu0 %v9203_v54 }
0x11c0   :  { %8336 = vmatprep.subr.bf16.mxu1 %v9204_v56  ;;  %8358 = vmatprep.subr.bf16.mxu0 %v9205_v58 }
0x11c3   :  { %8337 = vmatpush3.bf16.msra.mxu1 %v9206_v59  ;;  %8359 = vmatpush3.bf16.msra.mxu0 %v9207_v60 }
0x11c4   :  { %8338 = vmatprep.subr.bf16.mxu1 %v9208_v1  ;;  %8360 = vmatprep.subr.bf16.mxu0 %v9209_v2  ;;  %v9226_v2 = vld [vmem:[%s11703_s10 + $0x198] sm:$0xff]  }
0x11c7   :  { %8339 = vmatpush3.bf16.msra.mxu1 %v9210_v3  ;;  %8361 = vmatpush3.bf16.msra.mxu0 %v9211_v4  ;;  %v9227_v3 = vld [vmem:[%s11703_s10 + $0x218] sm:$0xff]  }
0x11c8   :  { %8340 = vmatprep.subr.bf16.mxu1 %v9212_v5  ;;  %8362 = vmatprep.subr.bf16.mxu0 %v9213_v6  ;;  %v9228_v6 = vld [vmem:[%s11703_s10 + $0x1e0] sm:$0xff]  }
0x11cb   :  { %8341 = vmatpush3.bf16.msra.mxu1 %v9214_v7  ;;  %8363 = vmatpush3.bf16.msra.mxu0 %v9215_v8  ;;  %v9229_v7 = vld [vmem:[%s11703_s10 + $0x260] sm:$0xff]  }
0x11cc   :  { %8342 = vmatprep.subr.bf16.mxu1 %v9216_v10  ;;  %8364 = vmatprep.subr.bf16.mxu0 %v9217_v11 }
0x11cf   :  { %8343 = vmatpush3.bf16.msra.mxu1 %v9218_v12  ;;  %8365 = vmatpush3.bf16.msra.mxu0 %v9219_v13  ;;  %v9230_v13 = vld [vmem:[%s11703_s10 + $0x1a0] sm:$0xff]  }
0x11d0   :  { %8372 = vmatprep.subr.bf16.mxu1 %v9220_v14  ;;  %8394 = vmatprep.subr.bf16.mxu0 %v9221_v63  ;;  %v9231_v14 = vld [vmem:[%s11703_s10 + $0x220] sm:$0xff]   ;;  %v9232_v63 = vld [vmem:[%s11703_s10 + $0x1e8] sm:$0xff]  }
0x126d   :  { %v2917_v20 = vpop.f32.mrb[52].mxu1  ;;  %v2958_v21 = vpop.f32.mrb[24].mxu0 }
0x126e   :  { %v2918_v22 = vadd.f32 %v2917_v20, %v2643_v16  ;;  %v2959_v23 = vadd.f32 %v2958_v21, %v2651_v17  ;;  %v2919_v24 = vpop.f32.mrb[53].mxu1  ;;  %v2960_v25 = vpop.f32.mrb[25].mxu0  ;;  %v9233_v16 = vld [vmem:[%s11703_s10 + $0x268] sm:$0xff]  }
0x126f   :  { %v2920_v26 = vadd.f32 %v2919_v24, %v2647_v18  ;;  %v2961_v27 = vadd.f32 %v2960_v25, %v2655_v19  ;;  %v2921_v28 = vpop.f32.mrb[54].mxu1  ;;  %v2962_v29 = vpop.f32.mrb[26].mxu0  ;;  %v9235_v24 = vld [vmem:[%s11703_s10 + $0x228] sm:$0xff]   ;;  %v10537_v25 = vsub.s32 6, %v9761_v46 }
0x1270   :  { %v3211_v33 = vmax.f32 %v2918_v22, 0.0  ;;  %v3213_v34 = vmax.f32 %v2959_v23, 0.0  ;;  %v2922_v35 = vpop.f32.mrb[55].mxu1  ;;  %v2963_v36 = vpop.f32.mrb[27].mxu0  ;;  %v9234_v23 = vld [vmem:[%s11703_s10 + $0x1a8] sm:$0xff]   ;;  %v9236_v28 = vld [vmem:[%s11703_s10 + $0x1f0] sm:$0xff]  }
0x1271   :  { %v3212_v37 = vmax.f32 %v2920_v26, 0.0  ;;  %v3214_v39 = vmax.f32 %v2961_v27, 0.0  ;;  %v9237_v29 = vld [vmem:[%s11703_s10 + $0x270] sm:$0xff]  }
0x1272   :  { %v3227_v48 = vpack.c.bf16 %v3211_v33, %v3211_v33  ;;  %v3229_v51 = vpack.c.bf16 %v3213_v34, %v3213_v34  ;;  %v10548_v33 = vld [vmem:[%s11698_s5 + $0x10] ss:$2 sm:$0xff] }
0x1273   :  { %v3228_v40 = vpack.c.bf16 %v3212_v37, %v3212_v37  ;;  %v3230_v41 = vpack.c.bf16 %v3214_v39, %v3214_v39  ;;  %v2699_v34 = vrot.slane %v10548_v33, %v10537_v25  ;;  %v9238_v35 = vld [vmem:[%s11703_s10 + $0x1b0] sm:$0xff]   ;;  %v10559_v37 = vsub.s32 4, %v9761_v46  ;;  %v9240_v39 = vld [vmem:[%s11703_s10 + $0x1f8] sm:$0xff]  }
0x1274   :  { %v9239_v36 = vld [vmem:[%s11703_s10 + $0x230] sm:$0xff]  }
0x1275   :  { %v10498_v55 = vpop.f32.mrb[56].mxu1  ;;  %v10500_v44 = vpop.f32.mrb[28].mxu0  ;;  %4048 = vmatprep.mubr.bf16.mxu1 %v3228_v40  ;;  %4088 = vmatprep.mubr.bf16.mxu0 %v3230_v41  ;;  %v9241_v40 = vld [vmem:[%s11703_s10 + $0x278] sm:$0xff]  }
0x1276   :  { %v3001_v54 = vpop.f32.mrb[57].mxu1  ;;  %v3042_v56 = vpop.f32.mrb[29].mxu0  ;;  %4049 = vmatmul.mubr.bf16.vlgmr.msra.gmra.mrb[68].mxu1 %v3227_v48  ;;  %4089 = vmatmul.mubr.bf16.vlgmr.msra.gmra.mrb[40].mxu0 %v3229_v51  ;;  %v9242_v51 = vld [vmem:[%s11703_s10 + $0x1b8] sm:$0xff]  }
0x1277   :  { %v3002_v58 = vadd.f32 %v3001_v54, %v2663_v42  ;;  %v3043_v59 = vadd.f32 %v3042_v56, %v2671_v43  ;;  %8373 = vmatpush3.bf16.msra.mxu1 %v9222_v45  ;;  %8395 = vmatpush3.bf16.msra.mxu0 %v9223_v47  ;;  %v3003_v60 = vpop.f32.mrb[58].mxu1  ;;  %v3044_v1 = vpop.f32.mrb[30].mxu0  ;;  %v2667_v54 = vrot.slane %v10466_v15, %v10537_v25 }
0x1278   :  { %v3004_v4 = vpop.f32.mrb[59].mxu1  ;;  %v3045_v5 = vpop.f32.mrb[31].mxu0  ;;  %8374 = vmatprep.subr.bf16.mxu1 %v9224_v52  ;;  %8396 = vmatprep.subr.bf16.mxu0 %v9225_v53  ;;  %v9243_v52 = vld [vmem:[%s11703_s10 + $0x238] sm:$0xff]   ;;  %v2659_v53 = vrot.slane %v10466_v15, %v10559_v37  ;;  %v9245_v60 = vld [vmem:[%s11703_s10 + $0x280] sm:$0xff]   ;;  %v2679_v1 = vrot.slane %v10548_v33, %v9773_v50 }
0x1279   :  { %v3216_v8 = vmax.f32 %v3002_v58, 0.0  ;;  %v3218_v10 = vmax.f32 %v3043_v59, 0.0  ;;  %v9244_v59 = vld [vmem:[%s11703_s10 + $0x200] sm:$0xff]   ;;  %v3041_v5 = vadd.f32 %v10500_v44, %v2667_v54  ;;  %v9251_v44 = vld [vmem:[%s11703_s10 + $0x248] sm:$0xff]   ;;  %v9271_v54 = vld [vmem:[%s11703_s10 + $0x330] sm:$0xff]  }
0x127a   :  { %v9246_v15 = vld [vmem:[%s11703_s10 + $0x1c0] sm:$0xff]   ;;  %v3000_v4 = vadd.f32 %v10498_v55, %v2659_v53  ;;  %v9250_v55 = vld [vmem:[%s11703_s10 + $0x1c8] sm:$0xff]   ;;  %v9270_v53 = vld [vmem:[%s11703_s10 + $0x2b0] sm:$0xff]  }
0x127b   :  { %v3232_v11 = vpack.c.bf16 %v3216_v8, %v3216_v8  ;;  %v3234_v12 = vpack.c.bf16 %v3218_v10, %v3218_v10  ;;  %8375 = vmatpush3.bf16.msra.mxu1 %v9226_v2  ;;  %8397 = vmatpush3.bf16.msra.mxu0 %v9227_v3  ;;  %v2687_v2 = vrot.slane %v10548_v33, %v10077_v0  ;;  %v9247_v3 = vld [vmem:[%s11703_s10 + $0x240] sm:$0xff]  }
0x127c   :  { %8376 = vmatprep.subr.bf16.mxu1 %v9228_v6  ;;  %8398 = vmatprep.subr.bf16.mxu0 %v9229_v7  ;;  %v9248_v6 = vld [vmem:[%s11703_s10 + $0x208] sm:$0xff]  }
0x127d   :  { %v10526_v17 = vpop.f32.mrb[60].mxu1  ;;  %v10528_v18 = vpop.f32.mrb[32].mxu0  ;;  %4128 = vmatprep.mubr.bf16.mxu1 %v3232_v11  ;;  %4168 = vmatprep.mubr.bf16.mxu0 %v3234_v12  ;;  %v9249_v7 = vld [vmem:[%s11703_s10 + $0x288] sm:$0xff]   ;;  %v3215_v11 = vmax.f32 %v3000_v4, 0.0  ;;  %v3217_v12 = vmax.f32 %v3041_v5, 0.0  ;;  %v2695_v4 = vrot.slane %v10548_v33, %v10477_v31  ;;  %v2703_v5 = vrot.slane %v10548_v33, %v10480_v32 }
0x127e   :  { %v3083_v19 = vpop.f32.mrb[61].mxu1  ;;  %v3124_v20 = vpop.f32.mrb[33].mxu0 }
0x127f   :  { %8377 = vmatpush3.bf16.msra.mxu1 %v9230_v13  ;;  %8399 = vmatpush3.bf16.msra.mxu0 %v9231_v14  ;;  %v3085_v21 = vpop.f32.mrb[62].mxu1  ;;  %v3126_v22 = vpop.f32.mrb[34].mxu0  ;;  %v3084_v8 = vadd.f32 %v3083_v19, %v2679_v1  ;;  %v3125_v10 = vadd.f32 %v3124_v20, %v2687_v2  ;;  %v9252_v13 = vld [vmem:[%s11703_s10 + $0x2d0] sm:$0xff]   ;;  %v3231_v20 = vpack.c.bf16 %v3215_v11, %v3215_v11  ;;  %v9275_v1 = vld [vmem:[%s11703_s10 + $0x338] sm:$0xff]   ;;  %v9276_v2 = vld [vmem:[%s11703_s10 + $0x300] sm:$0xff]  }
0x1280   :  { %v3086_v26 = vpop.f32.mrb[63].mxu1  ;;  %v3127_v27 = vpop.f32.mrb[35].mxu0  ;;  %8378 = vmatprep.subr.bf16.mxu1 %v9232_v63  ;;  %8400 = vmatprep.subr.bf16.mxu0 %v9233_v16  ;;  %v9253_v14 = vld [vmem:[%s11703_s10 + $0x350] sm:$0xff]   ;;  %v3233_v21 = vpack.c.bf16 %v3217_v12, %v3217_v12  ;;  %v9282_v12 = vld [vmem:[%s11703_s10 + $0x2c8] sm:$0xff]  }
0x1281   :  { %v3220_v63 = vmax.f32 %v3084_v8, 0.0  ;;  %v3222_v16 = vmax.f32 %v3125_v10, 0.0  ;;  %v9254_v19 = vld [vmem:[%s11703_s10 + $0x290] sm:$0xff]   ;;  %v9257_v26 = vld [vmem:[%s11703_s10 + $0x358] sm:$0xff]   ;;  %v9279_v8 = vld [vmem:[%s11703_s10 + $0x340] sm:$0xff]  }
0x1282   :  { %v9255_v22 = vld [vmem:[%s11703_s10 + $0x310] sm:$0xff]   ;;  %v9280_v10 = vld [vmem:[%s11703_s10 + $0x308] sm:$0xff]  }
0x1283   :  { %8379 = vmatpush3.bf16.msra.mxu1 %v9234_v23  ;;  %8401 = vmatpush3.bf16.msra.mxu0 %v9235_v24  ;;  %v3236_v23 = vpack.c.bf16 %v3220_v63, %v3220_v63  ;;  %v9256_v24 = vld [vmem:[%s11703_s10 + $0x2d8] sm:$0xff]   ;;  %v3238_v27 = vpack.c.bf16 %v3222_v16, %v3222_v16 }
0x1284   :  { %8380 = vmatprep.subr.bf16.mxu1 %v9236_v28  ;;  %8402 = vmatprep.subr.bf16.mxu0 %v9237_v29  ;;  %v9258_v28 = vld [vmem:[%s11703_s10 + $0x298] sm:$0xff]  }
0x1285   :  { %v10567_v41 = vpop.f32.mrb[64].mxu1  ;;  %v3204_v42 = vpop.f32.mrb[36].mxu0  ;;  %v9259_v29 = vld [vmem:[%s11703_s10 + $0x318] sm:$0xff]  }
0x1286   :  { %v10569_v43 = vadd.f32 %v3204_v42, %v2699_v34  ;;  %v10571_v45 = vpop.f32.mrb[65].mxu1  ;;  %v10573_v47 = vpop.f32.mrb[37].mxu0  ;;  %v9260_v34 = vld [vmem:[%s11703_s10 + $0x2e0] sm:$0xff]   ;;  %v9265_v42 = vld [vmem:[%s11703_s10 + $0x368] sm:$0xff]  }
0x1287   :  { %8381 = vmatpush3.bf16.msra.mxu1 %v9238_v35  ;;  %8403 = vmatpush3.bf16.msra.mxu0 %v9239_v36  ;;  %v3167_v46 = vpop.f32.mrb[66].mxu1  ;;  %v3208_v48 = vpop.f32.mrb[38].mxu0  ;;  %v9261_v35 = vld [vmem:[%s11703_s10 + $0x360] sm:$0xff]   ;;  %v3166_v11 = vadd.f32 %v10571_v45, %v2695_v4  ;;  %v9285_v45 = vld [vmem:[%s11703_s10 + $0x450] sm:$0xff]  }
0x1288   :  { %v3168_v56 = vpop.f32.mrb[67].mxu1  ;;  %v3209_v58 = vpop.f32.mrb[39].mxu0  ;;  %8382 = vmatprep.subr.bf16.mxu1 %v9240_v39  ;;  %8404 = vmatprep.subr.bf16.mxu0 %v9241_v40  ;;  %v9262_v36 = vld [vmem:[%s11703_s10 + $0x2a0] sm:$0xff]   ;;  %v9264_v40 = vld [vmem:[%s11703_s10 + $0x2e8] sm:$0xff]  }
0x1289   :  { %v9263_v39 = vld [vmem:[%s11703_s10 + $0x320] sm:$0xff]   ;;  %v9266_v46 = vld [vmem:[%s11703_s10 + $0x2a8] sm:$0xff]   ;;  %v9272_v56 = vld [vmem:[%s11703_s10 + $0x2f8] sm:$0xff]  }
0x128a   :  { %v9267_v48 = vld [vmem:[%s11703_s10 + $0x328] sm:$0xff]   ;;  %v9273_v58 = vld [vmem:[%s11703_s10 + $0x378] sm:$0xff]   ;;  %v9311_v4 = vld [vmem:[%s11703_s10 + $0x440] sm:$0xff]  }
0x128b   :  { %8383 = vmatpush3.bf16.msra.mxu1 %v9242_v51  ;;  %8405 = vmatpush3.bf16.msra.mxu0 %v9243_v52  ;;  %v9268_v51 = vld [vmem:[%s11703_s10 + $0x2f0] sm:$0xff]  }
0x128c   :  { %8384 = vmatprep.subr.bf16.mxu1 %v9244_v59  ;;  %8406 = vmatprep.subr.bf16.mxu0 %v9245_v60  ;;  %v9269_v52 = vld [vmem:[%s11703_s10 + $0x370] sm:$0xff]   ;;  %v9274_v59 = vld [vmem:[%s11703_s10 + $0x2b8] sm:$0xff]   ;;  %v2675_v60 = vrot.slane %v10548_v33, %v9770_v49 }
0x128f   :  { %8385 = vmatpush3.bf16.msra.mxu1 %v9246_v15  ;;  %8407 = vmatpush3.bf16.msra.mxu0 %v9247_v3  ;;  %v2683_v15 = vrot.slane %v10548_v33, %v10074_v62  ;;  %v9277_v3 = vld [vmem:[%s11703_s10 + $0x380] sm:$0xff]  }
0x1290   :  { %8386 = vmatprep.subr.bf16.mxu1 %v9248_v6  ;;  %8408 = vmatprep.subr.bf16.mxu0 %v9249_v7  ;;  %v9278_v6 = vld [vmem:[%s11703_s10 + $0x2c0] sm:$0xff]   ;;  %v3082_v7 = vadd.f32 %v10526_v17, %v2675_v60  ;;  %v3207_v17 = vadd.f32 %v10573_v47, %v2703_v5  ;;  %v3224_v47 = vmax.f32 %v3166_v11, 0.0  ;;  %v2691_v60 = vrot.slane %v10548_v33, %v10559_v37  ;;  %v9312_v5 = vld [vmem:[%s11703_s10 + $0x408] sm:$0xff]  }
0x1291   :  { %v9310_v33 = vld [vmem:[%s11703_s10 + $0x3c0] sm:$0xff]  }
0x1292   :  { %v3226_v16 = vmax.f32 %v3207_v17, 0.0 }
0x1293   :  { %8387 = vmatpush3.bf16.msra.mxu1 %v9250_v55  ;;  %8409 = vmatpush3.bf16.msra.mxu0 %v9251_v44  ;;  %v3123_v55 = vadd.f32 %v10528_v18, %v2683_v15  ;;  %v9281_v44 = vld [vmem:[%s11703_s10 + $0x388] sm:$0xff]   ;;  %v9309_v15 = vld [vmem:[%s11703_s10 + $0x480] sm:$0xff]  }
0x1294   :  { %8416 = vmatprep.subr.bf16.mxu1 %v9252_v13  ;;  %8438 = vmatprep.subr.bf16.mxu0 %v9253_v14  ;;  %v3219_v13 = vmax.f32 %v3082_v7, 0.0  ;;  %v9283_v18 = vld [vmem:[%s11703_s10 + $0x348] sm:$0xff]   ;;  %v9284_v14 = vld [vmem:[%s11703_s10 + $0x3d0] sm:$0xff]  }
0x1295   :  { %v3221_v63 = vmax.f32 %v3123_v55, 0.0 }
0x1296   :  { %4129 = vmatmul.mubr.bf16.vlgmr.msra.gmra.mrb[72].mxu1 %v3231_v20  ;;  %4169 = vmatmul.mubr.bf16.vlgmr.msra.gmra.mrb[44].mxu0 %v3233_v21  ;;  %v3235_v20 = vpack.c.bf16 %v3219_v13, %v3219_v13  ;;  %v9287_v21 = vld [vmem:[%s11703_s10 + $0x410] sm:$0xff]  }
0x1297   :  { %8417 = vmatpush3.bf16.msra.mxu1 %v9254_v19  ;;  %4208 = vmatprep.mubr.bf16.mxu1 %v3236_v23  ;;  %v9286_v19 = vld [vmem:[%s11703_s10 + $0x390] sm:$0xff]   ;;  %v9288_v23 = vld [vmem:[%s11703_s10 + $0x3d8] sm:$0xff]  }
0x1298   :  { %8439 = vmatpush3.bf16.msra.mxu0 %v9255_v22  ;;  %4248 = vmatprep.mubr.bf16.mxu0 %v3238_v27  ;;  %v3237_v22 = vpack.c.bf16 %v3221_v63, %v3221_v63  ;;  %v3242_v27 = vpack.c.bf16 %v3226_v16, %v3226_v16 }
0x1299   :  { %8418 = vmatprep.subr.bf16.mxu1 %v9256_v24  ;;  %8440 = vmatprep.subr.bf16.mxu0 %v9257_v26  ;;  %v3240_v24 = vpack.c.bf16 %v3224_v47, %v3224_v47  ;;  %v9289_v26 = vld [vmem:[%s11703_s10 + $0x458] sm:$0xff]  }
0x129b   :  { %8419 = vmatpush3.bf16.msra.mxu1 %v9258_v28  ;;  %v9290_v28 = vld [vmem:[%s11703_s10 + $0x398] sm:$0xff]  }
0x129c   :  { %8441 = vmatpush3.bf16.msra.mxu0 %v9259_v29  ;;  %8420 = vmatprep.subr.bf16.mxu1 %v9260_v34  ;;  %v9291_v29 = vld [vmem:[%s11703_s10 + $0x418] sm:$0xff]   ;;  %v9292_v34 = vld [vmem:[%s11703_s10 + $0x3e0] sm:$0xff]  }
0x129d   :  { %8442 = vmatprep.subr.bf16.mxu0 %v9261_v35  ;;  %v9293_v35 = vld [vmem:[%s11703_s10 + $0x460] sm:$0xff]  }
0x129f   :  { %8421 = vmatpush3.bf16.msra.mxu1 %v9262_v36  ;;  %v9294_v36 = vld [vmem:[%s11703_s10 + $0x3a0] sm:$0xff]  }
0x12a0   :  { %8443 = vmatpush3.bf16.msra.mxu0 %v9263_v39  ;;  %8422 = vmatprep.subr.bf16.mxu1 %v9264_v40  ;;  %v9295_v39 = vld [vmem:[%s11703_s10 + $0x420] sm:$0xff]   ;;  %v9296_v40 = vld [vmem:[%s11703_s10 + $0x3e8] sm:$0xff]  }
0x12a1   :  { %8444 = vmatprep.subr.bf16.mxu0 %v9265_v42  ;;  %v9297_v42 = vld [vmem:[%s11703_s10 + $0x468] sm:$0xff]  }
0x12a3   :  { %8423 = vmatpush3.bf16.msra.mxu1 %v9266_v46  ;;  %v9298_v46 = vld [vmem:[%s11703_s10 + $0x3a8] sm:$0xff]  }
0x12a4   :  { %8445 = vmatpush3.bf16.msra.mxu0 %v9267_v48  ;;  %8424 = vmatprep.subr.bf16.mxu1 %v9268_v51  ;;  %v9299_v48 = vld [vmem:[%s11703_s10 + $0x428] sm:$0xff]   ;;  %v9300_v51 = vld [vmem:[%s11703_s10 + $0x3f0] sm:$0xff]  }
0x12a5   :  { %8446 = vmatprep.subr.bf16.mxu0 %v9269_v52  ;;  %v9301_v52 = vld [vmem:[%s11703_s10 + $0x470] sm:$0xff]  }
0x12a7   :  { %8425 = vmatpush3.bf16.msra.mxu1 %v9270_v53  ;;  %v9302_v53 = vld [vmem:[%s11703_s10 + $0x3b0] sm:$0xff]  }
0x12a8   :  { %8447 = vmatpush3.bf16.msra.mxu0 %v9271_v54  ;;  %8426 = vmatprep.subr.bf16.mxu1 %v9272_v56  ;;  %v9303_v54 = vld [vmem:[%s11703_s10 + $0x430] sm:$0xff]   ;;  %v9304_v56 = vld [vmem:[%s11703_s10 + $0x3f8] sm:$0xff]  }
0x12a9   :  { %8448 = vmatprep.subr.bf16.mxu0 %v9273_v58  ;;  %v9305_v58 = vld [vmem:[%s11703_s10 + $0x478] sm:$0xff]  }
0x12ab   :  { %8427 = vmatpush3.bf16.msra.mxu1 %v9274_v59  ;;  %v9306_v59 = vld [vmem:[%s11703_s10 + $0x3b8] sm:$0xff]  }
0x12ac   :  { %8449 = vmatpush3.bf16.msra.mxu0 %v9275_v1  ;;  %8428 = vmatprep.subr.bf16.mxu1 %v9276_v2  ;;  %v9307_v1 = vld [vmem:[%s11703_s10 + $0x438] sm:$0xff]   ;;  %v9308_v2 = vld [vmem:[%s11703_s10 + $0x400] sm:$0xff]  }
0x12ad   :  { %8450 = vmatprep.subr.bf16.mxu0 %v9277_v3  ;;  %v3164_v3 = vadd.f32 %v10567_v41, %v2691_v60  ;;  %v9314_v41 = vld [vmem:[%s11703_s10 + $0x3c8] sm:$0xff]  }
0x12af   :  { %8429 = vmatpush3.bf16.msra.mxu1 %v9278_v6  ;;  %v9313_v6 = vld [vmem:[%s11703_s10 + $0x488] sm:$0xff]   ;;  %v3223_v7 = vmax.f32 %v3164_v3, 0.0 }
0x12b0   :  { %8451 = vmatpush3.bf16.msra.mxu0 %v9279_v8  ;;  %8430 = vmatprep.subr.bf16.mxu1 %v9280_v10  ;;  %v9315_v8 = vld [vmem:[%s11703_s10 + $0x448] sm:$0xff]   ;;  %v3225_v10 = vmax.f32 %v10569_v43, 0.0  ;;  %v7937_v43 = vld [vmem:[%s11704_s11 + $0x7] ss:$0 sm:$0xff] }
0x12b1   :  { %8452 = vmatprep.subr.bf16.mxu0 %v9281_v44  ;;  %v3239_v55 = vpack.c.bf16 %v3223_v7, %v3223_v7 }
0x12b2   :  { %v3241_v44 = vpack.c.bf16 %v3225_v10, %v3225_v10 }
0x12b3   :  { %8431 = vmatpush3.bf16.msra.mxu1 %v9282_v12 }
0x12b4   :  { %8453 = vmatpush3.bf16.msra.mxu0 %v9283_v18  ;;  %8460 = vmatprep.subr.bf16.mxu1 %v9284_v14 }
0x12b5   :  { %8482 = vmatprep.subr.bf16.mxu0 %v9285_v45 }
0x12b6   :  { %4209 = vmatmul.mubr.bf16.vlgmr.msra.gmra.mrb[76].mxu1 %v3235_v20 }
0x12b7   :  { %4249 = vmatmul.mubr.bf16.vlgmr.msra.gmra.mrb[48].mxu0 %v3237_v22  ;;  %8461 = vmatpush3.bf16.msra.mxu1 %v9286_v19 }
0x12b8   :  { %4288 = vmatprep.mubr.bf16.mxu1 %v3240_v24  ;;  %8483 = vmatpush3.bf16.msra.mxu0 %v9287_v21 }
0x12b9   :  { %4328 = vmatprep.mubr.bf16.mxu0 %v3242_v27  ;;  %8462 = vmatprep.subr.bf16.mxu1 %v9288_v23 }
0x12ba   :  { %8484 = vmatprep.subr.bf16.mxu0 %v9289_v26 }
0x12bb   :  { %8463 = vmatpush3.bf16.msra.mxu1 %v9290_v28 }
0x12bc   :  { %8485 = vmatpush3.bf16.msra.mxu0 %v9291_v29  ;;  %8464 = vmatprep.subr.bf16.mxu1 %v9292_v34 }
0x12bd   :  { %8486 = vmatprep.subr.bf16.mxu0 %v9293_v35 }
0x12bf   :  { %8465 = vmatpush3.bf16.msra.mxu1 %v9294_v36 }
0x12c0   :  { %8487 = vmatpush3.bf16.msra.mxu0 %v9295_v39  ;;  %8466 = vmatprep.subr.bf16.mxu1 %v9296_v40 }
0x12c1   :  { %8488 = vmatprep.subr.bf16.mxu0 %v9297_v42 }
0x12c3   :  { %8467 = vmatpush3.bf16.msra.mxu1 %v9298_v46 }
0x12c4   :  { %8489 = vmatpush3.bf16.msra.mxu0 %v9299_v48  ;;  %8468 = vmatprep.subr.bf16.mxu1 %v9300_v51 }
0x12c5   :  { %8490 = vmatprep.subr.bf16.mxu0 %v9301_v52 }
0x12c7   :  { %8469 = vmatpush3.bf16.msra.mxu1 %v9302_v53 }
0x12c8   :  { %8491 = vmatpush3.bf16.msra.mxu0 %v9303_v54  ;;  %8470 = vmatprep.subr.bf16.mxu1 %v9304_v56 }
0x12c9   :  { %8492 = vmatprep.subr.bf16.mxu0 %v9305_v58 }
0x12cb   :  { %8471 = vmatpush3.bf16.msra.mxu1 %v9306_v59 }
0x12cc   :  { %8493 = vmatpush3.bf16.msra.mxu0 %v9307_v1  ;;  %8472 = vmatprep.subr.bf16.mxu1 %v9308_v2 }
0x12cd   :  { %8494 = vmatprep.subr.bf16.mxu0 %v9309_v15 }
0x12cf   :  { %8473 = vmatpush3.bf16.msra.mxu1 %v9310_v33 }
0x12d0   :  { %8495 = vmatpush3.bf16.msra.mxu0 %v9311_v4  ;;  %8474 = vmatprep.subr.bf16.mxu1 %v9312_v5 }
0x12d1   :  { %8496 = vmatprep.subr.bf16.mxu0 %v9313_v6 }
0x12d3   :  { %8475 = vmatpush3.bf16.msra.mxu1 %v9314_v41 }
0x12d4   :  { %8497 = vmatpush3.bf16.msra.mxu0 %v9315_v8  ;;  %8831 = vmatprep.subr.bf16.mxu1 %v9542_v9 }
0x12d5   :  { %8839 = vmatprep.subr.bf16.mxu0 %v9542_v9 }
0x12d6   :  { %4289 = vmatmul.mubr.bf16.vlgmr.msra.gmra.mrb[80].mxu1 %v3239_v55 }
0x12d7   :  { %4329 = vmatmul.mubr.bf16.vlgmr.msra.gmra.mrb[52].mxu0 %v3241_v44  ;;  %8835 = vmatprep.mubr.msk.bf16.mxu1 %vm9543_vm0, %v9542_v9 }
0x12d8   :  { %8841 = vmatprep.mubr.msk.bf16.mxu0 %vm9543_vm0, %v9542_v9 }
0x1349   :  { %v8344_v11 = vpop.f32.mrb[68].mxu1  ;;  %v8366_v17 = vpop.f32.mrb[40].mxu0 }
0x134a   :  { %v8345_v12 = vpop.f32.mrb[69].mxu1  ;;  %v8367_v13 = vpop.f32.mrb[41].mxu0 }
0x134b   :  { %v8346_v18 = vadd.f32 %v8345_v12, %v8344_v11  ;;  %v8368_v14 = vadd.f32 %v8367_v13, %v8366_v17  ;;  %v8347_v63 = vpop.f32.mrb[70].mxu1  ;;  %v8369_v45 = vpop.f32.mrb[42].mxu0 }
0x134c   :  { %v8348_v47 = vpop.f32.mrb[71].mxu1  ;;  %v8370_v16 = vpop.f32.mrb[43].mxu0 }
0x134d   :  { %v4051_v19 = vadd.f32 %v8346_v18, %v7937_v43  ;;  %v9316_v18 = vld [vmem:[%s11702_s9 + $0x10] sm:$0xff]   ;;  %v8066_v16 = vld [vmem:[%s11704_s11 + $0x8] ss:$0 sm:$0xff] }
0x134e   :  { %8832 = vmatpush3.bf16.msra.mxu1 %v9316_v18 }
0x134f   :  { %v4091_v20 = vadd.f32 %v8368_v14, %v4051_v19  ;;  %v9317_v14 = vld [vmem:[%s11702_s9 + $0x18] sm:$0xff]   ;;  %8833 = vmatprep.subr.bf16.mxu1 %v9542_v9 }
0x1352   :  { %8834 = vmatpush3.bf16.msra.mxu1 %v9317_v14 }
0x1353   :  { %8845 = vmatprep.subr.bf16.mxu1 %v9542_v9 }
0x1369   :  { %v8388_v21 = vpop.f32.mrb[72].mxu1  ;;  %v8410_v22 = vpop.f32.mrb[44].mxu0 }
0x136a   :  { %v8389_v23 = vpop.f32.mrb[73].mxu1  ;;  %v8411_v24 = vpop.f32.mrb[45].mxu0 }
0x136b   :  { %v8390_v26 = vadd.f32 %v8389_v23, %v8388_v21  ;;  %v8412_v27 = vadd.f32 %v8411_v24, %v8410_v22  ;;  %v8391_v28 = vpop.f32.mrb[74].mxu1  ;;  %v8413_v29 = vpop.f32.mrb[46].mxu0  ;;  %v8068_v24 = vld [vmem:[%s11704_s11 + $0xa] ss:$0 sm:$0xff] }
0x136c   :  { %v8392_v34 = vpop.f32.mrb[75].mxu1  ;;  %v8414_v35 = vpop.f32.mrb[47].mxu0 }
0x136d   :  { %v4131_v36 = vadd.f32 %v8390_v26, %v4091_v20  ;;  %v8067_v20 = vld [vmem:[%s11704_s11 + $0x9] ss:$0 sm:$0xff] }
0x136f   :  { %v4171_v39 = vadd.f32 %v8412_v27, %v4131_v36 }
0x1389   :  { %v8432_v40 = vpop.f32.mrb[76].mxu1 }
0x138a   :  { %v8454_v42 = vpop.f32.mrb[48].mxu0  ;;  %v8433_v46 = vpop.f32.mrb[77].mxu1 }
0x138b   :  { %v8434_v48 = vadd.f32 %v8433_v46, %v8432_v40  ;;  %v8455_v51 = vpop.f32.mrb[49].mxu0  ;;  %v8435_v52 = vpop.f32.mrb[78].mxu1 }
0x138c   :  { %v8456_v53 = vadd.f32 %v8455_v51, %v8454_v42  ;;  %v8457_v54 = vpop.f32.mrb[50].mxu0  ;;  %v8436_v56 = vpop.f32.mrb[79].mxu1 }
0x138d   :  { %v4211_v58 = vadd.f32 %v8434_v48, %v4171_v39  ;;  %v8458_v59 = vpop.f32.mrb[51].mxu0 }
0x138f   :  { %v4251_v60 = vadd.f32 %v8456_v53, %v4211_v58 }
0x13a9   :  { %v8476_v1 = vpop.f32.mrb[80].mxu1 }
0x13aa   :  { %v8498_v2 = vpop.f32.mrb[52].mxu0  ;;  %v8477_v15 = vpop.f32.mrb[81].mxu1 }
0x13ab   :  { %v8478_v33 = vadd.f32 %v8477_v15, %v8476_v1  ;;  %v8499_v3 = vpop.f32.mrb[53].mxu0  ;;  %v8479_v4 = vpop.f32.mrb[82].mxu1 }
0x13ac   :  { %v8500_v5 = vadd.f32 %v8499_v3, %v8498_v2  ;;  %v8501_v6 = vpop.f32.mrb[54].mxu0  ;;  %v8480_v41 = vpop.f32.mrb[83].mxu1 }
0x13ad   :  { %v4291_v7 = vadd.f32 %v8478_v33, %v4251_v60  ;;  %v8502_v8 = vpop.f32.mrb[55].mxu0 }
0x13af   :  { %v4331_v10 = vadd.f32 %v8500_v5, %v4291_v7 }
0x13b1   :  { %v4336_v55 = vadd.f32 %v4331_v10, %v10285_v57 }
0x13b3   :  { %v4339_v44 = vsel %vm508_vm2, %v4336_v55, 0.0 }
0x13b4   :  { %4340 = vadd.xlane.f32.xlu1 %v4339_v44 }
0x1441   :  { %v4341_v11 = vpop.xlane.xlu1 %4340 }
0x1442   :  { %v4342_v17 = vmul.f32 0.03125, %v4341_v11 }
0x1444   :  { %v4343_v43 = vsub.f32 %v4336_v55, %v4342_v17 }
0x1446   :  { %v4344_v12 = vmul.f32 %v4343_v43, %v4343_v43 }
0x1448   :  { %v4345_v13 = vsel %vm508_vm2, %v4344_v12, 0.0 }
0x1449   :  { %4346 = vadd.xlane.f32.xlu1 %v4345_v13 }
0x14d6   :  { %v4347_v57 = vpop.xlane.xlu1 %4346 }
0x14d7   :  { %v4348_v63 = vmul.f32 0.03125, %v4347_v57 }
0x14d9   :  { %v4349_v45 = vadd.f32 1e-05, %v4348_v63 }
0x14db   :  { %9488 = vrsqrt.f32 %v4349_v45 }
0x14e5   :  { %v9489_v47 = vpop.eup %9488 }
0x14e6   :  { %v4351_v19 = vmul.f32 %v9489_v47, %v4343_v43 }
0x14e8   :  { %v4356_v21 = vmul.f32 %v8066_v16, %v4351_v19  ;;  %v4366_v16 = vld [vmem:[%s11703_s10 + $0x70] sm:$0xf] }
0x14e9   :  { %v4993_v19 = vsel %vm1383_vm3, %v4366_v16, 0 }
0x14ea   :  { %v10849_v22 = vadd.f32 %v8067_v20, %v4356_v21  ;;  %v4367_v20 = vld [vmem:[%s11703_s10 + $0x74] sm:$0xf] }
0x14eb   :  { %v4947_v21 = vsel %vm1383_vm3, %v4367_v20, 0 }
0x14ec   :  { %v4658_v23 = vpack.c.bf16 %v10849_v22, %v10849_v22 }
0x14ee   :  { %8836 = vmatmul.mubr.msk.bf16.vlgmr.msra.gmra.mrb[84].mxu1 %vm508_vm2, %v4658_v23 }
0x14ef   :  { %8847 = vmatprep.mubr.msk.bf16.mxu1 %vm9543_vm0, %v9542_v9 }
0x15c1   :  { %v4713_v26 = vpop.f32.mrb[84].mxu1 }
0x15c2   :  { %v4714_v27 = vadd.f32 %v8068_v24, %v4713_v26  ;;  %v8837_v28 = vpop.f32.mrb[85].mxu1 }
0x15c3   :  { %v4716_v29 = vpop.f32.mrb[86].mxu1 }
0x15c4   :  { %v10859_v34 = vpack.c.bf16 %v4714_v27, %v4714_v27  ;;  %v8838_v35 = vpop.f32.mrb[87].mxu1 }
0x15c6   :  { %4833 = vrot.lane.b32.xlu0 %v10859_v34, %s9547_s3  ;;  %4721 = vrot.lane.b32.xlu1 %v10859_v34, %s9546_s23 }
0x15ca   :  { %4831 = vrot.lane.b32.xlu1 %v10859_v34, %s9548_s24 }
0x1638   :  { %v4722_v36 = vpop.permute.xlu1 %4721  ;;  %v4834_v40 = vpop.permute.xlu0 %4833 }
0x1639   :  { %v4727_v39 = vsel %vm1379_vm5, %v4722_v36, 0  ;;  %v4839_v42 = vsel %vm1379_vm5, %v4834_v40, 0 }
0x163a   :  { %8840 = vmatpush3.bf16.xpose.msra.mxu0 %v4727_v39 }
0x163b   :  { %8851 = vmatprep.subr.bf16.mxu0 %v9542_v9 }
0x163c   :  { %v4832_v46 = vpop.permute.xlu1 %4831 }
0x1641   :  { %8842 = vmatmul.mubr.msk.bf16.vlgmr.msra.gmra.mrb[56].mxu0 %vm1379_vm5, %v10859_v34 }
0x1642   :  { %8852 = vmatpush3.bf16.xpose.msra.mxu0 %v4839_v42  ;;  %8853 = vmatprep.mubr.msk.bf16.mxu0 %vm9543_vm0, %v9542_v9 }
0x1643   :  { %8863 = vmatprep.subr.bf16.mxu0 %v9542_v9 }
0x1649   :  { %8854 = vmatmul.mubr.msk.bf16.vlgmr.msra.gmra.mrb[60].mxu0 %vm1379_vm5, %v4832_v46 }
0x164a   :  { %8865 = vmatprep.mubr.msk.bf16.mxu0 %vm9543_vm0, %v9542_v9  ;;  %8864 = vmatpush3.bf16.msra.mxu0 %v4947_v21 }
0x164b   :  { %8875 = vmatprep.subr.bf16.mxu0 %v9542_v9 }
0x1714   :  { %v4763_v48 = vpop.f32.mrb[56].mxu0 }
0x1715   :  { %v4769_v51 = vmul.f32 0.35355338, %v4763_v48  ;;  %v8843_v52 = vpop.f32.mrb[57].mxu0 }
0x1716   :  { %v4766_v53 = vpop.f32.mrb[58].mxu0 }
0x1717   :  { %v8844_v54 = vpop.f32.mrb[59].mxu0  ;;  %v4770_v56 = vsel %vm1379_vm5, %v4769_v51, -inf }
0x1718   :  { %4771 = vmax.xlane.f32.xlu1 %v4770_v56 }
0x171c   :  { %v4875_v58 = vpop.f32.mrb[60].mxu0 }
0x171d   :  { %v4881_v59 = vmul.f32 0.35355338, %v4875_v58  ;;  %v8855_v60 = vpop.f32.mrb[61].mxu0 }
0x171e   :  { %v4878_v1 = vpop.f32.mrb[62].mxu0 }
0x171f   :  { %v8856_v2 = vpop.f32.mrb[63].mxu0  ;;  %v4882_v15 = vsel %vm1379_vm5, %v4881_v59, -inf }
0x1720   :  { %4883 = vmax.xlane.f32.xlu0 %v4882_v15 }
0x1736   :  { %4894 = vrot.lane.b32.xlu0 %v10859_v34, %s9549_s6 }
0x17a5   :  { %v4772_v33 = vpop.xlane.xlu1 %4771 }
0x17a6   :  { %v4773_v3 = vsub.f32 %v4769_v51, %v4772_v33 }
0x17a8   :  { %v4774_v4 = vmul.f32 1.442695, %v4773_v3 }
0x17aa   :  { %9490 = vpow2.f32 %v4774_v4 }
0x17ad   :  { %v4884_v5 = vpop.xlane.xlu0 %4883 }
0x17ae   :  { %v4885_v6 = vsub.f32 %v4881_v59, %v4884_v5 }
0x17b0   :  { %v4886_v41 = vmul.f32 1.442695, %v4885_v6 }
0x17b1   :  { %v4895_v18 = vpop.permute.xlu0 %4894 }
0x17b2   :  { %9492 = vpow2.f32 %v4886_v41  ;;  %v4900_v57 = vsel %vm1383_vm3, %v4895_v18, 0 }
0x17b4   :  { %v9491_v7 = vpop.eup %9490 }
0x17b5   :  { %v4776_v8 = vsel %vm1379_vm5, %v9491_v7, 0.0 }
0x17b6   :  { %4777 = vadd.xlane.f32.xlu1 %v4776_v8 }
0x17bc   :  { %v9493_v10 = vpop.eup %9492 }
0x17bd   :  { %v4888_v55 = vsel %vm1379_vm5, %v9493_v10, 0.0 }
0x17be   :  { %4889 = vadd.xlane.f32.xlu1 %v4888_v55 }
0x17cf   :  { %4782 = vrot.lane.b32.xlu1 %v10859_v34, %s9545_s22 }
0x17d3   :  { %5037 = vrot.lane.b32.xlu1 %v10859_v34, %s9550_s25 }
0x17d7   :  { %5035 = vrot.lane.b32.xlu1 %v10859_v34, %s9551_s26 }
0x1843   :  { %v4778_v44 = vpop.xlane.xlu1 %4777 }
0x1844   :  { %9494 = vrcp.f32 %v4778_v44 }
0x184b   :  { %v4890_v11 = vpop.xlane.xlu1 %4889 }
0x184c   :  { %9496 = vrcp.f32 %v4890_v11 }
0x184e   :  { %v9495_v17 = vpop.eup %9494 }
0x184f   :  { %v4783_v43 = vpop.permute.xlu1 %4782  ;;  %v4780_v12 = vmul.f32 %v9495_v17, %v9491_v7 }
0x1850   :  { %v4788_v13 = vsel %vm1383_vm3, %v4783_v43, 0 }
0x1851   :  { %8846 = vmatpush3.bf16.msra.mxu1 %v4788_v13  ;;  %v4781_v14 = vpack.c.bf16 %v4780_v12, %v4780_v12 }
0x1852   :  { %8857 = vmatprep.subr.bf16.mxu1 %v9542_v9 }
0x1853   :  { %v5038_v29 = vpop.permute.xlu1 %5037 }
0x1854   :  { %8848 = vmatmul.mubr.msk.bf16.vlgmr.msra.gmra.mrb[88].mxu1 %vm1379_vm5, %v4781_v14  ;;  %v5043_v42 = vsel %vm1379_vm5, %v5038_v29, 0 }
0x1855   :  { %8858 = vmatpush3.bf16.msra.mxu1 %v4900_v57  ;;  %8859 = vmatprep.mubr.msk.bf16.mxu1 %vm9543_vm0, %v9542_v9  ;;  %v4368_v57 = vld [vmem:[%s11703_s10 + $0x78] sm:$0xf] }
0x1856   :  { %v9497_v63 = vpop.eup %9496  ;;  %8869 = vmatprep.subr.bf16.mxu1 %v9542_v9 }
0x1857   :  { %v4892_v45 = vmul.f32 %v9497_v63, %v9493_v10  ;;  %v5036_v48 = vpop.permute.xlu1 %5035  ;;  %v5151_v63 = vsel %vm1383_vm3, %v4368_v57, 0  ;;  %v4378_v57 = vld [vmem:[%s11697_s4 + $0x140] sm:$0xff] }
0x1859   :  { %v4893_v47 = vpack.c.bf16 %v4892_v45, %v4892_v45 }
0x185c   :  { %8860 = vmatmul.mubr.msk.bf16.vlgmr.msra.gmra.mrb[92].mxu1 %vm1379_vm5, %v4893_v47 }
0x185d   :  { %8871 = vmatprep.mubr.msk.bf16.mxu1 %vm9543_vm0, %v9542_v9  ;;  %8870 = vmatpush3.bf16.msra.mxu1 %v4993_v19 }
0x185e   :  { %8881 = vmatprep.subr.bf16.mxu1 %v9542_v9 }
0x1927   :  { %v4824_v23 = vpop.f32.mrb[88].mxu1 }
0x1928   :  { %v4830_v24 = vpack.c.bf16 %v4824_v23, %v4824_v23  ;;  %v8849_v26 = vpop.f32.mrb[89].mxu1 }
0x1929   :  { %v4827_v27 = vpop.f32.mrb[90].mxu1 }
0x192a   :  { %v8850_v28 = vpop.f32.mrb[91].mxu1  ;;  %8872 = vmatmul.mubr.msk.bf16.vlgmr.msra.gmra.mrb[96].mxu1 %vm1379_vm5, %v4830_v24 }
0x192b   :  { %8883 = vmatprep.mubr.msk.bf16.mxu1 %vm9543_vm0, %v9542_v9 }
0x192f   :  { %v4936_v35 = vpop.f32.mrb[92].mxu1 }
0x1930   :  { %v4942_v36 = vpack.c.bf16 %v4936_v35, %v4936_v35  ;;  %v8861_v39 = vpop.f32.mrb[93].mxu1 }
0x1931   :  { %v4939_v40 = vpop.f32.mrb[94].mxu1 }
0x1932   :  { %v8862_v46 = vpop.f32.mrb[95].mxu1  ;;  %8866 = vmatmul.mubr.msk.bf16.vlgmr.msra.gmra.mrb[64].mxu0 %vm1379_vm5, %v4942_v36 }
0x1933   :  { %8876 = vmatpush3.bf16.xpose.msra.mxu0 %v5043_v42  ;;  %8877 = vmatprep.mubr.msk.bf16.mxu0 %vm9543_vm0, %v9542_v9 }
0x1934   :  { %8887 = vmatprep.subr.bf16.mxu0 %v9542_v9 }
0x193a   :  { %8878 = vmatmul.mubr.msk.bf16.vlgmr.msra.gmra.mrb[68].mxu0 %vm1379_vm5, %v5036_v48 }
0x193b   :  { %8889 = vmatprep.mubr.msk.bf16.mxu0 %vm9543_vm0, %v9542_v9  ;;  %8888 = vmatpush3.bf16.msra.mxu0 %v5151_v63 }
0x193c   :  { %8899 = vmatprep.subr.bf16.mxu0 %v9542_v9 }
0x19fd   :  { %v5029_v51 = vpop.f32.mrb[96].mxu1 }
0x19fe   :  { %v8873_v52 = vpop.f32.mrb[97].mxu1 }
0x19ff   :  { %v5032_v53 = vpop.f32.mrb[98].mxu1 }
0x1a00   :  { %v8874_v54 = vpop.f32.mrb[99].mxu1 }
0x1a05   :  { %v4983_v56 = vpop.f32.mrb[64].mxu0 }
0x1a06   :  { %v10921_v58 = vadd.f32 %v5029_v51, %v4983_v56  ;;  %v8867_v59 = vpop.f32.mrb[65].mxu0 }
0x1a07   :  { %v4986_v60 = vpop.f32.mrb[66].mxu0 }
0x1a08   :  { %v8868_v1 = vpop.f32.mrb[67].mxu0 }
0x1a0d   :  { %v5079_v2 = vpop.f32.mrb[68].mxu0 }
0x1a0e   :  { %v5085_v15 = vmul.f32 0.35355338, %v5079_v2  ;;  %v8879_v33 = vpop.f32.mrb[69].mxu0 }
0x1a0f   :  { %v5082_v3 = vpop.f32.mrb[70].mxu0 }
0x1a10   :  { %v8880_v4 = vpop.f32.mrb[71].mxu0  ;;  %v5086_v5 = vsel %vm1379_vm5, %v5085_v15, -inf }
0x1a11   :  { %5087 = vmax.xlane.f32.xlu0 %v5086_v5 }
0x1a27   :  { %5098 = vrot.lane.b32.xlu0 %v10859_v34, %s9552_s0 }
0x1a2b   :  { %5194 = vrot.lane.b32.xlu0 %v10859_v34, %s9554_s30 }
0x1a9e   :  { %v5088_v6 = vpop.xlane.xlu0 %5087 }
0x1a9f   :  { %v5089_v41 = vsub.f32 %v5085_v15, %v5088_v6  ;;  %v8084_v6 = vld [vmem:[%s11704_s11 + $0xb] ss:$0 sm:$0xff] }
0x1aa1   :  { %v5090_v7 = vmul.f32 1.442695, %v5089_v41 }
0x1aa2   :  { %v5099_v8 = vpop.permute.xlu0 %5098 }
0x1aa3   :  { %9498 = vpow2.f32 %v5090_v7  ;;  %v5104_v10 = vsel %vm1383_vm3, %v5099_v8, 0 }
0x1aa4   :  { %8882 = vmatpush3.bf16.msra.mxu1 %v5104_v10 }
0x1aa5   :  { %8893 = vmatprep.subr.bf16.mxu1 %v9542_v9 }
0x1aa6   :  { %v5195_v14 = vpop.permute.xlu0 %5194 }
0x1aad   :  { %v9499_v55 = vpop.eup %9498 }
0x1aae   :  { %v5092_v44 = vsel %vm1379_vm5, %v9499_v55, 0.0 }
0x1aaf   :  { %5093 = vadd.xlane.f32.xlu1 %v5092_v44 }
0x1ac0   :  { %5196 = vrot.lane.b32.xlu1 %v10859_v34, %s9553_s2 }
0x1b3c   :  { %v5094_v11 = vpop.xlane.xlu1 %5093 }
0x1b3d   :  { %9500 = vrcp.f32 %v5094_v11 }
0x1b40   :  { %v5197_v12 = vpop.permute.xlu1 %5196 }
0x1b41   :  { %v5202_v18 = vsel %vm1379_vm5, %v5197_v12, 0 }
0x1b47   :  { %v9501_v17 = vpop.eup %9500 }
0x1b48   :  { %v5096_v43 = vmul.f32 %v9501_v17, %v9499_v55 }
0x1b4a   :  { %v5097_v13 = vpack.c.bf16 %v5096_v43, %v5096_v43 }
0x1b4c   :  { %8884 = vmatmul.mubr.msk.bf16.vlgmr.msra.gmra.mrb[100].mxu1 %vm1379_vm5, %v5097_v13 }
0x1b4d   :  { %8894 = vmatpush3.bf16.xpose.msra.mxu1 %v5202_v18  ;;  %8895 = vmatprep.mubr.msk.bf16.mxu1 %vm9543_vm0, %v9542_v9 }
0x1b4e   :  { %8905 = vmatprep.subr.bf16.mxu1 %v9542_v9 }
0x1b54   :  { %8896 = vmatmul.mubr.msk.bf16.vlgmr.msra.gmra.mrb[104].mxu1 %vm1379_vm5, %v5195_v14  ;;  %v4370_v14 = vld [vmem:[%s11697_s4 + $0x100] sm:$0xff] }
0x1b55   :  { %8907 = vmatprep.mubr.msk.bf16.mxu1 %vm9543_vm0, %v9542_v9  ;;  %v8090_v63 = vcombine.high %v4370_v14, %v4378_v57 }
0x1c1f   :  { %v5140_v45 = vpop.f32.mrb[100].mxu1 }
0x1c20   :  { %v5146_v47 = vpack.c.bf16 %v5140_v45, %v5140_v45  ;;  %v8885_v16 = vpop.f32.mrb[101].mxu1  ;;  %v4379_v45 = vld [vmem:[%s11697_s4 + $0x148] sm:$0xff] }
0x1c21   :  { %v5143_v19 = vpop.f32.mrb[102].mxu1 }
0x1c22   :  { %v8886_v20 = vpop.f32.mrb[103].mxu1  ;;  %8890 = vmatmul.mubr.msk.bf16.vlgmr.msra.gmra.mrb[72].mxu0 %vm1379_vm5, %v5146_v47  ;;  %v8089_v47 = vcombine.low %v4370_v14, %v4378_v57 }
0x1c23   :  { %8901 = vmatprep.mubr.msk.bf16.mxu0 %vm9543_vm0, %v9542_v9  ;;  %v4386_v20 = vld [vmem:[%s11697_s4 + $0x180] sm:$0xff] }
0x1c27   :  { %v5238_v21 = vpop.f32.mrb[104].mxu1 }
0x1c28   :  { %v5244_v23 = vmul.f32 0.35355338, %v5238_v21  ;;  %v8897_v24 = vpop.f32.mrb[105].mxu1  ;;  %v4394_v21 = vld [vmem:[%s11697_s4 + $0x1c0] sm:$0xff] }
0x1c29   :  { %v5241_v26 = vpop.f32.mrb[106].mxu1  ;;  %v8106_v24 = vcombine.high %v4386_v20, %v4394_v21 }
0x1c2a   :  { %v8898_v27 = vpop.f32.mrb[107].mxu1  ;;  %v5245_v28 = vsel %vm1379_vm5, %v5244_v23, -inf  ;;  %v4395_v26 = vld [vmem:[%s11697_s4 + $0x1c8] sm:$0xff] }
0x1c2b   :  { %5246 = vmax.xlane.f32.xlu1 %v5245_v28  ;;  %v8105_v27 = vcombine.low %v4386_v20, %v4394_v21 }
0x1cb8   :  { %v5247_v29 = vpop.xlane.xlu1 %5246 }
0x1cb9   :  { %v5248_v35 = vsub.f32 %v5244_v23, %v5247_v29  ;;  %v4387_v23 = vld [vmem:[%s11697_s4 + $0x188] sm:$0xff] }
0x1cba   :  { %v8107_v28 = vcombine.low %v4387_v23, %v4395_v26  ;;  %v8108_v29 = vcombine.high %v4387_v23, %v4395_v26  ;;  %v4392_v26 = vld [vmem:[%s11697_s4 + $0x1b0] sm:$0xff] }
0x1cbb   :  { %v5249_v36 = vmul.f32 1.442695, %v5248_v35  ;;  %v4372_v35 = vld [vmem:[%s11697_s4 + $0x110] sm:$0xff] }
0x1cbd   :  { %9502 = vpow2.f32 %v5249_v36  ;;  %v4380_v36 = vld [vmem:[%s11697_s4 + $0x150] sm:$0xff] }
0x1cc7   :  { %v9503_v39 = vpop.eup %9502 }
0x1cc8   :  { %v5251_v40 = vsel %vm1379_vm5, %v9503_v39, 0.0 }
0x1cc9   :  { %5252 = vadd.xlane.f32.xlu0 %v5251_v40  ;;  %v8093_v40 = vcombine.low %v4372_v35, %v4380_v36 }
0x1cdf   :  { %5257 = vrot.lane.b32.xlu0 %v10859_v34, %s9555_s15  ;;  %v4369_v34 = vld [vmem:[%s11703_s10 + $0x7c] sm:$0xf] }
0x1cf5   :  { %v5187_v42 = vpop.f32.mrb[72].mxu0 }
0x1cf6   :  { %v5193_v46 = vadd.f32 %v5187_v42, %v10921_v58  ;;  %v8891_v48 = vpop.f32.mrb[73].mxu0  ;;  %v5310_v58 = vsel %vm1383_vm3, %v4369_v34, 0  ;;  %v8094_v42 = vcombine.high %v4372_v35, %v4380_v36 }
0x1cf7   :  { %v5190_v51 = vpop.f32.mrb[74].mxu0  ;;  %8906 = vmatpush3.bf16.msra.mxu1 %v5310_v58  ;;  %v4388_v58 = vld [vmem:[%s11697_s4 + $0x190] sm:$0xff] }
0x1cf8   :  { %v8892_v52 = vpop.f32.mrb[75].mxu0 }
0x1d56   :  { %v5253_v53 = vpop.xlane.xlu0 %5252 }
0x1d57   :  { %9504 = vrcp.f32 %v5253_v53 }
0x1d5a   :  { %v5258_v54 = vpop.permute.xlu0 %5257 }
0x1d5b   :  { %v5263_v56 = vsel %vm1383_vm3, %v5258_v54, 0 }
0x1d5c   :  { %8900 = vmatpush3.bf16.msra.mxu0 %v5263_v56 }
0x1d5d   :  { %5635 = vmatprep.subr.bf16.mxu0 %v8090_v63 }
0x1d61   :  { %v9505_v59 = vpop.eup %9504 }
0x1d62   :  { %v5255_v60 = vmul.f32 %v9505_v59, %v9503_v39  ;;  %v4373_v39 = vld [vmem:[%s11697_s4 + $0x118] sm:$0xff]  ;;  %v8085_v59 = vld [vmem:[%s11704_s11 + $0xc] ss:$0 sm:$0xff] }
0x1d64   :  { %v5256_v1 = vpack.c.bf16 %v5255_v60, %v5255_v60 }
0x1d66   :  { %8902 = vmatmul.mubr.msk.bf16.vlgmr.msra.gmra.mrb[76].mxu0 %vm1379_vm5, %v5256_v1  ;;  %v8086_v1 = vld [vmem:[%s11704_s11 + $0xd] ss:$0 sm:$0xff] }
0x1d67   :  { %5667 = vmatprep.mubr.bf16.mxu0 %v9544_v38  ;;  %5636 = vmatpush1.bf16.msra.mxu0 %v8089_v47  ;;  %v4384_v47 = vld [vmem:[%s11697_s4 + $0x170] sm:$0xff] }
0x1d68   :  { %5637 = vmatprep.subr.bf16.mxu0 %v8106_v24 }
0x1d6b   :  { %5638 = vmatpush1.bf16.msra.mxu0 %v8105_v27  ;;  %v4400_v27 = vld [vmem:[%s11697_s4 + $0x1f0] sm:$0xff] }
0x1d6c   :  { %5717 = vmatprep.subr.bf16.mxu0 %v8094_v42  ;;  %v8117_v42 = vcombine.low %v4392_v26, %v4400_v27 }
0x1e39   :  { %v5299_v2 = vpop.f32.mrb[76].mxu0 }
0x1e3a   :  { %v5305_v15 = vpack.c.bf16 %v5299_v2, %v5299_v2  ;;  %v8903_v33 = vpop.f32.mrb[77].mxu0  ;;  %v4396_v2 = vld [vmem:[%s11697_s4 + $0x1d0] sm:$0xff] }
0x1e3b   :  { %v5302_v3 = vpop.f32.mrb[78].mxu0  ;;  %v4397_v33 = vld [vmem:[%s11697_s4 + $0x1d8] sm:$0xff] }
0x1e3c   :  { %v8904_v4 = vpop.f32.mrb[79].mxu0  ;;  %8908 = vmatmul.mubr.msk.bf16.vlgmr.msra.gmra.mrb[108].mxu1 %vm1379_vm5, %v5305_v15  ;;  %v4389_v15 = vld [vmem:[%s11697_s4 + $0x198] sm:$0xff] }
0x1e3d   :  { %5708 = vmatprep.mubr.bf16.mxu1 %v9544_v38 }
0x1f0f   :  { %v5346_v5 = vpop.f32.mrb[108].mxu1 }
0x1f10   :  { %v5352_v41 = vadd.f32 %v5346_v5, %v5193_v46  ;;  %v8909_v7 = vpop.f32.mrb[109].mxu1  ;;  %v4381_v46 = vld [vmem:[%s11697_s4 + $0x158] sm:$0xff]  ;;  %v8110_v5 = vcombine.high %v4388_v58, %v4396_v2 }
0x1f11   :  { %v5349_v8 = vpop.f32.mrb[110].mxu1  ;;  %v8095_v48 = vcombine.low %v4373_v39, %v4381_v46  ;;  %v8096_v51 = vcombine.high %v4373_v39, %v4381_v46  ;;  %v4382_v7 = vld [vmem:[%s11697_s4 + $0x160] sm:$0xff]  ;;  %v8118_v39 = vcombine.high %v4392_v26, %v4400_v27 }
0x1f12   :  { %v5358_v10 = vadd.f32 %v8084_v6, %v5352_v41  ;;  %v8910_v55 = vpop.f32.mrb[111].mxu1  ;;  %v8112_v6 = vcombine.high %v4389_v15, %v4397_v33  ;;  %v4374_v41 = vld [vmem:[%s11697_s4 + $0x120] sm:$0xff]  ;;  %v4375_v8 = vld [vmem:[%s11697_s4 + $0x128] sm:$0xff] }
0x1f13   :  { %v8109_v55 = vcombine.low %v4388_v58, %v4396_v2  ;;  %v8097_v14 = vcombine.low %v4374_v41, %v4382_v7  ;;  %v9329_v58 = vld [vmem:[%s11703_s10 + $0x520] sm:$0xff]   ;;  %v9330_v2 = vld [vmem:[%s11703_s10 + $0x4e8] sm:$0xff]  }
0x1f14   :  { %v5359_v44 = vadd.f32 %v5358_v10, %v10849_v22  ;;  %v4371_v22 = vld [vmem:[%s11697_s4 + $0x108] sm:$0xff] }
0x1f15   :  { %v8091_v16 = vcombine.low %v4371_v22, %v4379_v45  ;;  %v8092_v19 = vcombine.high %v4371_v22, %v4379_v45  ;;  %v4383_v10 = vld [vmem:[%s11697_s4 + $0x168] sm:$0xff]  ;;  %v4376_v45 = vld [vmem:[%s11697_s4 + $0x130] sm:$0xff] }
0x1f16   :  { %v5362_v11 = vsel %vm508_vm2, %v5359_v44, 0.0  ;;  %v8099_v57 = vcombine.low %v4375_v8, %v4383_v10  ;;  %v8102_v23 = vcombine.high %v4376_v45, %v4384_v47  ;;  %v8101_v35 = vcombine.low %v4376_v45, %v4384_v47  ;;  %v11204_v45 = vld [vmem:[%s11698_s5 + $0x1] ss:$2 sm:$0xff] }
0x1f17   :  { %5363 = vadd.xlane.f32.xlu1 %v5362_v11  ;;  %5676 = vmatprep.subr.bf16.mxu1 %v8092_v19  ;;  %v8098_v11 = vcombine.high %v4374_v41, %v4382_v7  ;;  %v4385_v19 = vld [vmem:[%s11697_s4 + $0x178] sm:$0xff]  ;;  %v9336_v41 = vld [vmem:[%s11703_s10 + $0x4b0] sm:$0xff]   ;;  %v5395_v47 = vrot.slane %v11204_v45, %v9770_v49 }
0x1f18   :  { %5677 = vmatpush1.bf16.msra.mxu1 %v8091_v16  ;;  %v4377_v16 = vld [vmem:[%s11697_s4 + $0x138] sm:$0xff]  ;;  %v9337_v7 = vld [vmem:[%s11703_s10 + $0x530] sm:$0xff]  }
0x1f19   :  { %5678 = vmatprep.subr.bf16.mxu1 %v8108_v29  ;;  %v8104_v24 = vcombine.high %v4377_v16, %v4385_v19  ;;  %v4401_v29 = vld [vmem:[%s11697_s4 + $0x1f8] sm:$0xff]  ;;  %v8103_v36 = vcombine.low %v4377_v16, %v4385_v19  ;;  %v5403_v16 = vrot.slane %v11204_v45, %v10074_v62  ;;  %v5399_v19 = vrot.slane %v11204_v45, %v9773_v50 }
0x1f1c   :  { %5679 = vmatpush1.bf16.msra.mxu1 %v8107_v28  ;;  %v4393_v28 = vld [vmem:[%s11697_s4 + $0x1b8] sm:$0xff] }
0x1f1d   :  { %5758 = vmatprep.subr.bf16.mxu1 %v8096_v51  ;;  %v8119_v46 = vcombine.low %v4393_v28, %v4401_v29  ;;  %v9319_v51 = vld [vmem:[%s11703_s10 + $0x550] sm:$0xff]  }
0x1fa4   :  { %v5364_v17 = vpop.xlane.xlu1 %5363 }
0x1fa5   :  { %v5365_v43 = vmul.f32 0.03125, %v5364_v17  ;;  %v8100_v17 = vcombine.high %v4375_v8, %v4383_v10  ;;  %v9338_v8 = vld [vmem:[%s11703_s10 + $0x4f8] sm:$0xff]  }
0x1fa6   :  { %v9339_v10 = vld [vmem:[%s11703_s10 + $0x578] sm:$0xff]  }
0x1fa7   :  { %v5366_v12 = vsub.f32 %v5359_v44, %v5365_v43  ;;  %v8111_v44 = vcombine.low %v4389_v15, %v4397_v33  ;;  %v4390_v43 = vld [vmem:[%s11697_s4 + $0x1a0] sm:$0xff]  ;;  %v9331_v15 = vld [vmem:[%s11703_s10 + $0x568] sm:$0xff]  }
0x1fa8   :  { %v9332_v33 = vld [vmem:[%s11703_s10 + $0x4a8] sm:$0xff]  }
0x1fa9   :  { %v5367_v13 = vmul.f32 %v5366_v12, %v5366_v12 }
0x1fab   :  { %v5368_v18 = vsel %vm508_vm2, %v5367_v13, 0.0  ;;  %v4391_v13 = vld [vmem:[%s11697_s4 + $0x1a8] sm:$0xff] }
0x1fac   :  { %5369 = vadd.xlane.f32.xlu1 %v5368_v18  ;;  %v4399_v18 = vld [vmem:[%s11697_s4 + $0x1e8] sm:$0xff] }
0x1fad   :  { %v8116_v63 = vcombine.high %v4391_v13, %v4399_v18  ;;  %v8115_v21 = vcombine.low %v4391_v13, %v4399_v18  ;;  %v9346_v13 = vld [vmem:[%s11703_s10 + $0x508] sm:$0xff]  }
0x1fae   :  { %v9347_v18 = vld [vmem:[%s11703_s10 + $0x588] sm:$0xff]  }
0x2039   :  { %v5370_v52 = vpop.xlane.xlu1 %5369 }
0x203a   :  { %v5371_v53 = vmul.f32 0.03125, %v5370_v52  ;;  %v9320_v52 = vld [vmem:[%s11703_s10 + $0x490] sm:$0xff]  }
0x203c   :  { %v5372_v54 = vadd.f32 1e-05, %v5371_v53  ;;  %v9321_v53 = vld [vmem:[%s11703_s10 + $0x510] sm:$0xff]  }
0x203e   :  { %9506 = vrsqrt.f32 %v5372_v54  ;;  %v9322_v54 = vld [vmem:[%s11703_s10 + $0x4d8] sm:$0xff]  }
0x2048   :  { %v9507_v56 = vpop.eup %9506 }
0x2049   :  { %v5374_v60 = vmul.f32 %v9507_v56, %v5366_v12  ;;  %v4398_v12 = vld [vmem:[%s11697_s4 + $0x1e0] sm:$0xff]  ;;  %v9324_v56 = vld [vmem:[%s11703_s10 + $0x498] sm:$0xff]  }
0x204a   :  { %v8114_v22 = vcombine.high %v4390_v43, %v4398_v12  ;;  %v8113_v20 = vcombine.low %v4390_v43, %v4398_v12  ;;  %v9344_v43 = vld [vmem:[%s11703_s10 + $0x4c0] sm:$0xff]  }
0x204b   :  { %v5379_v34 = vmul.f32 %v8085_v59, %v5374_v60  ;;  %v9325_v59 = vld [vmem:[%s11703_s10 + $0x518] sm:$0xff]   ;;  %v9326_v60 = vld [vmem:[%s11703_s10 + $0x4e0] sm:$0xff]  }
0x204c   :  { %v9345_v12 = vld [vmem:[%s11703_s10 + $0x540] sm:$0xff]  }
0x204d   :  { %v11023_v3 = vadd.f32 %v8086_v1, %v5379_v34  ;;  %v9327_v1 = vld [vmem:[%s11703_s10 + $0x560] sm:$0xff]  }
0x204e   :  { %v9328_v34 = vld [vmem:[%s11703_s10 + $0x4a0] sm:$0xff]  }
0x204f   :  { %v11027_v4 = vpack.c.bf16 %v11023_v3, %v11023_v3 }
0x2051   :  { %8121 = vmatmul.mubr.msk.bf16.vlgmr.msra.gmra.mrb[80].mxu0 %vm508_vm2, %v11027_v4  ;;  %8122 = vmatmul.mubr.msk.bf16.vlgmr.msra.gmra.mrb[112].mxu1 %vm508_vm2, %v11027_v4 }
0x2052   :  { %5718 = vmatpush1.bf16.msra.mxu0 %v8093_v40  ;;  %5759 = vmatpush1.bf16.msra.mxu1 %v8095_v48  ;;  %v8120_v40 = vcombine.high %v4393_v28, %v4401_v29  ;;  %v9318_v48 = vld [vmem:[%s11703_s10 + $0x4d0] sm:$0xff]  }
0x2053   :  { %5719 = vmatprep.subr.bf16.mxu0 %v8110_v5  ;;  %5760 = vmatprep.subr.bf16.mxu1 %v8112_v6  ;;  %v9334_v5 = vld [vmem:[%s11703_s10 + $0x4f0] sm:$0xff]  }
0x2054   :  { %5749 = vmatprep.mubr.bf16.mxu0 %v9544_v38  ;;  %5790 = vmatprep.mubr.bf16.mxu1 %v9544_v38  ;;  %v9335_v6 = vld [vmem:[%s11703_s10 + $0x570] sm:$0xff]  }
0x2056   :  { %5720 = vmatpush1.bf16.msra.mxu0 %v8109_v55  ;;  %5761 = vmatpush1.bf16.msra.mxu1 %v8111_v44  ;;  %v9340_v55 = vld [vmem:[%s11703_s10 + $0x4b8] sm:$0xff]  }
0x2057   :  { %5799 = vmatprep.subr.bf16.mxu0 %v8098_v11  ;;  %5840 = vmatprep.subr.bf16.mxu1 %v8100_v17  ;;  %v9341_v44 = vld [vmem:[%s11703_s10 + $0x538] sm:$0xff]   ;;  %v9342_v11 = vld [vmem:[%s11703_s10 + $0x500] sm:$0xff]  }
0x2058   :  { %v9343_v17 = vld [vmem:[%s11703_s10 + $0x580] sm:$0xff]  }
0x2059   :  { %8123 = vmatmul.mubr.msk.bf16.vlgmr.msra.gmra.mrb[84].mxu0 %vm508_vm2, %v11027_v4  ;;  %8124 = vmatmul.mubr.msk.bf16.vlgmr.msra.gmra.mrb[116].mxu1 %vm508_vm2, %v11027_v4 }
0x205a   :  { %5800 = vmatpush1.bf16.msra.mxu0 %v8097_v14  ;;  %5841 = vmatpush1.bf16.msra.mxu1 %v8099_v57  ;;  %v9348_v14 = vld [vmem:[%s11703_s10 + $0x4c8] sm:$0xff]  }
0x205b   :  { %5801 = vmatprep.subr.bf16.mxu0 %v8114_v22  ;;  %5842 = vmatprep.subr.bf16.mxu1 %v8116_v63  ;;  %v9349_v57 = vld [vmem:[%s11703_s10 + $0x548] sm:$0xff]   ;;  %v9350_v22 = vld [vmem:[%s11703_s10 + $0x5d0] sm:$0xff]  }
0x205c   :  { %5831 = vmatprep.mubr.bf16.mxu0 %v9544_v38  ;;  %5872 = vmatprep.mubr.bf16.mxu1 %v9544_v38  ;;  %v9351_v63 = vld [vmem:[%s11703_s10 + $0x650] sm:$0xff]  }
0x205e   :  { %5802 = vmatpush1.bf16.msra.mxu0 %v8113_v20  ;;  %5843 = vmatpush1.bf16.msra.mxu1 %v8115_v21  ;;  %v5407_v20 = vrot.slane %v11204_v45, %v10077_v0 }
0x205f   :  { %5881 = vmatprep.subr.bf16.mxu0 %v8102_v23  ;;  %5922 = vmatprep.subr.bf16.mxu1 %v8104_v24 }
0x2061   :  { %8125 = vmatmul.mubr.msk.bf16.vlgmr.msra.gmra.mrb[88].mxu0 %vm508_vm2, %v11027_v4  ;;  %8126 = vmatmul.mubr.msk.bf16.vlgmr.msra.gmra.mrb[120].mxu1 %vm508_vm2, %v11027_v4 }
0x2062   :  { %5882 = vmatpush1.bf16.msra.mxu0 %v8101_v35  ;;  %5923 = vmatpush1.bf16.msra.mxu1 %v8103_v36 }
0x2063   :  { %5883 = vmatprep.subr.bf16.mxu0 %v8118_v39  ;;  %5924 = vmatprep.subr.bf16.mxu1 %v8120_v40 }
0x2064   :  { %5913 = vmatprep.mubr.bf16.mxu0 %v9544_v38  ;;  %5954 = vmatprep.mubr.bf16.mxu1 %v9544_v38  ;;  %v9323_v38 = vld [vmem:[%s11703_s10 + $0x558] sm:$0xff]  }
0x2066   :  { %5884 = vmatpush1.bf16.msra.mxu0 %v8117_v42  ;;  %5925 = vmatpush1.bf16.msra.mxu1 %v8119_v46 }
0x2067   :  { %8531 = vmatprep.subr.bf16.mxu0 %v9318_v48  ;;  %8553 = vmatprep.subr.bf16.mxu1 %v9319_v51 }
0x2069   :  { %8127 = vmatmul.mubr.msk.bf16.vlgmr.msra.gmra.mrb[92].mxu0 %vm508_vm2, %v11027_v4  ;;  %8128 = vmatmul.mubr.msk.bf16.vlgmr.msra.gmra.mrb[124].mxu1 %vm508_vm2, %v11027_v4  ;;  %v9333_v4 = vld [vmem:[%s11703_s10 + $0x528] sm:$0xff]  }
0x206a   :  { %8532 = vmatpush3.bf16.msra.mxu0 %v9320_v52  ;;  %8554 = vmatpush3.bf16.msra.mxu1 %v9321_v53 }
0x206b   :  { %8533 = vmatprep.subr.bf16.mxu0 %v9322_v54  ;;  %8555 = vmatprep.subr.bf16.mxu1 %v9323_v38  ;;  %v5415_v38 = vrot.slane %v11204_v45, %v10477_v31 }
0x206e   :  { %8534 = vmatpush3.bf16.msra.mxu0 %v9324_v56  ;;  %8556 = vmatpush3.bf16.msra.mxu1 %v9325_v59  ;;  %v5423_v56 = vrot.slane %v11204_v45, %v10480_v32  ;;  %v9352_v59 = vld [vmem:[%s11703_s10 + $0x590] sm:$0xff]  }
0x206f   :  { %8535 = vmatprep.subr.bf16.mxu0 %v9326_v60  ;;  %8557 = vmatprep.subr.bf16.mxu1 %v9327_v1  ;;  %v9353_v60 = vld [vmem:[%s11703_s10 + $0x610] sm:$0xff]  }
0x2072   :  { %8536 = vmatpush3.bf16.msra.mxu0 %v9328_v34  ;;  %8558 = vmatpush3.bf16.msra.mxu1 %v9329_v58  ;;  %v9354_v58 = vld [vmem:[%s11703_s10 + $0x5d8] sm:$0xff]  }
0x2073   :  { %8537 = vmatprep.subr.bf16.mxu0 %v9330_v2  ;;  %8559 = vmatprep.subr.bf16.mxu1 %v9331_v15  ;;  %v9355_v2 = vld [vmem:[%s11703_s10 + $0x658] sm:$0xff]  }
0x2076   :  { %8538 = vmatpush3.bf16.msra.mxu0 %v9332_v33  ;;  %8560 = vmatpush3.bf16.msra.mxu1 %v9333_v4 }
0x2077   :  { %8539 = vmatprep.subr.bf16.mxu0 %v9334_v5  ;;  %8561 = vmatprep.subr.bf16.mxu1 %v9335_v6 }
0x207a   :  { %8540 = vmatpush3.bf16.msra.mxu0 %v9336_v41  ;;  %8562 = vmatpush3.bf16.msra.mxu1 %v9337_v7 }
0x207b   :  { %8541 = vmatprep.subr.bf16.mxu0 %v9338_v8  ;;  %8563 = vmatprep.subr.bf16.mxu1 %v9339_v10  ;;  %v9356_v10 = vld [vmem:[%s11703_s10 + $0x598] sm:$0xff]  }
0x207e   :  { %8542 = vmatpush3.bf16.msra.mxu0 %v9340_v55  ;;  %8564 = vmatpush3.bf16.msra.mxu1 %v9341_v44  ;;  %v9357_v55 = vld [vmem:[%s11703_s10 + $0x618] sm:$0xff]  }
0x207f   :  { %8543 = vmatprep.subr.bf16.mxu0 %v9342_v11  ;;  %8565 = vmatprep.subr.bf16.mxu1 %v9343_v17  ;;  %v9358_v17 = vld [vmem:[%s11703_s10 + $0x5e0] sm:$0xff]  }
0x2082   :  { %8544 = vmatpush3.bf16.msra.mxu0 %v9344_v43  ;;  %8566 = vmatpush3.bf16.msra.mxu1 %v9345_v12  ;;  %v9359_v43 = vld [vmem:[%s11703_s10 + $0x660] sm:$0xff]  }
0x2083   :  { %8545 = vmatprep.subr.bf16.mxu0 %v9346_v13  ;;  %8567 = vmatprep.subr.bf16.mxu1 %v9347_v18 }
0x2086   :  { %8546 = vmatpush3.bf16.msra.mxu0 %v9348_v14  ;;  %8568 = vmatpush3.bf16.msra.mxu1 %v9349_v57  ;;  %v9360_v57 = vld [vmem:[%s11703_s10 + $0x5a0] sm:$0xff]  }
0x2087   :  { %8575 = vmatprep.subr.bf16.mxu0 %v9350_v22  ;;  %8597 = vmatprep.subr.bf16.mxu1 %v9351_v63  ;;  %v9361_v22 = vld [vmem:[%s11703_s10 + $0x620] sm:$0xff]   ;;  %v9362_v63 = vld [vmem:[%s11703_s10 + $0x5e8] sm:$0xff]  }
0x2124   :  { %v5669_v21 = vpop.f32.mrb[80].mxu0  ;;  %v5710_v23 = vpop.f32.mrb[112].mxu1 }
0x2125   :  { %v5670_v24 = vadd.f32 %v5669_v21, %v5395_v47  ;;  %v5711_v26 = vadd.f32 %v5710_v23, %v5403_v16  ;;  %v5671_v27 = vpop.f32.mrb[81].mxu0  ;;  %v5712_v28 = vpop.f32.mrb[113].mxu1  ;;  %v9363_v47 = vld [vmem:[%s11703_s10 + $0x668] sm:$0xff]  }
0x2126   :  { %v5672_v29 = vadd.f32 %v5671_v27, %v5399_v19  ;;  %v5713_v35 = vadd.f32 %v5712_v28, %v5407_v20  ;;  %v5673_v36 = vpop.f32.mrb[82].mxu0  ;;  %v5714_v39 = vpop.f32.mrb[114].mxu1  ;;  %v9365_v27 = vld [vmem:[%s11703_s10 + $0x628] sm:$0xff]  }
0x2127   :  { %v5963_v40 = vmax.f32 %v5670_v24, 0.0  ;;  %v5965_v42 = vmax.f32 %v5711_v26, 0.0  ;;  %v5674_v46 = vpop.f32.mrb[83].mxu0  ;;  %v5715_v48 = vpop.f32.mrb[115].mxu1  ;;  %v9364_v26 = vld [vmem:[%s11703_s10 + $0x5a8] sm:$0xff]   ;;  %v9367_v36 = vld [vmem:[%s11703_s10 + $0x670] sm:$0xff]  }
0x2128   :  { %v5964_v51 = vmax.f32 %v5672_v29, 0.0  ;;  %v5966_v52 = vmax.f32 %v5713_v35, 0.0  ;;  %v9366_v35 = vld [vmem:[%s11703_s10 + $0x5f0] sm:$0xff]   ;;  %v9370_v48 = vld [vmem:[%s11703_s10 + $0x5f8] sm:$0xff]  }
0x2129   :  { %v5979_v1 = vpack.c.bf16 %v5963_v40, %v5963_v40  ;;  %v5981_v34 = vpack.c.bf16 %v5965_v42, %v5965_v42  ;;  %v11277_v39 = vld [vmem:[%s11698_s5 + $0x11] ss:$2 sm:$0xff] }
0x212a   :  { %v5980_v53 = vpack.c.bf16 %v5964_v51, %v5964_v51  ;;  %v5982_v54 = vpack.c.bf16 %v5966_v52, %v5966_v52  ;;  %v5451_v40 = vrot.slane %v11277_v39, %v10537_v25  ;;  %v9368_v42 = vld [vmem:[%s11703_s10 + $0x5b0] sm:$0xff]   ;;  %v9371_v51 = vld [vmem:[%s11703_s10 + $0x678] sm:$0xff]  }
0x212b   :  { %v9369_v46 = vld [vmem:[%s11703_s10 + $0x630] sm:$0xff]  }
0x212c   :  { %v11230_v15 = vpop.f32.mrb[84].mxu0  ;;  %v11232_v33 = vpop.f32.mrb[116].mxu1  ;;  %6800 = vmatprep.mubr.bf16.mxu0 %v5980_v53  ;;  %6840 = vmatprep.mubr.bf16.mxu1 %v5982_v54 }
0x212d   :  { %v5753_v4 = vpop.f32.mrb[85].mxu0  ;;  %v5794_v5 = vpop.f32.mrb[117].mxu1  ;;  %6801 = vmatmul.mubr.bf16.vlgmr.msra.gmra.mrb[96].mxu0 %v5979_v1  ;;  %6841 = vmatmul.mubr.bf16.vlgmr.msra.gmra.mrb[128].mxu1 %v5981_v34  ;;  %v9372_v1 = vld [vmem:[%s11703_s10 + $0x5b8] sm:$0xff]  }
0x212e   :  { %v5754_v6 = vadd.f32 %v5753_v4, %v5415_v38  ;;  %v5795_v41 = vadd.f32 %v5794_v5, %v5423_v56  ;;  %8576 = vmatpush3.bf16.msra.mxu0 %v9352_v59  ;;  %8598 = vmatpush3.bf16.msra.mxu1 %v9353_v60  ;;  %v5755_v7 = vpop.f32.mrb[86].mxu0  ;;  %v5796_v8 = vpop.f32.mrb[118].mxu1  ;;  %v9373_v34 = vld [vmem:[%s11703_s10 + $0x638] sm:$0xff]  }
0x212f   :  { %v5756_v44 = vpop.f32.mrb[87].mxu0  ;;  %v5797_v11 = vpop.f32.mrb[119].mxu1  ;;  %8577 = vmatprep.subr.bf16.mxu0 %v9354_v58  ;;  %8599 = vmatprep.subr.bf16.mxu1 %v9355_v2  ;;  %v5411_v58 = vrot.slane %v11204_v45, %v10559_v37  ;;  %v5419_v2 = vrot.slane %v11204_v45, %v10537_v25  ;;  %v5431_v7 = vrot.slane %v11277_v39, %v9773_v50  ;;  %v9376_v25 = vld [vmem:[%s11703_s10 + $0x5c0] sm:$0xff]   ;;  %v9378_v50 = vld [vmem:[%s11703_s10 + $0x608] sm:$0xff]  }
0x2130   :  { %v5968_v12 = vmax.f32 %v5754_v6, 0.0  ;;  %v5970_v13 = vmax.f32 %v5795_v41, 0.0  ;;  %v9374_v6 = vld [vmem:[%s11703_s10 + $0x600] sm:$0xff]   ;;  %v5439_v8 = vrot.slane %v11277_v39, %v10077_v0  ;;  %v9379_v0 = vld [vmem:[%s11703_s10 + $0x688] sm:$0xff]  }
0x2131   :  { %v9375_v41 = vld [vmem:[%s11703_s10 + $0x680] sm:$0xff]  }
0x2132   :  { %v5984_v18 = vpack.c.bf16 %v5968_v12, %v5968_v12  ;;  %v5986_v14 = vpack.c.bf16 %v5970_v13, %v5970_v13  ;;  %8578 = vmatpush3.bf16.msra.mxu0 %v9356_v10  ;;  %8600 = vmatpush3.bf16.msra.mxu1 %v9357_v55  ;;  %v9377_v45 = vld [vmem:[%s11703_s10 + $0x640] sm:$0xff]   ;;  %v5752_v10 = vadd.f32 %v11230_v15, %v5411_v58  ;;  %v9380_v15 = vld [vmem:[%s11703_s10 + $0x5c8] sm:$0xff]   ;;  %v9382_v12 = vld [vmem:[%s11703_s10 + $0x6d0] sm:$0xff]  }
0x2133   :  { %8579 = vmatprep.subr.bf16.mxu0 %v9358_v17  ;;  %8601 = vmatprep.subr.bf16.mxu1 %v9359_v43  ;;  %v5793_v55 = vadd.f32 %v11232_v33, %v5419_v2  ;;  %v9381_v33 = vld [vmem:[%s11703_s10 + $0x648] sm:$0xff]   ;;  %v9383_v13 = vld [vmem:[%s11703_s10 + $0x750] sm:$0xff]   ;;  %v9404_v58 = vld [vmem:[%s11703_s10 + $0x6b8] sm:$0xff]   ;;  %v5427_v2 = vrot.slane %v11277_v39, %v9770_v49  ;;  %v5447_v49 = vrot.slane %v11277_v39, %v10477_v31 }
0x2134   :  { %v11258_v16 = vpop.f32.mrb[88].mxu0  ;;  %v11260_v19 = vpop.f32.mrb[120].mxu1  ;;  %6880 = vmatprep.mubr.bf16.mxu0 %v5984_v18  ;;  %6920 = vmatprep.mubr.bf16.mxu1 %v5986_v14  ;;  %v5967_v17 = vmax.f32 %v5752_v10, 0.0  ;;  %v9410_v31 = vld [vmem:[%s11703_s10 + $0x708] sm:$0xff]  }
0x2135   :  { %v5835_v20 = vpop.f32.mrb[89].mxu0  ;;  %v5876_v21 = vpop.f32.mrb[121].mxu1  ;;  %v5969_v43 = vmax.f32 %v5793_v55, 0.0  ;;  %v9412_v55 = vld [vmem:[%s11703_s10 + $0x6c8] sm:$0xff]  }
0x2136   :  { %8580 = vmatpush3.bf16.msra.mxu0 %v9360_v57  ;;  %8602 = vmatpush3.bf16.msra.mxu1 %v9361_v22  ;;  %v5837_v23 = vpop.f32.mrb[90].mxu0  ;;  %v5878_v24 = vpop.f32.mrb[122].mxu1  ;;  %v5836_v44 = vadd.f32 %v5835_v20, %v5431_v7  ;;  %v5877_v11 = vadd.f32 %v5876_v21, %v5439_v8  ;;  %v9384_v57 = vld [vmem:[%s11703_s10 + $0x690] sm:$0xff]   ;;  %v5983_v22 = vpack.c.bf16 %v5967_v17, %v5967_v17  ;;  %v9386_v21 = vld [vmem:[%s11703_s10 + $0x6d8] sm:$0xff]   ;;  %v9408_v8 = vld [vmem:[%s11703_s10 + $0x6c0] sm:$0xff]  }
0x2137   :  { %v5838_v28 = vpop.f32.mrb[91].mxu0  ;;  %v5879_v29 = vpop.f32.mrb[123].mxu1  ;;  %8581 = vmatprep.subr.bf16.mxu0 %v9362_v63  ;;  %8603 = vmatprep.subr.bf16.mxu1 %v9363_v47  ;;  %v5985_v63 = vpack.c.bf16 %v5969_v43, %v5969_v43  ;;  %v9385_v47 = vld [vmem:[%s11703_s10 + $0x710] sm:$0xff]   ;;  %v9387_v23 = vld [vmem:[%s11703_s10 + $0x758] sm:$0xff]   ;;  %v5455_v7 = vrot.slane %v11277_v39, %v10480_v32  ;;  %v9411_v32 = vld [vmem:[%s11703_s10 + $0x788] sm:$0xff]  }
0x2138   :  { %v5972_v18 = vmax.f32 %v5836_v44, 0.0  ;;  %v5974_v14 = vmax.f32 %v5877_v11, 0.0  ;;  %v9390_v28 = vld [vmem:[%s11703_s10 + $0x6e0] sm:$0xff]   ;;  %v9417_v17 = vld [vmem:[%s11703_s10 + $0x810] sm:$0xff]  }
0x2139   :  { %v9391_v29 = vld [vmem:[%s11703_s10 + $0x760] sm:$0xff]  }
0x213a   :  { %8582 = vmatpush3.bf16.msra.mxu0 %v9364_v26  ;;  %8604 = vmatpush3.bf16.msra.mxu1 %v9365_v27  ;;  %v5988_v20 = vpack.c.bf16 %v5972_v18, %v5972_v18  ;;  %v5990_v24 = vpack.c.bf16 %v5974_v14, %v5974_v14  ;;  %v9388_v26 = vld [vmem:[%s11703_s10 + $0x698] sm:$0xff]  }
0x213b   :  { %8583 = vmatprep.subr.bf16.mxu0 %v9366_v35  ;;  %8605 = vmatprep.subr.bf16.mxu1 %v9367_v36  ;;  %v9389_v27 = vld [vmem:[%s11703_s10 + $0x718] sm:$0xff]   ;;  %v9392_v35 = vld [vmem:[%s11703_s10 + $0x6a0] sm:$0xff]  }
0x213c   :  { %v11293_v52 = vpop.f32.mrb[92].mxu0  ;;  %v5956_v53 = vpop.f32.mrb[124].mxu1  ;;  %v9393_v36 = vld [vmem:[%s11703_s10 + $0x720] sm:$0xff]   ;;  %v9419_v18 = vld [vmem:[%s11703_s10 + $0x858] sm:$0xff]  }
0x213d   :  { %v11295_v54 = vadd.f32 %v5956_v53, %v5451_v40  ;;  %v11297_v38 = vpop.f32.mrb[93].mxu0  ;;  %v11299_v56 = vpop.f32.mrb[125].mxu1  ;;  %v9394_v40 = vld [vmem:[%s11703_s10 + $0x6e8] sm:$0xff]   ;;  %v9399_v53 = vld [vmem:[%s11703_s10 + $0x770] sm:$0xff]  }
0x213e   :  { %8584 = vmatpush3.bf16.msra.mxu0 %v9368_v42  ;;  %8606 = vmatpush3.bf16.msra.mxu1 %v9369_v46  ;;  %v5919_v59 = vpop.f32.mrb[94].mxu0  ;;  %v5960_v60 = vpop.f32.mrb[126].mxu1  ;;  %v9395_v42 = vld [vmem:[%s11703_s10 + $0x768] sm:$0xff]   ;;  %v5918_v10 = vadd.f32 %v11297_v38, %v5447_v49  ;;  %v9415_v38 = vld [vmem:[%s11703_s10 + $0x850] sm:$0xff]  }
0x213f   :  { %v5920_v4 = vpop.f32.mrb[95].mxu0  ;;  %v5961_v5 = vpop.f32.mrb[127].mxu1  ;;  %8585 = vmatprep.subr.bf16.mxu0 %v9370_v48  ;;  %8607 = vmatprep.subr.bf16.mxu1 %v9371_v51  ;;  %v9396_v46 = vld [vmem:[%s11703_s10 + $0x6a8] sm:$0xff]   ;;  %v9398_v51 = vld [vmem:[%s11703_s10 + $0x6f0] sm:$0xff]  }
0x2140   :  { %v9397_v48 = vld [vmem:[%s11703_s10 + $0x728] sm:$0xff]   ;;  %v9400_v59 = vld [vmem:[%s11703_s10 + $0x6b0] sm:$0xff]   ;;  %v9405_v4 = vld [vmem:[%s11703_s10 + $0x738] sm:$0xff]  }
0x2141   :  { %v9401_v60 = vld [vmem:[%s11703_s10 + $0x730] sm:$0xff]   ;;  %v9406_v5 = vld [vmem:[%s11703_s10 + $0x700] sm:$0xff]  }
0x2142   :  { %8586 = vmatpush3.bf16.msra.mxu0 %v9372_v1  ;;  %8608 = vmatpush3.bf16.msra.mxu1 %v9373_v34  ;;  %v9402_v1 = vld [vmem:[%s11703_s10 + $0x6f8] sm:$0xff]  }
0x2143   :  { %8587 = vmatprep.subr.bf16.mxu0 %v9374_v6  ;;  %8609 = vmatprep.subr.bf16.mxu1 %v9375_v41  ;;  %v9403_v34 = vld [vmem:[%s11703_s10 + $0x778] sm:$0xff]   ;;  %v5435_v6 = vrot.slane %v11277_v39, %v10074_v62  ;;  %v9407_v41 = vld [vmem:[%s11703_s10 + $0x780] sm:$0xff]  }
0x2144   :  { %v9409_v62 = vld [vmem:[%s11703_s10 + $0x740] sm:$0xff]  }
0x2146   :  { %8588 = vmatpush3.bf16.msra.mxu0 %v9376_v25  ;;  %8610 = vmatpush3.bf16.msra.mxu1 %v9377_v45  ;;  %v5834_v25 = vadd.f32 %v11258_v16, %v5427_v2  ;;  %v5875_v45 = vadd.f32 %v11260_v19, %v5435_v6  ;;  %v5959_v16 = vadd.f32 %v11299_v56, %v5455_v7  ;;  %v9413_v19 = vld [vmem:[%s11703_s10 + $0x748] sm:$0xff]   ;;  %v5976_v56 = vmax.f32 %v5918_v10, 0.0 }
0x2147   :  { %8589 = vmatprep.subr.bf16.mxu0 %v9378_v50  ;;  %8611 = vmatprep.subr.bf16.mxu1 %v9379_v0  ;;  %v9414_v0 = vld [vmem:[%s11703_s10 + $0x7d0] sm:$0xff]   ;;  %v9445_v2 = vld [vmem:[%s11703_s10 + $0x848] sm:$0xff]  }
0x2148   :  { %v5971_v50 = vmax.f32 %v5834_v25, 0.0  ;;  %v5973_v44 = vmax.f32 %v5875_v45, 0.0  ;;  %v5978_v11 = vmax.f32 %v5959_v16, 0.0 }
0x214a   :  { %8590 = vmatpush3.bf16.msra.mxu0 %v9380_v15  ;;  %8612 = vmatpush3.bf16.msra.mxu1 %v9381_v33  ;;  %v9416_v15 = vld [vmem:[%s11703_s10 + $0x790] sm:$0xff]   ;;  %v5987_v33 = vpack.c.bf16 %v5971_v50, %v5971_v50  ;;  %v5989_v43 = vpack.c.bf16 %v5973_v44, %v5973_v44  ;;  %v5994_v14 = vpack.c.bf16 %v5978_v11, %v5978_v11 }
0x214b   :  { %8619 = vmatprep.subr.bf16.mxu0 %v9382_v12  ;;  %8641 = vmatprep.subr.bf16.mxu1 %v9383_v13  ;;  %v9418_v12 = vld [vmem:[%s11703_s10 + $0x7d8] sm:$0xff]   ;;  %v5992_v13 = vpack.c.bf16 %v5976_v56, %v5976_v56 }
0x214d   :  { %6881 = vmatmul.mubr.bf16.vlgmr.msra.gmra.mrb[100].mxu0 %v5983_v22  ;;  %6921 = vmatmul.mubr.bf16.vlgmr.msra.gmra.mrb[132].mxu1 %v5985_v63  ;;  %v9421_v22 = vld [vmem:[%s11703_s10 + $0x818] sm:$0xff]   ;;  %v9422_v63 = vld [vmem:[%s11703_s10 + $0x7e0] sm:$0xff]  }
0x214e   :  { %8620 = vmatpush3.bf16.msra.mxu0 %v9384_v57  ;;  %6960 = vmatprep.mubr.bf16.mxu0 %v5988_v20  ;;  %v9420_v57 = vld [vmem:[%s11703_s10 + $0x798] sm:$0xff]   ;;  %v9424_v20 = vld [vmem:[%s11703_s10 + $0x7a0] sm:$0xff]  }
0x214f   :  { %8642 = vmatpush3.bf16.msra.mxu1 %v9385_v47  ;;  %7000 = vmatprep.mubr.bf16.mxu1 %v5990_v24  ;;  %v9423_v47 = vld [vmem:[%s11703_s10 + $0x860] sm:$0xff]   ;;  %v9427_v24 = vld [vmem:[%s11703_s10 + $0x868] sm:$0xff]  }
0x2150   :  { %8621 = vmatprep.subr.bf16.mxu0 %v9386_v21  ;;  %8643 = vmatprep.subr.bf16.mxu1 %v9387_v23  ;;  %v9425_v21 = vld [vmem:[%s11703_s10 + $0x820] sm:$0xff]   ;;  %v9426_v23 = vld [vmem:[%s11703_s10 + $0x7e8] sm:$0xff]  }
0x2152   :  { %8622 = vmatpush3.bf16.msra.mxu0 %v9388_v26  ;;  %v9428_v26 = vld [vmem:[%s11703_s10 + $0x7a8] sm:$0xff]  }
0x2153   :  { %8644 = vmatpush3.bf16.msra.mxu1 %v9389_v27  ;;  %8623 = vmatprep.subr.bf16.mxu0 %v9390_v28  ;;  %v9429_v27 = vld [vmem:[%s11703_s10 + $0x828] sm:$0xff]   ;;  %v9430_v28 = vld [vmem:[%s11703_s10 + $0x7f0] sm:$0xff]  }
0x2154   :  { %8645 = vmatprep.subr.bf16.mxu1 %v9391_v29  ;;  %v9431_v29 = vld [vmem:[%s11703_s10 + $0x870] sm:$0xff]  }
0x2156   :  { %8624 = vmatpush3.bf16.msra.mxu0 %v9392_v35  ;;  %v9432_v35 = vld [vmem:[%s11703_s10 + $0x7b0] sm:$0xff]  }
0x2157   :  { %8646 = vmatpush3.bf16.msra.mxu1 %v9393_v36  ;;  %8625 = vmatprep.subr.bf16.mxu0 %v9394_v40  ;;  %v9433_v36 = vld [vmem:[%s11703_s10 + $0x830] sm:$0xff]   ;;  %v9434_v40 = vld [vmem:[%s11703_s10 + $0x7f8] sm:$0xff]  }
0x2158   :  { %8647 = vmatprep.subr.bf16.mxu1 %v9395_v42  ;;  %v9435_v42 = vld [vmem:[%s11703_s10 + $0x878] sm:$0xff]  }
0x215a   :  { %8626 = vmatpush3.bf16.msra.mxu0 %v9396_v46  ;;  %v9436_v46 = vld [vmem:[%s11703_s10 + $0x7b8] sm:$0xff]  }
0x215b   :  { %8648 = vmatpush3.bf16.msra.mxu1 %v9397_v48  ;;  %8627 = vmatprep.subr.bf16.mxu0 %v9398_v51  ;;  %v5443_v48 = vrot.slane %v11277_v39, %v10559_v37  ;;  %v9437_v51 = vld [vmem:[%s11703_s10 + $0x838] sm:$0xff]   ;;  %v9440_v37 = vld [vmem:[%s11703_s10 + $0x7c0] sm:$0xff]  }
0x215c   :  { %8649 = vmatprep.subr.bf16.mxu1 %v9399_v53  ;;  %v9438_v53 = vld [vmem:[%s11703_s10 + $0x800] sm:$0xff]  }
0x215d   :  { %v5916_v39 = vadd.f32 %v11293_v52, %v5443_v48  ;;  %v9444_v52 = vld [vmem:[%s11703_s10 + $0x7c8] sm:$0xff]  }
0x215e   :  { %8628 = vmatpush3.bf16.msra.mxu0 %v9400_v59  ;;  %v9439_v59 = vld [vmem:[%s11703_s10 + $0x880] sm:$0xff]  }
0x215f   :  { %8650 = vmatpush3.bf16.msra.mxu1 %v9401_v60  ;;  %8629 = vmatprep.subr.bf16.mxu0 %v9402_v1  ;;  %v9441_v60 = vld [vmem:[%s11703_s10 + $0x840] sm:$0xff]   ;;  %v9442_v1 = vld [vmem:[%s11703_s10 + $0x808] sm:$0xff]  }
0x2160   :  { %8651 = vmatprep.subr.bf16.mxu1 %v9403_v34  ;;  %v9443_v34 = vld [vmem:[%s11703_s10 + $0x888] sm:$0xff]  }
0x2162   :  { %8630 = vmatpush3.bf16.msra.mxu0 %v9404_v58  ;;  %v5975_v58 = vmax.f32 %v5916_v39, 0.0 }
0x2163   :  { %8652 = vmatpush3.bf16.msra.mxu1 %v9405_v4  ;;  %8631 = vmatprep.subr.bf16.mxu0 %v9406_v5  ;;  %v5977_v4 = vmax.f32 %v11295_v54, 0.0  ;;  %v8129_v54 = vld [vmem:[%s11704_s11 + $0xe] ss:$0 sm:$0xff] }
0x2164   :  { %8653 = vmatprep.subr.bf16.mxu1 %v9407_v41  ;;  %v5991_v5 = vpack.c.bf16 %v5975_v58, %v5975_v58 }
0x2165   :  { %v5993_v6 = vpack.c.bf16 %v5977_v4, %v5977_v4  ;;  %v9447_v4 = vld [vmem:[%s11703_s10 + $0x88] sm:$0xff]  }
0x2166   :  { %8632 = vmatpush3.bf16.msra.mxu0 %v9408_v8 }
0x2167   :  { %8654 = vmatpush3.bf16.msra.mxu1 %v9409_v62  ;;  %8633 = vmatprep.subr.bf16.mxu0 %v9410_v31 }
0x2168   :  { %8655 = vmatprep.subr.bf16.mxu1 %v9411_v32 }
0x216a   :  { %8634 = vmatpush3.bf16.msra.mxu0 %v9412_v55 }
0x216b   :  { %8656 = vmatpush3.bf16.msra.mxu1 %v9413_v19  ;;  %8663 = vmatprep.subr.bf16.mxu0 %v9414_v0 }
0x216c   :  { %8685 = vmatprep.subr.bf16.mxu1 %v9415_v38 }
0x216d   :  { %6961 = vmatmul.mubr.bf16.vlgmr.msra.gmra.mrb[104].mxu0 %v5987_v33 }
0x216e   :  { %7001 = vmatmul.mubr.bf16.vlgmr.msra.gmra.mrb[136].mxu1 %v5989_v43  ;;  %8664 = vmatpush3.bf16.msra.mxu0 %v9416_v15 }
0x216f   :  { %7040 = vmatprep.mubr.bf16.mxu0 %v5992_v13  ;;  %8686 = vmatpush3.bf16.msra.mxu1 %v9417_v17 }
0x2170   :  { %7080 = vmatprep.mubr.bf16.mxu1 %v5994_v14  ;;  %8665 = vmatprep.subr.bf16.mxu0 %v9418_v12 }
0x2171   :  { %8687 = vmatprep.subr.bf16.mxu1 %v9419_v18 }
0x2172   :  { %8666 = vmatpush3.bf16.msra.mxu0 %v9420_v57 }
0x2173   :  { %8688 = vmatpush3.bf16.msra.mxu1 %v9421_v22  ;;  %8667 = vmatprep.subr.bf16.mxu0 %v9422_v63 }
0x2174   :  { %8689 = vmatprep.subr.bf16.mxu1 %v9423_v47 }
0x2176   :  { %8668 = vmatpush3.bf16.msra.mxu0 %v9424_v20 }
0x2177   :  { %8690 = vmatpush3.bf16.msra.mxu1 %v9425_v21  ;;  %8669 = vmatprep.subr.bf16.mxu0 %v9426_v23 }
0x2178   :  { %8691 = vmatprep.subr.bf16.mxu1 %v9427_v24 }
0x217a   :  { %8670 = vmatpush3.bf16.msra.mxu0 %v9428_v26 }
0x217b   :  { %8692 = vmatpush3.bf16.msra.mxu1 %v9429_v27  ;;  %8671 = vmatprep.subr.bf16.mxu0 %v9430_v28 }
0x217c   :  { %8693 = vmatprep.subr.bf16.mxu1 %v9431_v29 }
0x217e   :  { %8672 = vmatpush3.bf16.msra.mxu0 %v9432_v35 }
0x217f   :  { %8694 = vmatpush3.bf16.msra.mxu1 %v9433_v36  ;;  %8673 = vmatprep.subr.bf16.mxu0 %v9434_v40 }
0x2180   :  { %8695 = vmatprep.subr.bf16.mxu1 %v9435_v42 }
0x2182   :  { %8674 = vmatpush3.bf16.msra.mxu0 %v9436_v46 }
0x2183   :  { %8696 = vmatpush3.bf16.msra.mxu1 %v9437_v51  ;;  %8675 = vmatprep.subr.bf16.mxu0 %v9438_v53 }
0x2184   :  { %8697 = vmatprep.subr.bf16.mxu1 %v9439_v59 }
0x2186   :  { %8676 = vmatpush3.bf16.msra.mxu0 %v9440_v37 }
0x2187   :  { %8698 = vmatpush3.bf16.msra.mxu1 %v9441_v60  ;;  %8677 = vmatprep.subr.bf16.mxu0 %v9442_v1 }
0x2188   :  { %8699 = vmatprep.subr.bf16.mxu1 %v9443_v34 }
0x218a   :  { %8678 = vmatpush3.bf16.msra.mxu0 %v9444_v52 }
0x218b   :  { %8700 = vmatpush3.bf16.msra.mxu1 %v9445_v2  ;;  %8911 = vmatprep.subr.bf16.mxu0 %v9542_v9  ;;  %v9446_v2 = vld [vmem:[%s11703_s10 + $0x80] sm:$0xff]  }
0x218c   :  { %8919 = vmatprep.subr.bf16.mxu1 %v9542_v9 }
0x218d   :  { %7041 = vmatmul.mubr.bf16.vlgmr.msra.gmra.mrb[108].mxu0 %v5991_v5  ;;  %v9449_v5 = vld [vmem:[%s11702_s9 + $0x38] sm:$0xff]  }
0x218e   :  { %7081 = vmatmul.mubr.bf16.vlgmr.msra.gmra.mrb[140].mxu1 %v5993_v6  ;;  %8915 = vmatprep.mubr.msk.bf16.mxu0 %vm9543_vm0, %v9542_v9  ;;  %v7193_v6 = vpack.c.bf16 %v10100_v30, %v10100_v30 }
0x218f   :  { %8923 = vmatprep.mubr.msk.bf16.mxu1 %vm9543_vm0, %v9542_v9  ;;  %8912 = vmatpush3.bf16.msra.mxu0 %v9446_v2 }
0x2190   :  { %8913 = vmatprep.subr.bf16.mxu0 %v9542_v9 }
0x2193   :  { %8914 = vmatpush3.bf16.msra.mxu0 %v9447_v4 }
0x2194   :  { %8927 = vmatprep.subr.bf16.mxu0 %v9542_v9 }
0x2200   :  { %v8547_v41 = vpop.f32.mrb[96].mxu0  ;;  %v8569_v49 = vpop.f32.mrb[128].mxu1 }
0x2201   :  { %v8548_v7 = vpop.f32.mrb[97].mxu0  ;;  %v8570_v8 = vpop.f32.mrb[129].mxu1 }
0x2202   :  { %v8549_v25 = vadd.f32 %v8548_v7, %v8547_v41  ;;  %v8571_v62 = vadd.f32 %v8570_v8, %v8569_v49  ;;  %v8550_v31 = vpop.f32.mrb[98].mxu0  ;;  %v8572_v45 = vpop.f32.mrb[130].mxu1  ;;  %v9451_v41 = vld [vmem:[%s11702_s9 + $0x40] sm:$0xff]   ;;  %v8258_v8 = vld [vmem:[%s11704_s11 + $0xf] ss:$0 sm:$0xff] }
0x2203   :  { %v8551_v32 = vpop.f32.mrb[99].mxu0  ;;  %v8573_v10 = vpop.f32.mrb[131].mxu1 }
0x2204   :  { %v6803_v16 = vadd.f32 %v8549_v25, %v8129_v54 }
0x2206   :  { %v6843_v55 = vadd.f32 %v8571_v62, %v6803_v16  ;;  %v8259_v62 = vld [vmem:[%s11704_s11 + $0x10] ss:$0 sm:$0xff] }
0x2220   :  { %v8591_v50 = vpop.f32.mrb[100].mxu0  ;;  %v8613_v19 = vpop.f32.mrb[132].mxu1 }
0x2221   :  { %v8592_v0 = vpop.f32.mrb[101].mxu0  ;;  %v8614_v44 = vpop.f32.mrb[133].mxu1 }
0x2222   :  { %v8593_v38 = vadd.f32 %v8592_v0, %v8591_v50  ;;  %v8615_v56 = vadd.f32 %v8614_v44, %v8613_v19  ;;  %v8594_v11 = vpop.f32.mrb[102].mxu0  ;;  %v8616_v15 = vpop.f32.mrb[134].mxu1 }
0x2223   :  { %v8595_v33 = vpop.f32.mrb[103].mxu0  ;;  %v8617_v17 = vpop.f32.mrb[135].mxu1  ;;  %v9452_v11 = vld [vmem:[%s11702_s9 + $0x28] sm:$0xff]   ;;  %v7188_v15 = vpack.c.bf16 %v10071_v61, %v10071_v61  ;;  %v9455_v61 = vld [vmem:[%s11702_s9 + $0x58] sm:$0xff]  }
0x2224   :  { %v6883_v43 = vadd.f32 %v8593_v38, %v6843_v55  ;;  %v9450_v38 = vld [vmem:[%s11702_s9 + $0x20] sm:$0xff]   ;;  %v9453_v33 = vld [vmem:[%s11702_s9 + $0x48] sm:$0xff]   ;;  %v9454_v17 = vld [vmem:[%s11702_s9 + $0x50] sm:$0xff]  }
0x2226   :  { %v6923_v12 = vadd.f32 %v8615_v56, %v6883_v43 }
0x2240   :  { %v8635_v13 = vpop.f32.mrb[104].mxu0 }
0x2241   :  { %v8657_v18 = vpop.f32.mrb[136].mxu1  ;;  %v8636_v14 = vpop.f32.mrb[105].mxu0 }
0x2242   :  { %v8637_v57 = vadd.f32 %v8636_v14, %v8635_v13  ;;  %v8658_v22 = vpop.f32.mrb[137].mxu1  ;;  %v8638_v63 = vpop.f32.mrb[106].mxu0  ;;  %v9456_v13 = vld [vmem:[%s11702_s9 + $0x60] sm:$0xff]  }
0x2243   :  { %v8659_v47 = vadd.f32 %v8658_v22, %v8657_v18  ;;  %v8660_v20 = vpop.f32.mrb[138].mxu1  ;;  %v8639_v21 = vpop.f32.mrb[107].mxu0  ;;  %v9458_v22 = vld [vmem:[%s11702_s9 + $0x70] sm:$0xff]   ;;  %v9459_v63 = vld [vmem:[%s11702_s9 + $0x78] sm:$0xff]  }
0x2244   :  { %v6963_v23 = vadd.f32 %v8637_v57, %v6923_v12  ;;  %v8661_v24 = vpop.f32.mrb[139].mxu1  ;;  %v9457_v57 = vld [vmem:[%s11702_s9 + $0x68] sm:$0xff]  }
0x2246   :  { %v7003_v26 = vadd.f32 %v8659_v47, %v6963_v23  ;;  %v7128_v47 = vld [vmem:[%s11704_s11 + $0x11] sm:$0x1] }
0x2260   :  { %v8679_v27 = vpop.f32.mrb[108].mxu0 }
0x2261   :  { %v8701_v28 = vpop.f32.mrb[140].mxu1  ;;  %v8680_v29 = vpop.f32.mrb[109].mxu0 }
0x2262   :  { %v8681_v35 = vadd.f32 %v8680_v29, %v8679_v27  ;;  %v8702_v36 = vpop.f32.mrb[141].mxu1  ;;  %v8682_v40 = vpop.f32.mrb[110].mxu0 }
0x2263   :  { %v8703_v42 = vadd.f32 %v8702_v36, %v8701_v28  ;;  %v8704_v46 = vpop.f32.mrb[142].mxu1  ;;  %v8683_v48 = vpop.f32.mrb[111].mxu0 }
0x2264   :  { %v7043_v51 = vadd.f32 %v8681_v35, %v7003_v26  ;;  %v8705_v53 = vpop.f32.mrb[143].mxu1  ;;  %v9461_v46 = vld [vmem:[%s11702_s9 + $0x88] sm:$0xff]   ;;  %v9462_v48 = vld [vmem:[%s11702_s9 + $0x90] sm:$0xff]  }
0x2265   :  { %v9464_v53 = vld [vmem:[%s11702_s9 + $0xa0] sm:$0xff]  }
0x2266   :  { %v7083_v59 = vadd.f32 %v8703_v42, %v7043_v51  ;;  %v9460_v42 = vld [vmem:[%s11702_s9 + $0x80] sm:$0xff]   ;;  %v9463_v51 = vld [vmem:[%s11702_s9 + $0x98] sm:$0xff]  }
0x2268   :  { %v7088_v37 = vadd.f32 %v7083_v59, %v11023_v3  ;;  %v9448_v3 = vld [vmem:[%s11702_s9 + $0x30] sm:$0xff]   ;;  %v9465_v59 = vld [vmem:[%s11702_s9 + $0xa8] sm:$0xff]  }
0x2269   :  { %8920 = vmatpush3.bf16.msra.mxu1 %v9448_v3 }
0x226a   :  { %v7091_v39 = vsel %vm508_vm2, %v7088_v37, 0.0  ;;  %8921 = vmatprep.subr.bf16.mxu1 %v9542_v9 }
0x226b   :  { %7092 = vadd.xlane.f32.xlu1 %v7091_v39  ;;  %v9467_v39 = vld [vmem:[%s11702_s9 + $0xb8] sm:$0xff]  }
0x226d   :  { %8922 = vmatpush3.bf16.msra.mxu1 %v9449_v5 }
0x226e   :  { %8935 = vmatprep.subr.bf16.mxu1 %v9542_v9 }
0x2270   :  { %8924 = vmatmul.mubr.msk.bf16.vlgmr.msra.gmra.mrb[144].mxu1 %vm508_vm2, %v7193_v6  ;;  %v9468_v6 = vld [vmem:[%s11702_s9 + $0xc0] sm:$0xff]  }
0x2271   :  { %8936 = vmatpush3.bf16.msra.mxu1 %v9451_v41  ;;  %8939 = vmatprep.mubr.msk.bf16.mxu1 %vm9543_vm0, %v9542_v9  ;;  %v9469_v41 = vld [vmem:[%s11702_s9 + $0xc8] sm:$0xff]  }
0x2272   :  { %8937 = vmatprep.subr.bf16.mxu1 %v9542_v9 }
0x2275   :  { %8938 = vmatpush3.bf16.msra.mxu1 %v9453_v33 }
0x2276   :  { %8963 = vmatprep.subr.bf16.mxu1 %v9542_v9 }
0x22f8   :  { %v7093_v60 = vpop.xlane.xlu1 %7092 }
0x22f9   :  { %v7094_v1 = vmul.f32 0.03125, %v7093_v60 }
0x22fb   :  { %v7095_v34 = vsub.f32 %v7088_v37, %v7094_v1  ;;  %v9466_v37 = vld [vmem:[%s11702_s9 + $0xb0] sm:$0xff]  }
0x22fc   :  { %v7365_v1 = vld [vmem:[%s11704_s11 + $0x12] sm:$0x1] }
0x22fd   :  { %v7096_v52 = vmul.f32 %v7095_v34, %v7095_v34 }
0x22ff   :  { %v7097_v58 = vsel %vm508_vm2, %v7096_v52, 0.0 }
0x2300   :  { %7098 = vadd.xlane.f32.xlu1 %v7097_v58 }
0x2343   :  { %v7243_v43 = vpop.f32.mrb[144].mxu1 }
0x2344   :  { %v8925_v12 = vpop.f32.mrb[145].mxu1 }
0x2345   :  { %v7246_v18 = vpop.f32.mrb[146].mxu1 }
0x2346   :  { %v8926_v14 = vpop.f32.mrb[147].mxu1 }
0x238d   :  { %v7099_v49 = vpop.xlane.xlu1 %7098 }
0x238e   :  { %v7100_v54 = vmul.f32 0.03125, %v7099_v49  ;;  %v7385_v49 = vld [vmem:[%s11704_s11 + $0x13] sm:$0x1] }
0x2390   :  { %v7101_v7 = vadd.f32 1e-05, %v7100_v54 }
0x2392   :  { %9508 = vrsqrt.f32 %v7101_v7 }
0x239c   :  { %v9509_v30 = vpop.eup %9508 }
0x239d   :  { %v7103_v25 = vmul.f32 %v9509_v30, %v7095_v34 }
0x239f   :  { %v7108_v31 = vmul.f32 %v8258_v8, %v7103_v25 }
0x23a1   :  { %v7113_v45 = vadd.f32 %v8259_v62, %v7108_v31 }
0x23a3   :  { %v7114_v32 = vsel %vm508_vm2, %v7113_v45, 0.0 }
0x23a4   :  { %v7115_v10 = vrot.slane %v7114_v32, 4 }
0x23a6   :  { %v7116_v16 = vadd.f32 %v7115_v10, %v7114_v32 }
0x23a8   :  { %v7117_v55 = vrot.slane %v7116_v16, 2 }
0x23aa   :  { %v7118_v50 = vadd.f32 %v7117_v55, %v7116_v16 }
0x23ac   :  { %v7119_v19 = vrot.slane %v7118_v50, 1 }
0x23ae   :  { %v7120_v0 = vadd.f32 %v7119_v19, %v7118_v50 }
0x23b0   :  { %v7122_v44 = vmul.f32 0.125, %v7120_v0 }
0x23b2   :  { %v7127_v56 = vpack.c.bf16 %v7122_v44, %v7122_v44 }
0x23b4   :  { %8916 = vmatmul.mubr.msk.bf16.vlgmr.msra.gmra.mrb[112].mxu0 %vm508_vm2, %v7127_v56 }
0x23b5   :  { %8928 = vmatpush3.bf16.msra.mxu0 %v9450_v38  ;;  %8931 = vmatprep.mubr.msk.bf16.mxu0 %vm9543_vm0, %v9542_v9 }
0x23b6   :  { %8929 = vmatprep.subr.bf16.mxu0 %v9542_v9 }
0x23b9   :  { %8930 = vmatpush3.bf16.msra.mxu0 %v9452_v11 }
0x23ba   :  { %8943 = vmatprep.subr.bf16.mxu0 %v9542_v9 }
0x23bc   :  { %8932 = vmatmul.mubr.msk.bf16.vlgmr.msra.gmra.mrb[116].mxu0 %vm508_vm2, %v7188_v15 }
0x23bd   :  { %8959 = vmatprep.mubr.msk.bf16.mxu0 %vm9543_vm0, %v9542_v9  ;;  %8944 = vmatpush3.bf16.msra.mxu0 %v9454_v17 }
0x23be   :  { %8945 = vmatprep.subr.bf16.mxu0 %v9542_v9 }
0x23c1   :  { %8946 = vmatpush3.bf16.msra.mxu0 %v9455_v61 }
0x23c2   :  { %8947 = vmatprep.subr.bf16.mxu0 %v9542_v9 }
0x23c5   :  { %8948 = vmatpush3.bf16.msra.mxu0 %v9456_v13 }
0x23c6   :  { %8949 = vmatprep.subr.bf16.mxu0 %v9542_v9 }
0x23c9   :  { %8950 = vmatpush3.bf16.msra.mxu0 %v9457_v57 }
0x23ca   :  { %8951 = vmatprep.subr.bf16.mxu0 %v9542_v9 }
0x23cd   :  { %8952 = vmatpush3.bf16.msra.mxu0 %v9458_v22 }
0x23ce   :  { %8953 = vmatprep.subr.bf16.mxu0 %v9542_v9 }
0x23d1   :  { %8954 = vmatpush3.bf16.msra.mxu0 %v9459_v63 }
0x23d2   :  { %8955 = vmatprep.subr.bf16.mxu0 %v9542_v9 }
0x23d5   :  { %8956 = vmatpush3.bf16.msra.mxu0 %v9460_v42 }
0x23d6   :  { %8957 = vmatprep.subr.bf16.mxu0 %v9542_v9 }
0x23d9   :  { %8958 = vmatpush3.bf16.msra.mxu0 %v9461_v46 }
0x2487   :  { %v7178_v20 = vpop.f32.mrb[112].mxu0 }
0x2488   :  { %v7179_v21 = vadd.f32 %v7178_v20, %v7128_v47  ;;  %v8917_v23 = vpop.f32.mrb[113].mxu0 }
0x2489   :  { %v7181_v24 = vpop.f32.mrb[114].mxu0 }
0x248a   :  { %v7308_v26 = vpack.c.bf16 %v7179_v21, %v7179_v21  ;;  %v8918_v27 = vpop.f32.mrb[115].mxu0 }
0x248c   :  { %8940 = vmatmul.mubr.msk.bf16.vlgmr.msra.gmra.mrb[148].mxu1 %vm508_vm2, %v7308_v26 }
0x248d   :  { %8979 = vmatprep.mubr.msk.bf16.mxu1 %vm9543_vm0, %v9542_v9  ;;  %8964 = vmatpush3.bf16.msra.mxu1 %v9462_v48 }
0x248e   :  { %8965 = vmatprep.subr.bf16.mxu1 %v9542_v9 }
0x248f   :  { %v7298_v28 = vpop.f32.mrb[116].mxu0 }
0x2490   :  { %v7299_v29 = vadd.f32 %v7298_v28, %v7243_v43  ;;  %v8933_v35 = vpop.f32.mrb[117].mxu0 }
0x2491   :  { %v7301_v36 = vpop.f32.mrb[118].mxu0  ;;  %8966 = vmatpush3.bf16.msra.mxu1 %v9463_v51 }
0x2492   :  { %v8934_v40 = vpop.f32.mrb[119].mxu0  ;;  %8967 = vmatprep.subr.bf16.mxu1 %v9542_v9 }
0x2495   :  { %8968 = vmatpush3.bf16.msra.mxu1 %v9464_v53 }
0x2496   :  { %8969 = vmatprep.subr.bf16.mxu1 %v9542_v9 }
0x2499   :  { %8970 = vmatpush3.bf16.msra.mxu1 %v9465_v59 }
0x249a   :  { %8971 = vmatprep.subr.bf16.mxu1 %v9542_v9 }
0x249d   :  { %8972 = vmatpush3.bf16.msra.mxu1 %v9466_v37 }
0x249e   :  { %8973 = vmatprep.subr.bf16.mxu1 %v9542_v9 }
0x24a1   :  { %8974 = vmatpush3.bf16.msra.mxu1 %v9467_v39 }
0x24a2   :  { %8975 = vmatprep.subr.bf16.mxu1 %v9542_v9 }
0x24a5   :  { %8976 = vmatpush3.bf16.msra.mxu1 %v9468_v6 }
0x24a6   :  { %8977 = vmatprep.subr.bf16.mxu1 %v9542_v9  ;;  %v7492_v9 = vld [vmem:[%s11704_s11 + $0x14] sm:$0x1] }
0x24a9   :  { %8978 = vmatpush3.bf16.msra.mxu1 %v9469_v41 }
0x255f   :  { %v7358_v60 = vpop.f32.mrb[148].mxu1 }
0x2560   :  { %v7364_v34 = vadd.f32 %v7358_v60, %v7299_v29  ;;  %v8941_v52 = vpop.f32.mrb[149].mxu1 }
0x2561   :  { %v7361_v58 = vpop.f32.mrb[150].mxu1 }
0x2562   :  { %v7366_v2 = vadd.f32 %v7365_v1, %v7364_v34  ;;  %v8942_v4 = vpop.f32.mrb[151].mxu1 }
0x2564   :  { %v7367_v3 = vmax.f32 %v7366_v2, 0.0 }
0x2566   :  { %v7384_v5 = vpack.c.bf16 %v7367_v3, %v7367_v3 }
0x2568   :  { %8960 = vmatmul.mubr.bf16.vlgmr.msra.gmra.mrb[120].mxu0 %v7384_v5 }
0x263b   :  { %v7468_v54 = vpop.f32.mrb[120].mxu0 }
0x263c   :  { %v7469_v7 = vadd.f32 %v7468_v54, %v7385_v49  ;;  %v8961_v30 = vpop.f32.mrb[121].mxu0 }
0x263d   :  { %v7471_v8 = vpop.f32.mrb[122].mxu0 }
0x263e   :  { %v7474_v25 = vmax.f32 %v7469_v7, 0.0  ;;  %v8962_v62 = vpop.f32.mrb[123].mxu0 }
0x2640   :  { %v7491_v31 = vpack.c.bf16 %v7474_v25, %v7474_v25 }
0x2642   :  { %8980 = vmatmul.mubr.bf16.vlgmr.msra.gmra.mrb[152].mxu1 %v7491_v31 }
0x2715   :  { %v7575_v45 = vpop.f32.mrb[152].mxu1 }
0x2716   :  { %v7576_v32 = vadd.f32 %v7575_v45, %v7492_v9  ;;  %v8981_v10 = vpop.f32.mrb[153].mxu1 }
0x2717   :  { %v7578_v16 = vpop.f32.mrb[154].mxu1 }
0x2718   :  { %7581 = vst [vmem:[%s11705_s12] sm:$0x1] %v7576_v32  ;;  %v8982_v55 = vpop.f32.mrb[155].mxu1 }
0x2719   :  { %7586 = vsyncmov [#allocation3] }
0x271c   :  { %s7587_s24 = vpop.sfrf %7586 }
0x271d   :  { %p8288_p5 = scmp.ne.s32.totalorder %s7587_s24, 0 }
0x271f   :  { %7591 = shalt.err (%p8288_p5)  }
0x2720   :  { %7593 = vsyncmov [#allocation3 + $0x1] }
0x2723   :  { %s7594_s6 = vpop.sfrf %7593 }
0x2724   :  { %p8289_p6 = scmp.ne.s32.totalorder %s7594_s6, 0 }
0x2726   :  { %7598 = shalt.err (%p8289_p6)  }
0x2727   :  { %7600 = vsyncmov [#allocation3 + $0x2] }
0x272a   :  { %s7601_s25 = vpop.sfrf %7600 }
0x272b   :  { %p8290_p7 = scmp.ne.s32.totalorder %s7601_s25, 0 }
0x272d   :  { %7605 = shalt.err (%p8290_p7)  }
0x272e   :  { %7607 = vsyncmov [#allocation3 + $0x3] }
0x2731   :  { %s7608_s11 = vpop.sfrf %7607 }
0x2732   :  { %p8291_p8 = scmp.ne.s32.totalorder %s7608_s11, 0 }
0x2734   :  { %7612 = shalt.err (%p8291_p8)  }
0x2735   :  { %7614 = vsyncmov [#allocation3 + $0x4] }
0x2738   :  { %s7615_s10 = vpop.sfrf %7614 }
0x2739   :  { %p8292_p9 = scmp.ne.s32.totalorder %s7615_s10, 0 }
0x273b   :  { %7619 = shalt.err (%p8292_p9)  }
0x273c   :  { %7621 = vsyncmov [#allocation3 + $0x5] }
0x273f   :  { %s7622_s12 = vpop.sfrf %7621 }
0x2740   :  { %p8293_p10 = scmp.ne.s32.totalorder %s7622_s12, 0 }
0x2742   :  { %7626 = shalt.err (%p8293_p10)  }
0x2743   :  { %7628 = vsyncmov [#allocation3 + $0x6] }
0x2746   :  { %s7629_s26 = vpop.sfrf %7628 }
0x2747   :  { %p8294_p11 = scmp.ne.s32.totalorder %s7629_s26, 0 }
0x2749   :  { %7633 = shalt.err (%p8294_p11)  }
0x274a   :  { %7635 = vsyncmov [#allocation3 + $0x7] }
0x274d   :  { %s7636_s0 = vpop.sfrf %7635 }
0x274e   :  { %p8295_p12 = scmp.ne.s32.totalorder %s7636_s0, 0 }
0x2750   :  { %7640 = shalt.err (%p8295_p12)  }

</bundles_post_ra>
